<compile_context>
chip_gen: v5e
topology: v5e:2x2
jax: 0.10.0
libtpu: 0.0.40
codegen_flags: <defaults>
</compile_context>

<pallas_src>
import functools

import jax
import jax.numpy as jnp
import numpy as np
from jax.experimental import pallas as pl
from jax.experimental.pallas import tpu as pltpu

EPS = 1e-5          # PyTorch BatchNorm2d default
LANES = 128         # TPU lane width; channel dims are padded to a multiple of this


def _round_up(x, m):
    return (x + m - 1) // m * m


def _vmem_capacity_bytes():
    """Physical per-core VMEM (generation-aware); conservative fallback if query fails."""
    try:
        return int(pltpu.get_tpu_info().vmem_capacity_bytes)
    except Exception:
        return 64 * 1024 * 1024


def _step_bytes(tile_h, w, cin_p, cout_p, esz):
    """Rough per-grid-step working set for the conv pass (double buffers + scratch + temps)."""
    tile = tile_h * w
    win = (tile_h + 2) * w * cin_p * esz                                    # window scratch
    ins = 2 * (tile * cin_p + 2 * w * cin_p + 9 * cin_p * cout_p) * esz     # dbl-buffered inputs
    outs = 2 * (tile * cout_p * esz + 2 * cout_p * 4 + 2 * cin_p * 4)       # dbl-buffered outputs
    tmp = ((tile_h + 2) * w * cin_p * esz      # shifted window value
           + tile * 3 * cin_p * esz            # K-fused lhs
           + tile * cout_p * 4)                # f32 accumulator value
    return win + ins + outs + tmp


def _pick_tile_h(h, w, cin_p, cout_p, esz, budget):
    """Largest row-tile height dividing H whose per-step working set fits the budget."""
    best = 1
    for th in range(1, h + 1):
        if h % th:
            continue
        if _step_bytes(th, w, cin_p, cout_p, esz) <= budget:
            best = th
    return best


def _vmem_limit(tile_h, w, cin_p, cout_p, esz, cap):
    need = _step_bytes(tile_h, w, cin_p, cout_p, esz)
    return int(min(max(3 * need, 32 * 1024 * 1024), int(cap * 0.75)))


# --------------------------------------------------------------------------------------------
# Kernels
# --------------------------------------------------------------------------------------------
def _conv_bn_stats_kernel(scale_ref, shift_ref, xc_ref, xu_ref, xd_ref, w_ref,
                          y_ref, st_ref, win_ref, *,
                          apply_prelu, nt, th, wout, cin_p, cout_p):
    """One (batch, row-tile) step: [optional folded BN+ReLU on the input] -> 3x3 conv
    (3 MXU matmuls with K = 3*Cin_p) -> per-tile BN partial statistics."""
    i = pl.program_id(1)
    wdt = win_ref.dtype

    if apply_prelu:
        # Hoisted broadcasts: done once per grid step (prep() is called 3x).
        sc = scale_ref[...].reshape(1, 1, cin_p)
        sh = shift_ref[...].reshape(1, 1, cin_p)

    def prep(v):  # (rows, W, cin_p) -> compute dtype, prev BN-affine + ReLU folded in (f32 math)
        if apply_prelu:
            v = jnp.maximum(v.astype(jnp.float32) * sc + sh, 0.0)
        return v.astype(wdt)

    cur = prep(xc_ref[0])                      # (th, W, cin_p)
    up = prep(xu_ref[0])                       # (1, W, cin_p)
    dn = prep(xd_ref[0])                       # (1, W, cin_p)
    zrow = jnp.zeros_like(up)
    up = jnp.where(i > 0, up, zrow)            # image-top halo == zero padding
    dn = jnp.where(i < nt - 1, dn, zrow)       # image-bottom halo == zero padding

    # (th+2, W, cin_p) window in compute dtype; rows only, no column padding.
    win_ref[0:1] = up
    win_ref[1:th + 1] = cur
    win_ref[th + 1:th + 2] = dn

    def lhs_for(xs):
        # dy-fused im2col: the 3 row taps are leading-dim (aligned) slices, concatenated along
        # the lane/K axis -> (th*W, 3*cin_p).  Matches the (3, 3*cin_p, cout_p) weight repack.
        return jnp.concatenate([xs[0:th], xs[1:th + 1], xs[2:th + 2]],
                               axis=-1).reshape(th * wout, 3 * cin_p)

    win = win_ref[...]                                         # aligned full load
    zcol = jnp.zeros((th + 2, 1, cin_p), wdt)
    # Left / right column taps: shifted window with a zero edge column (no misaligned ref slice).
    xs_l = jnp.concatenate([zcol, win[:, :wout - 1, :]], axis=1)   # x[:, w-1]
    xs_r = jnp.concatenate([win[:, 1:, :], zcol], axis=1)          # x[:, w+1]

    # 3 lane-dense (th*W, 3*cin_p) @ (3*cin_p, cout_p) MXU matmuls, register-carried f32 acc.
    acc = jnp.dot(lhs_for(xs_l), w_ref[0], preferred_element_type=jnp.float32)
    acc = acc + jnp.dot(lhs_for(win), w_ref[1], preferred_element_type=jnp.float32)
    acc = acc + jnp.dot(lhs_for(xs_r), w_ref[2], preferred_element_type=jnp.float32)

    # Per-tile BN partial statistics fused on the accumulator (no extra VMEM round trip).
    s = jnp.sum(acc, axis=0, keepdims=True)                    # (1, cout_p)
    mu = s * (1.0 / (th * wout))
    m2 = jnp.sum((acc - mu) ** 2, axis=0, keepdims=True)       # centered second moment
    st_ref[...] = jnp.concatenate([s, m2], axis=0).reshape(1, 1, 2, cout_p)
    y_ref[...] = acc.reshape(1, th, wout, cout_p).astype(y_ref.dtype)


def _bn_relu_kernel(scale_ref, shift_ref, y_ref, o_ref, *, cout):
    """Final BN2 + ReLU; writes only the unpadded Cout channels."""
    y = y_ref[0].astype(jnp.float32)                           # (th, W, cout_p)
    sc = scale_ref[...].reshape(1, 1, -1)
    sh = shift_ref[...].reshape(1, 1, -1)
    z = jnp.maximum(y * sc + sh, 0.0)
    o_ref[0] = z[:, :, :cout]


# --------------------------------------------------------------------------------------------
# Pallas-call builders
# --------------------------------------------------------------------------------------------
def _conv_pass(scale, shift, x, w, *, apply_prelu, tile_h, compute_dtype, vmem_limit):
    n, h, wdim, cin_p = x.shape
    cout_p = w.shape[-1]
    nt = h // tile_h
    kern = functools.partial(
        _conv_bn_stats_kernel, apply_prelu=apply_prelu, nt=nt, th=tile_h, wout=wdim,
        cin_p=cin_p, cout_p=cout_p)

    y, st = pl.pallas_call(
        kern,
        grid=(n, nt),
        in_specs=[
            pl.BlockSpec((1, cin_p), lambda b, i: (0, 0)),                        # scale
            pl.BlockSpec((1, cin_p), lambda b, i: (0, 0)),                        # shift
            pl.BlockSpec((1, tile_h, wdim, cin_p), lambda b, i: (b, i, 0, 0)),    # row tile
            pl.BlockSpec((1, 1, wdim, cin_p),                                     # halo row above
                         lambda b, i: (b, jnp.maximum(i * tile_h - 1, 0), 0, 0)),
            pl.BlockSpec((1, 1, wdim, cin_p),                                     # halo row below
                         lambda b, i: (b, jnp.minimum((i + 1) * tile_h, h - 1), 0, 0)),
            pl.BlockSpec((3, 3 * cin_p, cout_p), lambda b, i: (0, 0, 0)),         # dy-stacked weights
        ],
        out_specs=[
            pl.BlockSpec((1, tile_h, wdim, cout_p), lambda b, i: (b, i, 0, 0)),   # pre-BN conv
            pl.BlockSpec((1, 1, 2, cout_p), lambda b, i: (b, i, 0, 0)),           # per-tile stats
        ],
        out_shape=[
            jax.ShapeDtypeStruct((n, h, wdim, cout_p), compute_dtype),
            jax.ShapeDtypeStruct((n, nt, 2, cout_p), jnp.float32),
        ],
        scratch_shapes=[
            pltpu.VMEM((tile_h + 2, wdim, cin_p), compute_dtype),   # halo window (compute dtype)
        ],
        compiler_params=pltpu.CompilerParams(
            dimension_semantics=("parallel", "parallel"),
            vmem_limit_bytes=vmem_limit),
    )(scale, shift, x, x, x, w)
    return y, st


def _combine_stats(st, tile_pixels, total_pixels):
    """Chan et al. parallel combination of per-tile (sum, centered M2) -> global mean/var."""
    sums = st[:, :, 0, :]                  # (N, nt, Cp)
    m2s = st[:, :, 1, :]
    mean = jnp.sum(sums, axis=(0, 1)) / total_pixels
    tile_mean = sums / tile_pixels
    m2 = jnp.sum(m2s, axis=(0, 1)) + jnp.sum(tile_pixels * (tile_mean - mean) ** 2, axis=(0, 1))
    var = m2 / total_pixels                # biased, as PyTorch BN uses for normalization
    return mean, var


def _bn_fold(gamma, beta, mean, var):
    scale = gamma * jax.lax.rsqrt(var + EPS)
    shift = beta - mean * scale
    return scale.reshape(1, -1), shift.reshape(1, -1)


@functools.partial(jax.jit, static_argnames=("compute_dtype", "tile_h"))
def double_conv(x_nchw, w1, g1, b1, w2, g2, b2, *,
                compute_dtype=jnp.bfloat16, tile_h=None):
    """DoubleConv forward.  x_nchw: (N, Cin, H, W); w1: (Cout, Cin, 3, 3);
    w2: (Cout, Cout, 3, 3); g*/b*: (Cout,).  Returns (N, Cout, H, W) float32."""
    n, cin, h, wdim = x_nchw.shape
    cout = w1.shape[0]
    cin_p = _round_up(cin, LANES)
    cout_p = _round_up(cout, LANES)
    esz = jnp.dtype(compute_dtype).itemsize
    cap = _vmem_capacity_bytes()                                    # 128 MiB v5e/v6e, 64 MiB v7x

    if tile_h is None:
        budget = max(cap // 5, 8 * 1024 * 1024)                     # generation-aware tile budget
        tile_h = _pick_tile_h(h, wdim, max(cin_p, cout_p), cout_p, esz, budget)
    if h % tile_h != 0:
        raise ValueError(f"tile_h={tile_h} must divide H={h}")
    nt = h // tile_h

    # ---- layout glue: NCHW -> NHWC, channel pad to lane width, weight repack ---------------
    # TODO(synk): input transpose/pad and the final NHWC->NCHW transpose remain plain XLA ops.
    x = jnp.transpose(x_nchw, (0, 2, 3, 1)).astype(compute_dtype)
    x = jnp.pad(x, ((0, 0), (0, 0), (0, 0), (0, cin_p - cin)))

    def repack(wgt, ci_p, co_p):
        # (Cout, Cin, kH, kW) -> (kW, kH, Cin_p, Cout_p) -> (3, 3*Cin_p, Cout_p): the 3 dy taps
        # are stacked along K so each dx is a single K = 3*Cin_p matmul.
        co, ci = wgt.shape[0], wgt.shape[1]
        wr = jnp.transpose(wgt, (3, 2, 1, 0))                     # (kW, kH, Cin, Cout)
        wr = jnp.pad(wr, ((0, 0), (0, 0), (0, ci_p - ci), (0, co_p - co)))
        return wr.reshape(3, 3 * ci_p, co_p).astype(compute_dtype)

    w1r = repack(w1, cin_p, cout_p)
    w2r = repack(w2, cout_p, cout_p)
    g1p = jnp.pad(g1.astype(jnp.float32), (0, cout_p - cout))
    b1p = jnp.pad(b1.astype(jnp.float32), (0, cout_p - cout))
    g2p = jnp.pad(g2.astype(jnp.float32), (0, cout_p - cout))
    b2p = jnp.pad(b2.astype(jnp.float32), (0, cout_p - cout))

    vmem_limit = _vmem_limit(tile_h, wdim, max(cin_p, cout_p), cout_p, esz, cap)
    tile_pixels = float(tile_h * wdim)
    total_pixels = float(n * h * wdim)

    # ---- pass 1: conv1 + BN1 partial statistics --------------------------------------------
    one = jnp.ones((1, cin_p), jnp.float32)
    zero = jnp.zeros((1, cin_p), jnp.float32)
    y1, st1 = _conv_pass(one, zero, x, w1r, apply_prelu=False, tile_h=tile_h,
                         compute_dtype=compute_dtype, vmem_limit=vmem_limit)
    mean1, var1 = _combine_stats(st1, tile_pixels, total_pixels)
    scale1, shift1 = _bn_fold(g1p, b1p, mean1, var1)

    # ---- pass 2: (BN1 + ReLU folded in) conv2 + BN2 partial statistics ----------------------
    y2, st2 = _conv_pass(scale1, shift1, y1, w2r, apply_prelu=True, tile_h=tile_h,
                         compute_dtype=compute_dtype, vmem_limit=vmem_limit)
    mean2, var2 = _combine_stats(st2, tile_pixels, total_pixels)
    scale2, shift2 = _bn_fold(g2p, b2p, mean2, var2)

    # ---- pass 3: BN2 + ReLU, unpadded channels ----------------------------------------------
    out_nhwc = pl.pallas_call(
        functools.partial(_bn_relu_kernel, cout=cout),
        grid=(n, nt),
        in_specs=[pl.BlockSpec((1, cout_p), lambda b, i: (0, 0)),
                  pl.BlockSpec((1, cout_p), lambda b, i: (0, 0)),
                  pl.BlockSpec((1, tile_h, wdim, cout_p), lambda b, i: (b, i, 0, 0))],
        out_specs=pl.BlockSpec((1, tile_h, wdim, cout), lambda b, i: (b, i, 0, 0)),
        out_shape=jax.ShapeDtypeStruct((n, h, wdim, cout), jnp.float32),
        compiler_params=pltpu.CompilerParams(
            dimension_semantics=("parallel", "parallel"),
            vmem_limit_bytes=vmem_limit),
    )(scale2, shift2, y2)

    return jnp.transpose(out_nhwc, (0, 3, 1, 2))                   # back to NCHW


# --------------------------------------------------------------------------------------------
# Pure-JAX reference of the PyTorch forward (NCHW)
# --------------------------------------------------------------------------------------------
def ref_double_conv(x, w1, g1, b1, w2, g2, b2):
    def conv(x, w):
        return jax.lax.conv_general_dilated(
            x, w, window_strides=(1, 1), padding=((1, 1), (1, 1)),
            dimension_numbers=('NCHW', 'OIHW', 'NCHW'))

    def bn_relu(x, g, b):
        mean = jnp.mean(x, axis=(0, 2, 3), keepdims=True)
        var = jnp.var(x, axis=(0, 2, 3), keepdims=True)
        y = (x - mean) * jax.lax.rsqrt(var + EPS)
        y = y * g.reshape(1, -1, 1, 1) + b.reshape(1, -1, 1, 1)
        return jnp.maximum(y, 0.0)

    x = bn_relu(conv(x, w1), g1, b1)
    x = bn_relu(conv(x, w2), g2, b2)
    return x


if __name__ == "__main__":
    N, Cin, Cout, H, W = 2, 4, 8, 16, 16
    key = jax.random.PRNGKey(0)
    k1, k2, k3, k4, k5, k6, k7 = jax.random.split(key, 7)

    x = jax.random.normal(k1, (N, Cin, H, W), jnp.float32)
    w1 = 0.2 * jax.random.normal(k2, (Cout, Cin, 3, 3), jnp.float32)
    w2 = 0.2 * jax.random.normal(k3, (Cout, Cout, 3, 3), jnp.float32)
    g1 = 1.0 + 0.1 * jax.random.normal(k4, (Cout,), jnp.float32)
    b1 = 0.1 * jax.random.normal(k5, (Cout,), jnp.float32)
    g2 = 1.0 + 0.1 * jax.random.normal(k6, (Cout,), jnp.float32)
    b2 = 0.1 * jax.random.normal(k7, (Cout,), jnp.float32)

    ref = jax.block_until_ready(ref_double_conv(x, w1, g1, b1, w2, g2, b2))

    # f32 path: tight check against the reference (tile_h=8 -> 2 row tiles, exercises halos).
    out_f32 = jax.block_until_ready(
        double_conv(x, w1, g1, b1, w2, g2, b2, compute_dtype=jnp.float32, tile_h=8))
    if not np.allclose(np.asarray(out_f32), np.asarray(ref), rtol=2e-3, atol=2e-3):
        raise AssertionError("Pallas DoubleConv (f32) mismatch vs JAX reference")

    # bf16 fast path: bf16 MXU matmuls + bf16 intermediate storage, looser tolerance.
    out_bf16 = jax.block_until_ready(
        double_conv(x, w1, g1, b1, w2, g2, b2, compute_dtype=jnp.bfloat16, tile_h=8))
    if not np.allclose(np.asarray(out_bf16), np.asarray(ref), rtol=5e-2, atol=5e-2):
        raise AssertionError("Pallas DoubleConv (bf16) mismatch vs JAX reference")

    # Default path: auto (generation-aware) tile_h pick.
    out_auto = jax.block_until_ready(double_conv(x, w1, g1, b1, w2, g2, b2))
    if not np.allclose(np.asarray(out_auto), np.asarray(ref), rtol=5e-2, atol=5e-2):
        raise AssertionError("Pallas DoubleConv (auto-tile) mismatch vs JAX reference")

    print("KERNEL_OK")
</pallas_src>

<mosaic_0001>
module attributes {stable_mosaic.version = 11 : i64} {
  func.func @_conv_bn_stats_kernel(%arg0: i32, %arg1: i32, %arg2: memref<1x128xf32, #tpu.memory_space<vmem>>, %arg3: memref<1x128xf32, #tpu.memory_space<vmem>>, %arg4: memref<1x8x16x128xf32, #tpu.memory_space<vmem>>, %arg5: memref<1x1x16x128xf32, #tpu.memory_space<vmem>>, %arg6: memref<1x1x16x128xf32, #tpu.memory_space<vmem>>, %arg7: memref<3x384x128xf32, #tpu.memory_space<vmem>>, %arg8: memref<1x8x16x128xf32, #tpu.memory_space<vmem>>, %arg9: memref<1x1x2x128xf32, #tpu.memory_space<vmem>>, %arg10: memref<10x16x128xf32, #tpu.memory_space<vmem>>) attributes {dimension_semantics = [#tpu.dimension_semantics<parallel>, #tpu.dimension_semantics<parallel>], iteration_bounds = array<i64: 2, 2>, scalar_prefetch = 0 : i64, scratch_operands = 1 : i64, tpu.core_type = #tpu.core_type<tc>, window_params = [{pipeline_mode = #tpu.pipeline_mode<synchronous>, transform_indices = @transform_0, window_bounds = array<i64: 1, 128>}, {pipeline_mode = #tpu.pipeline_mode<synchronous>, transform_indices = @transform_1, window_bounds = array<i64: 1, 128>}, {transform_indices = @transform_2, window_bounds = array<i64: 1, 8, 16, 128>}, {transform_indices = @transform_3, window_bounds = array<i64: 1, 1, 16, 128>}, {transform_indices = @transform_4, window_bounds = array<i64: 1, 1, 16, 128>}, {pipeline_mode = #tpu.pipeline_mode<synchronous>, transform_indices = @transform_5, window_bounds = array<i64: 3, 384, 128>}, {transform_indices = @transform_6, window_bounds = array<i64: 1, 8, 16, 128>}, {transform_indices = @transform_7, window_bounds = array<i64: 1, 1, 2, 128>}]} {
    %c0 = arith.constant 0 : index
    %c0_0 = arith.constant 0 : index
    %c0_1 = arith.constant 0 : index
    %c0_2 = arith.constant 0 : index
    %0 = vector.load %arg4[%c0, %c0_0, %c0_1, %c0_2] : memref<1x8x16x128xf32, #tpu.memory_space<vmem>>, vector<1x8x16x128xf32>
    %1 = vector.shape_cast %0 : vector<1x8x16x128xf32> to vector<8x16x128xf32>
    %c0_3 = arith.constant 0 : index
    %c0_4 = arith.constant 0 : index
    %c0_5 = arith.constant 0 : index
    %c0_6 = arith.constant 0 : index
    %2 = vector.load %arg5[%c0_3, %c0_4, %c0_5, %c0_6] : memref<1x1x16x128xf32, #tpu.memory_space<vmem>>, vector<1x1x16x128xf32>
    %3 = vector.shape_cast %2 : vector<1x1x16x128xf32> to vector<1x16x128xf32>
    %c0_7 = arith.constant 0 : index
    %c0_8 = arith.constant 0 : index
    %c0_9 = arith.constant 0 : index
    %c0_10 = arith.constant 0 : index
    %4 = vector.load %arg6[%c0_7, %c0_8, %c0_9, %c0_10] : memref<1x1x16x128xf32, #tpu.memory_space<vmem>>, vector<1x1x16x128xf32>
    %5 = vector.shape_cast %4 : vector<1x1x16x128xf32> to vector<1x16x128xf32>
    %cst = arith.constant 0.000000e+00 : f32
    %6 = vector.broadcast %cst : f32 to vector<1x16x128xf32>
    %c0_i32 = arith.constant 0 : i32
    %7 = arith.cmpi sgt, %arg1, %c0_i32 : i32
    %8 = arith.select %7, %3, %6 : vector<1x16x128xf32>
    %c1_i32 = arith.constant 1 : i32
    %9 = arith.cmpi slt, %arg1, %c1_i32 : i32
    %10 = arith.select %9, %5, %6 : vector<1x16x128xf32>
    %c0_11 = arith.constant 0 : index
    %c0_12 = arith.constant 0 : index
    %c0_13 = arith.constant 0 : index
    %11 = vector.load %arg10[%c0_11, %c0_12, %c0_13] : memref<10x16x128xf32, #tpu.memory_space<vmem>>, vector<1x16x128xf32>
    tpu.vector_store %arg10[%c0_11, %c0_12, %c0_13], %8 {strides = array<i32>} : memref<10x16x128xf32, #tpu.memory_space<vmem>>, vector<1x16x128xf32>,
    %c1 = arith.constant 1 : index
    %c0_14 = arith.constant 0 : index
    %c0_15 = arith.constant 0 : index
    %12 = vector.load %arg10[%c1, %c0_14, %c0_15] : memref<10x16x128xf32, #tpu.memory_space<vmem>>, vector<8x16x128xf32>
    tpu.vector_store %arg10[%c1, %c0_14, %c0_15], %1 {strides = array<i32>} : memref<10x16x128xf32, #tpu.memory_space<vmem>>, vector<8x16x128xf32>,
    %c9 = arith.constant 9 : index
    %c0_16 = arith.constant 0 : index
    %c0_17 = arith.constant 0 : index
    %13 = vector.load %arg10[%c9, %c0_16, %c0_17] : memref<10x16x128xf32, #tpu.memory_space<vmem>>, vector<1x16x128xf32>
    tpu.vector_store %arg10[%c9, %c0_16, %c0_17], %10 {strides = array<i32>} : memref<10x16x128xf32, #tpu.memory_space<vmem>>, vector<1x16x128xf32>,
    %c0_18 = arith.constant 0 : index
    %c0_19 = arith.constant 0 : index
    %c0_20 = arith.constant 0 : index
    %14 = vector.load %arg10[%c0_18, %c0_19, %c0_20] : memref<10x16x128xf32, #tpu.memory_space<vmem>>, vector<10x16x128xf32>
    %cst_21 = arith.constant 0.000000e+00 : f32
    %15 = vector.broadcast %cst_21 : f32 to vector<10x1x128xf32>
    %16 = vector.extract_strided_slice %14 {offsets = [0, 0, 0], sizes = [10, 15, 128], strides = [1, 1, 1]} : vector<10x16x128xf32> to vector<10x15x128xf32>
    %17 = tpu.concatenate %15, %16 in 1 : vector<10x1x128xf32>, vector<10x15x128xf32> -> vector<10x16x128xf32>
    %18 = vector.extract_strided_slice %14 {offsets = [0, 1, 0], sizes = [10, 15, 128], strides = [1, 1, 1]} : vector<10x16x128xf32> to vector<10x15x128xf32>
    %19 = tpu.concatenate %18, %15 in 1 : vector<10x15x128xf32>, vector<10x1x128xf32> -> vector<10x16x128xf32>
    %20 = vector.extract_strided_slice %17 {offsets = [0, 0, 0], sizes = [8, 16, 128], strides = [1, 1, 1]} : vector<10x16x128xf32> to vector<8x16x128xf32>
    %21 = vector.extract_strided_slice %17 {offsets = [1, 0, 0], sizes = [8, 16, 128], strides = [1, 1, 1]} : vector<10x16x128xf32> to vector<8x16x128xf32>
    %22 = vector.extract_strided_slice %17 {offsets = [2, 0, 0], sizes = [8, 16, 128], strides = [1, 1, 1]} : vector<10x16x128xf32> to vector<8x16x128xf32>
    %23 = tpu.concatenate %20, %21, %22 in 2 : vector<8x16x128xf32>, vector<8x16x128xf32>, vector<8x16x128xf32> -> vector<8x16x384xf32>
    %24 = vector.shape_cast %23 : vector<8x16x384xf32> to vector<128x384xf32>
    %c0_22 = arith.constant 0 : index
    %c0_23 = arith.constant 0 : index
    %c0_24 = arith.constant 0 : index
    %25 = vector.load %arg7[%c0_22, %c0_23, %c0_24] : memref<3x384x128xf32, #tpu.memory_space<vmem>>, vector<1x384x128xf32>
    %26 = vector.shape_cast %25 : vector<1x384x128xf32> to vector<384x128xf32>
    %cst_25 = arith.constant dense<0.000000e+00> : vector<128x128xf32>
    %27 = tpu.matmul %24, %26, %cst_25 {dimension_numbers = #tpu.dot_dimension_numbers<[1], [0], [0], [1], [0, 0, 1, 1], [], []>} : vector<128x384xf32>, vector<384x128xf32>, vector<128x128xf32> -> vector<128x128xf32>
    %28 = vector.extract_strided_slice %14 {offsets = [0, 0, 0], sizes = [8, 16, 128], strides = [1, 1, 1]} : vector<10x16x128xf32> to vector<8x16x128xf32>
    %29 = vector.extract_strided_slice %14 {offsets = [1, 0, 0], sizes = [8, 16, 128], strides = [1, 1, 1]} : vector<10x16x128xf32> to vector<8x16x128xf32>
    %30 = vector.extract_strided_slice %14 {offsets = [2, 0, 0], sizes = [8, 16, 128], strides = [1, 1, 1]} : vector<10x16x128xf32> to vector<8x16x128xf32>
    %31 = tpu.concatenate %28, %29, %30 in 2 : vector<8x16x128xf32>, vector<8x16x128xf32>, vector<8x16x128xf32> -> vector<8x16x384xf32>
    %32 = vector.shape_cast %31 : vector<8x16x384xf32> to vector<128x384xf32>
    %c1_26 = arith.constant 1 : index
    %c0_27 = arith.constant 0 : index
    %c0_28 = arith.constant 0 : index
    %33 = vector.load %arg7[%c1_26, %c0_27, %c0_28] : memref<3x384x128xf32, #tpu.memory_space<vmem>>, vector<1x384x128xf32>
    %34 = vector.shape_cast %33 : vector<1x384x128xf32> to vector<384x128xf32>
    %cst_29 = arith.constant dense<0.000000e+00> : vector<128x128xf32>
    %35 = tpu.matmul %32, %34, %cst_29 {dimension_numbers = #tpu.dot_dimension_numbers<[1], [0], [0], [1], [0, 0, 1, 1], [], []>} : vector<128x384xf32>, vector<384x128xf32>, vector<128x128xf32> -> vector<128x128xf32>
    %36 = arith.addf %27, %35 : vector<128x128xf32>
    %37 = vector.extract_strided_slice %19 {offsets = [0, 0, 0], sizes = [8, 16, 128], strides = [1, 1, 1]} : vector<10x16x128xf32> to vector<8x16x128xf32>
    %38 = vector.extract_strided_slice %19 {offsets = [1, 0, 0], sizes = [8, 16, 128], strides = [1, 1, 1]} : vector<10x16x128xf32> to vector<8x16x128xf32>
    %39 = vector.extract_strided_slice %19 {offsets = [2, 0, 0], sizes = [8, 16, 128], strides = [1, 1, 1]} : vector<10x16x128xf32> to vector<8x16x128xf32>
    %40 = tpu.concatenate %37, %38, %39 in 2 : vector<8x16x128xf32>, vector<8x16x128xf32>, vector<8x16x128xf32> -> vector<8x16x384xf32>
    %41 = vector.shape_cast %40 : vector<8x16x384xf32> to vector<128x384xf32>
    %c2 = arith.constant 2 : index
    %c0_30 = arith.constant 0 : index
    %c0_31 = arith.constant 0 : index
    %42 = vector.load %arg7[%c2, %c0_30, %c0_31] : memref<3x384x128xf32, #tpu.memory_space<vmem>>, vector<1x384x128xf32>
    %43 = vector.shape_cast %42 : vector<1x384x128xf32> to vector<384x128xf32>
    %cst_32 = arith.constant dense<0.000000e+00> : vector<128x128xf32>
    %44 = tpu.matmul %41, %43, %cst_32 {dimension_numbers = #tpu.dot_dimension_numbers<[1], [0], [0], [1], [0, 0, 1, 1], [], []>} : vector<128x384xf32>, vector<384x128xf32>, vector<128x128xf32> -> vector<128x128xf32>
    %45 = arith.addf %36, %44 : vector<128x128xf32>
    %cst_33 = arith.constant dense<0.000000e+00> : vector<128xf32>
    %46 = vector.multi_reduction <add>, %45, %cst_33 [0] : vector<128x128xf32> to vector<128xf32>
    %47 = vector.shape_cast %46 : vector<128xf32> to vector<1x128xf32>
    %cst_34 = arith.constant 7.812500e-03 : f32
    %48 = vector.broadcast %cst_34 : f32 to vector<1x128xf32>
    %49 = arith.mulf %47, %48 : vector<1x128xf32>
    %50 = vector.broadcast %49 : vector<1x128xf32> to vector<128x128xf32>
    %51 = arith.subf %45, %50 : vector<128x128xf32>
    %52 = arith.mulf %51, %51 : vector<128x128xf32>
    %cst_35 = arith.constant dense<0.000000e+00> : vector<128xf32>
    %53 = vector.multi_reduction <add>, %52, %cst_35 [0] : vector<128x128xf32> to vector<128xf32>
    %54 = vector.shape_cast %53 : vector<128xf32> to vector<1x128xf32>
    %55 = tpu.concatenate %47, %54 in 0 : vector<1x128xf32>, vector<1x128xf32> -> vector<2x128xf32>
    %56 = vector.shape_cast %55 : vector<2x128xf32> to vector<1x1x2x128xf32>
    %c0_36 = arith.constant 0 : index
    %c0_37 = arith.constant 0 : index
    %c0_38 = arith.constant 0 : index
    %c0_39 = arith.constant 0 : index
    %57 = vector.load %arg9[%c0_36, %c0_37, %c0_38, %c0_39] : memref<1x1x2x128xf32, #tpu.memory_space<vmem>>, vector<1x1x2x128xf32>
    tpu.vector_store %arg9[%c0_36, %c0_37, %c0_38, %c0_39], %56 {strides = array<i32>} : memref<1x1x2x128xf32, #tpu.memory_space<vmem>>, vector<1x1x2x128xf32>,
    %58 = vector.shape_cast %45 : vector<128x128xf32> to vector<1x8x16x128xf32>
    %c0_40 = arith.constant 0 : index
    %c0_41 = arith.constant 0 : index
    %c0_42 = arith.constant 0 : index
    %c0_43 = arith.constant 0 : index
    %59 = vector.load %arg8[%c0_40, %c0_41, %c0_42, %c0_43] : memref<1x8x16x128xf32, #tpu.memory_space<vmem>>, vector<1x8x16x128xf32>
    tpu.vector_store %arg8[%c0_40, %c0_41, %c0_42, %c0_43], %58 {strides = array<i32>} : memref<1x8x16x128xf32, #tpu.memory_space<vmem>>, vector<1x8x16x128xf32>,
    return
  }
  func.func @transform_0(%arg0: i32, %arg1: i32) -> (i32, i32) {
    %c0_i32 = arith.constant 0 : i32
    %c0_i32_0 = arith.constant 0 : i32
    %c0_i32_1 = arith.constant 0 : i32
    return %c0_i32, %c0_i32_0 : i32, i32
  }
  func.func @transform_1(%arg0: i32, %arg1: i32) -> (i32, i32) {
    %c0_i32 = arith.constant 0 : i32
    %c0_i32_0 = arith.constant 0 : i32
    %c0_i32_1 = arith.constant 0 : i32
    return %c0_i32, %c0_i32_0 : i32, i32
  }
  func.func @transform_2(%arg0: i32, %arg1: i32) -> (i32, i32, i32, i32) {
    %c0_i32 = arith.constant 0 : i32
    %c0_i32_0 = arith.constant 0 : i32
    %c0_i32_1 = arith.constant 0 : i32
    return %arg0, %arg1, %c0_i32, %c0_i32_0 : i32, i32, i32, i32
  }
  func.func @transform_3(%arg0: i32, %arg1: i32) -> (i32, i32, i32, i32) {
    %c8_i32 = arith.constant 8 : i32
    %0 = arith.muli %arg1, %c8_i32 : i32
    %c1_i32 = arith.constant 1 : i32
    %1 = arith.subi %0, %c1_i32 : i32
    %c0_i32 = arith.constant 0 : i32
    %2 = arith.maxsi %1, %c0_i32 : i32
    %c0_i32_0 = arith.constant 0 : i32
    %c0_i32_1 = arith.constant 0 : i32
    %c0_i32_2 = arith.constant 0 : i32
    return %arg0, %2, %c0_i32_0, %c0_i32_1 : i32, i32, i32, i32
  }
  func.func @transform_4(%arg0: i32, %arg1: i32) -> (i32, i32, i32, i32) {
    %c1_i32 = arith.constant 1 : i32
    %0 = arith.addi %arg1, %c1_i32 : i32
    %c8_i32 = arith.constant 8 : i32
    %1 = arith.muli %0, %c8_i32 : i32
    %c15_i32 = arith.constant 15 : i32
    %2 = arith.minsi %1, %c15_i32 : i32
    %c0_i32 = arith.constant 0 : i32
    %c0_i32_0 = arith.constant 0 : i32
    %c0_i32_1 = arith.constant 0 : i32
    return %arg0, %2, %c0_i32, %c0_i32_0 : i32, i32, i32, i32
  }
  func.func @transform_5(%arg0: i32, %arg1: i32) -> (i32, i32, i32) {
    %c0_i32 = arith.constant 0 : i32
    %c0_i32_0 = arith.constant 0 : i32
    %c0_i32_1 = arith.constant 0 : i32
    %c0_i32_2 = arith.constant 0 : i32
    return %c0_i32, %c0_i32_0, %c0_i32_1 : i32, i32, i32
  }
  func.func @transform_6(%arg0: i32, %arg1: i32) -> (i32, i32, i32, i32) {
    %c0_i32 = arith.constant 0 : i32
    %c0_i32_0 = arith.constant 0 : i32
    %c0_i32_1 = arith.constant 0 : i32
    return %arg0, %arg1, %c0_i32, %c0_i32_0 : i32, i32, i32, i32
  }
  func.func @transform_7(%arg0: i32, %arg1: i32) -> (i32, i32, i32, i32) {
    %c0_i32 = arith.constant 0 : i32
    %c0_i32_0 = arith.constant 0 : i32
    %c0_i32_1 = arith.constant 0 : i32
    return %arg0, %arg1, %c0_i32, %c0_i32_0 : i32, i32, i32, i32
  }
}

module attributes {stable_mosaic.version = 11 : i64} {
  func.func @_conv_bn_stats_kernel(%arg0: i32, %arg1: i32, %arg2: memref<1x128xf32, #tpu.memory_space<vmem>>, %arg3: memref<1x128xf32, #tpu.memory_space<vmem>>, %arg4: memref<1x8x16x128xf32, #tpu.memory_space<vmem>>, %arg5: memref<1x1x16x128xf32, #tpu.memory_space<vmem>>, %arg6: memref<1x1x16x128xf32, #tpu.memory_space<vmem>>, %arg7: memref<3x384x128xf32, #tpu.memory_space<vmem>>, %arg8: memref<1x8x16x128xf32, #tpu.memory_space<vmem>>, %arg9: memref<1x1x2x128xf32, #tpu.memory_space<vmem>>, %arg10: memref<10x16x128xf32, #tpu.memory_space<vmem>>) attributes {dimension_semantics = [#tpu.dimension_semantics<parallel>, #tpu.dimension_semantics<parallel>], iteration_bounds = array<i64: 2, 2>, scalar_prefetch = 0 : i64, scratch_operands = 1 : i64, tpu.core_type = #tpu.core_type<tc>, window_params = [{pipeline_mode = #tpu.pipeline_mode<synchronous>, transform_indices = @transform_0, window_bounds = array<i64: 1, 128>}, {pipeline_mode = #tpu.pipeline_mode<synchronous>, transform_indices = @transform_1, window_bounds = array<i64: 1, 128>}, {transform_indices = @transform_2, window_bounds = array<i64: 1, 8, 16, 128>}, {transform_indices = @transform_3, window_bounds = array<i64: 1, 1, 16, 128>}, {transform_indices = @transform_4, window_bounds = array<i64: 1, 1, 16, 128>}, {pipeline_mode = #tpu.pipeline_mode<synchronous>, transform_indices = @transform_5, window_bounds = array<i64: 3, 384, 128>}, {transform_indices = @transform_6, window_bounds = array<i64: 1, 8, 16, 128>}, {transform_indices = @transform_7, window_bounds = array<i64: 1, 1, 2, 128>}]} {
    %c0 = arith.constant 0 : index
    %c0_0 = arith.constant 0 : index
    %0 = vector.load %arg2[%c0, %c0_0] : memref<1x128xf32, #tpu.memory_space<vmem>>, vector<1x128xf32>
    %1 = vector.shape_cast %0 : vector<1x128xf32> to vector<1x1x128xf32>
    %c0_1 = arith.constant 0 : index
    %c0_2 = arith.constant 0 : index
    %2 = vector.load %arg3[%c0_1, %c0_2] : memref<1x128xf32, #tpu.memory_space<vmem>>, vector<1x128xf32>
    %3 = vector.shape_cast %2 : vector<1x128xf32> to vector<1x1x128xf32>
    %c0_3 = arith.constant 0 : index
    %c0_4 = arith.constant 0 : index
    %c0_5 = arith.constant 0 : index
    %c0_6 = arith.constant 0 : index
    %4 = vector.load %arg4[%c0_3, %c0_4, %c0_5, %c0_6] : memref<1x8x16x128xf32, #tpu.memory_space<vmem>>, vector<1x8x16x128xf32>
    %5 = vector.shape_cast %4 : vector<1x8x16x128xf32> to vector<8x16x128xf32>
    %6 = vector.broadcast %1 : vector<1x1x128xf32> to vector<8x16x128xf32>
    %7 = arith.mulf %5, %6 : vector<8x16x128xf32>
    %8 = vector.broadcast %3 : vector<1x1x128xf32> to vector<8x16x128xf32>
    %9 = arith.addf %7, %8 : vector<8x16x128xf32>
    %cst = arith.constant 0.000000e+00 : f32
    %10 = vector.broadcast %cst : f32 to vector<8x16x128xf32>
    %11 = arith.maximumf %9, %10 : vector<8x16x128xf32>
    %c0_7 = arith.constant 0 : index
    %c0_8 = arith.constant 0 : index
    %c0_9 = arith.constant 0 : index
    %c0_10 = arith.constant 0 : index
    %12 = vector.load %arg5[%c0_7, %c0_8, %c0_9, %c0_10] : memref<1x1x16x128xf32, #tpu.memory_space<vmem>>, vector<1x1x16x128xf32>
    %13 = vector.shape_cast %12 : vector<1x1x16x128xf32> to vector<1x16x128xf32>
    %14 = vector.broadcast %1 : vector<1x1x128xf32> to vector<1x16x128xf32>
    %15 = arith.mulf %13, %14 : vector<1x16x128xf32>
    %16 = vector.broadcast %3 : vector<1x1x128xf32> to vector<1x16x128xf32>
    %17 = arith.addf %15, %16 : vector<1x16x128xf32>
    %cst_11 = arith.constant 0.000000e+00 : f32
    %18 = vector.broadcast %cst_11 : f32 to vector<1x16x128xf32>
    %19 = arith.maximumf %17, %18 : vector<1x16x128xf32>
    %c0_12 = arith.constant 0 : index
    %c0_13 = arith.constant 0 : index
    %c0_14 = arith.constant 0 : index
    %c0_15 = arith.constant 0 : index
    %20 = vector.load %arg6[%c0_12, %c0_13, %c0_14, %c0_15] : memref<1x1x16x128xf32, #tpu.memory_space<vmem>>, vector<1x1x16x128xf32>
    %21 = vector.shape_cast %20 : vector<1x1x16x128xf32> to vector<1x16x128xf32>
    %22 = vector.broadcast %1 : vector<1x1x128xf32> to vector<1x16x128xf32>
    %23 = arith.mulf %21, %22 : vector<1x16x128xf32>
    %24 = vector.broadcast %3 : vector<1x1x128xf32> to vector<1x16x128xf32>
    %25 = arith.addf %23, %24 : vector<1x16x128xf32>
    %cst_16 = arith.constant 0.000000e+00 : f32
    %26 = vector.broadcast %cst_16 : f32 to vector<1x16x128xf32>
    %27 = arith.maximumf %25, %26 : vector<1x16x128xf32>
    %cst_17 = arith.constant 0.000000e+00 : f32
    %28 = vector.broadcast %cst_17 : f32 to vector<1x16x128xf32>
    %c0_i32 = arith.constant 0 : i32
    %29 = arith.cmpi sgt, %arg1, %c0_i32 : i32
    %30 = arith.select %29, %19, %28 : vector<1x16x128xf32>
    %c1_i32 = arith.constant 1 : i32
    %31 = arith.cmpi slt, %arg1, %c1_i32 : i32
    %32 = arith.select %31, %27, %28 : vector<1x16x128xf32>
    %c0_18 = arith.constant 0 : index
    %c0_19 = arith.constant 0 : index
    %c0_20 = arith.constant 0 : index
    %33 = vector.load %arg10[%c0_18, %c0_19, %c0_20] : memref<10x16x128xf32, #tpu.memory_space<vmem>>, vector<1x16x128xf32>
    tpu.vector_store %arg10[%c0_18, %c0_19, %c0_20], %30 {strides = array<i32>} : memref<10x16x128xf32, #tpu.memory_space<vmem>>, vector<1x16x128xf32>,
    %c1 = arith.constant 1 : index
    %c0_21 = arith.constant 0 : index
    %c0_22 = arith.constant 0 : index
    %34 = vector.load %arg10[%c1, %c0_21, %c0_22] : memref<10x16x128xf32, #tpu.memory_space<vmem>>, vector<8x16x128xf32>
    tpu.vector_store %arg10[%c1, %c0_21, %c0_22], %11 {strides = array<i32>} : memref<10x16x128xf32, #tpu.memory_space<vmem>>, vector<8x16x128xf32>,
    %c9 = arith.constant 9 : index
    %c0_23 = arith.constant 0 : index
    %c0_24 = arith.constant 0 : index
    %35 = vector.load %arg10[%c9, %c0_23, %c0_24] : memref<10x16x128xf32, #tpu.memory_space<vmem>>, vector<1x16x128xf32>
    tpu.vector_store %arg10[%c9, %c0_23, %c0_24], %32 {strides = array<i32>} : memref<10x16x128xf32, #tpu.memory_space<vmem>>, vector<1x16x128xf32>,
    %c0_25 = arith.constant 0 : index
    %c0_26 = arith.constant 0 : index
    %c0_27 = arith.constant 0 : index
    %36 = vector.load %arg10[%c0_25, %c0_26, %c0_27] : memref<10x16x128xf32, #tpu.memory_space<vmem>>, vector<10x16x128xf32>
    %cst_28 = arith.constant 0.000000e+00 : f32
    %37 = vector.broadcast %cst_28 : f32 to vector<10x1x128xf32>
    %38 = vector.extract_strided_slice %36 {offsets = [0, 0, 0], sizes = [10, 15, 128], strides = [1, 1, 1]} : vector<10x16x128xf32> to vector<10x15x128xf32>
    %39 = tpu.concatenate %37, %38 in 1 : vector<10x1x128xf32>, vector<10x15x128xf32> -> vector<10x16x128xf32>
    %40 = vector.extract_strided_slice %36 {offsets = [0, 1, 0], sizes = [10, 15, 128], strides = [1, 1, 1]} : vector<10x16x128xf32> to vector<10x15x128xf32>
    %41 = tpu.concatenate %40, %37 in 1 : vector<10x15x128xf32>, vector<10x1x128xf32> -> vector<10x16x128xf32>
    %42 = vector.extract_strided_slice %39 {offsets = [0, 0, 0], sizes = [8, 16, 128], strides = [1, 1, 1]} : vector<10x16x128xf32> to vector<8x16x128xf32>
    %43 = vector.extract_strided_slice %39 {offsets = [1, 0, 0], sizes = [8, 16, 128], strides = [1, 1, 1]} : vector<10x16x128xf32> to vector<8x16x128xf32>
    %44 = vector.extract_strided_slice %39 {offsets = [2, 0, 0], sizes = [8, 16, 128], strides = [1, 1, 1]} : vector<10x16x128xf32> to vector<8x16x128xf32>
    %45 = tpu.concatenate %42, %43, %44 in 2 : vector<8x16x128xf32>, vector<8x16x128xf32>, vector<8x16x128xf32> -> vector<8x16x384xf32>
    %46 = vector.shape_cast %45 : vector<8x16x384xf32> to vector<128x384xf32>
    %c0_29 = arith.constant 0 : index
    %c0_30 = arith.constant 0 : index
    %c0_31 = arith.constant 0 : index
    %47 = vector.load %arg7[%c0_29, %c0_30, %c0_31] : memref<3x384x128xf32, #tpu.memory_space<vmem>>, vector<1x384x128xf32>
    %48 = vector.shape_cast %47 : vector<1x384x128xf32> to vector<384x128xf32>
    %cst_32 = arith.constant dense<0.000000e+00> : vector<128x128xf32>
    %49 = tpu.matmul %46, %48, %cst_32 {dimension_numbers = #tpu.dot_dimension_numbers<[1], [0], [0], [1], [0, 0, 1, 1], [], []>} : vector<128x384xf32>, vector<384x128xf32>, vector<128x128xf32> -> vector<128x128xf32>
    %50 = vector.extract_strided_slice %36 {offsets = [0, 0, 0], sizes = [8, 16, 128], strides = [1, 1, 1]} : vector<10x16x128xf32> to vector<8x16x128xf32>
    %51 = vector.extract_strided_slice %36 {offsets = [1, 0, 0], sizes = [8, 16, 128], strides = [1, 1, 1]} : vector<10x16x128xf32> to vector<8x16x128xf32>
    %52 = vector.extract_strided_slice %36 {offsets = [2, 0, 0], sizes = [8, 16, 128], strides = [1, 1, 1]} : vector<10x16x128xf32> to vector<8x16x128xf32>
    %53 = tpu.concatenate %50, %51, %52 in 2 : vector<8x16x128xf32>, vector<8x16x128xf32>, vector<8x16x128xf32> -> vector<8x16x384xf32>
    %54 = vector.shape_cast %53 : vector<8x16x384xf32> to vector<128x384xf32>
    %c1_33 = arith.constant 1 : index
    %c0_34 = arith.constant 0 : index
    %c0_35 = arith.constant 0 : index
    %55 = vector.load %arg7[%c1_33, %c0_34, %c0_35] : memref<3x384x128xf32, #tpu.memory_space<vmem>>, vector<1x384x128xf32>
    %56 = vector.shape_cast %55 : vector<1x384x128xf32> to vector<384x128xf32>
    %cst_36 = arith.constant dense<0.000000e+00> : vector<128x128xf32>
    %57 = tpu.matmul %54, %56, %cst_36 {dimension_numbers = #tpu.dot_dimension_numbers<[1], [0], [0], [1], [0, 0, 1, 1], [], []>} : vector<128x384xf32>, vector<384x128xf32>, vector<128x128xf32> -> vector<128x128xf32>
    %58 = arith.addf %49, %57 : vector<128x128xf32>
    %59 = vector.extract_strided_slice %41 {offsets = [0, 0, 0], sizes = [8, 16, 128], strides = [1, 1, 1]} : vector<10x16x128xf32> to vector<8x16x128xf32>
    %60 = vector.extract_strided_slice %41 {offsets = [1, 0, 0], sizes = [8, 16, 128], strides = [1, 1, 1]} : vector<10x16x128xf32> to vector<8x16x128xf32>
    %61 = vector.extract_strided_slice %41 {offsets = [2, 0, 0], sizes = [8, 16, 128], strides = [1, 1, 1]} : vector<10x16x128xf32> to vector<8x16x128xf32>
    %62 = tpu.concatenate %59, %60, %61 in 2 : vector<8x16x128xf32>, vector<8x16x128xf32>, vector<8x16x128xf32> -> vector<8x16x384xf32>
    %63 = vector.shape_cast %62 : vector<8x16x384xf32> to vector<128x384xf32>
    %c2 = arith.constant 2 : index
    %c0_37 = arith.constant 0 : index
    %c0_38 = arith.constant 0 : index
    %64 = vector.load %arg7[%c2, %c0_37, %c0_38] : memref<3x384x128xf32, #tpu.memory_space<vmem>>, vector<1x384x128xf32>
    %65 = vector.shape_cast %64 : vector<1x384x128xf32> to vector<384x128xf32>
    %cst_39 = arith.constant dense<0.000000e+00> : vector<128x128xf32>
    %66 = tpu.matmul %63, %65, %cst_39 {dimension_numbers = #tpu.dot_dimension_numbers<[1], [0], [0], [1], [0, 0, 1, 1], [], []>} : vector<128x384xf32>, vector<384x128xf32>, vector<128x128xf32> -> vector<128x128xf32>
    %67 = arith.addf %58, %66 : vector<128x128xf32>
    %cst_40 = arith.constant dense<0.000000e+00> : vector<128xf32>
    %68 = vector.multi_reduction <add>, %67, %cst_40 [0] : vector<128x128xf32> to vector<128xf32>
    %69 = vector.shape_cast %68 : vector<128xf32> to vector<1x128xf32>
    %cst_41 = arith.constant 7.812500e-03 : f32
    %70 = vector.broadcast %cst_41 : f32 to vector<1x128xf32>
    %71 = arith.mulf %69, %70 : vector<1x128xf32>
    %72 = vector.broadcast %71 : vector<1x128xf32> to vector<128x128xf32>
    %73 = arith.subf %67, %72 : vector<128x128xf32>
    %74 = arith.mulf %73, %73 : vector<128x128xf32>
    %cst_42 = arith.constant dense<0.000000e+00> : vector<128xf32>
    %75 = vector.multi_reduction <add>, %74, %cst_42 [0] : vector<128x128xf32> to vector<128xf32>
    %76 = vector.shape_cast %75 : vector<128xf32> to vector<1x128xf32>
    %77 = tpu.concatenate %69, %76 in 0 : vector<1x128xf32>, vector<1x128xf32> -> vector<2x128xf32>
    %78 = vector.shape_cast %77 : vector<2x128xf32> to vector<1x1x2x128xf32>
    %c0_43 = arith.constant 0 : index
    %c0_44 = arith.constant 0 : index
    %c0_45 = arith.constant 0 : index
    %c0_46 = arith.constant 0 : index
    %79 = vector.load %arg9[%c0_43, %c0_44, %c0_45, %c0_46] : memref<1x1x2x128xf32, #tpu.memory_space<vmem>>, vector<1x1x2x128xf32>
    tpu.vector_store %arg9[%c0_43, %c0_44, %c0_45, %c0_46], %78 {strides = array<i32>} : memref<1x1x2x128xf32, #tpu.memory_space<vmem>>, vector<1x1x2x128xf32>,
    %80 = vector.shape_cast %67 : vector<128x128xf32> to vector<1x8x16x128xf32>
    %c0_47 = arith.constant 0 : index
    %c0_48 = arith.constant 0 : index
    %c0_49 = arith.constant 0 : index
    %c0_50 = arith.constant 0 : index
    %81 = vector.load %arg8[%c0_47, %c0_48, %c0_49, %c0_50] : memref<1x8x16x128xf32, #tpu.memory_space<vmem>>, vector<1x8x16x128xf32>
    tpu.vector_store %arg8[%c0_47, %c0_48, %c0_49, %c0_50], %80 {strides = array<i32>} : memref<1x8x16x128xf32, #tpu.memory_space<vmem>>, vector<1x8x16x128xf32>,
    return
  }
  func.func @transform_0(%arg0: i32, %arg1: i32) -> (i32, i32) {
    %c0_i32 = arith.constant 0 : i32
    %c0_i32_0 = arith.constant 0 : i32
    %c0_i32_1 = arith.constant 0 : i32
    return %c0_i32, %c0_i32_0 : i32, i32
  }
  func.func @transform_1(%arg0: i32, %arg1: i32) -> (i32, i32) {
    %c0_i32 = arith.constant 0 : i32
    %c0_i32_0 = arith.constant 0 : i32
    %c0_i32_1 = arith.constant 0 : i32
    return %c0_i32, %c0_i32_0 : i32, i32
  }
  func.func @transform_2(%arg0: i32, %arg1: i32) -> (i32, i32, i32, i32) {
    %c0_i32 = arith.constant 0 : i32
    %c0_i32_0 = arith.constant 0 : i32
    %c0_i32_1 = arith.constant 0 : i32
    return %arg0, %arg1, %c0_i32, %c0_i32_0 : i32, i32, i32, i32
  }
  func.func @transform_3(%arg0: i32, %arg1: i32) -> (i32, i32, i32, i32) {
    %c8_i32 = arith.constant 8 : i32
    %0 = arith.muli %arg1, %c8_i32 : i32
    %c1_i32 = arith.constant 1 : i32
    %1 = arith.subi %0, %c1_i32 : i32
    %c0_i32 = arith.constant 0 : i32
    %2 = arith.maxsi %1, %c0_i32 : i32
    %c0_i32_0 = arith.constant 0 : i32
    %c0_i32_1 = arith.constant 0 : i32
    %c0_i32_2 = arith.constant 0 : i32
    return %arg0, %2, %c0_i32_0, %c0_i32_1 : i32, i32, i32, i32
  }
  func.func @transform_4(%arg0: i32, %arg1: i32) -> (i32, i32, i32, i32) {
    %c1_i32 = arith.constant 1 : i32
    %0 = arith.addi %arg1, %c1_i32 : i32
    %c8_i32 = arith.constant 8 : i32
    %1 = arith.muli %0, %c8_i32 : i32
    %c15_i32 = arith.constant 15 : i32
    %2 = arith.minsi %1, %c15_i32 : i32
    %c0_i32 = arith.constant 0 : i32
    %c0_i32_0 = arith.constant 0 : i32
    %c0_i32_1 = arith.constant 0 : i32
    return %arg0, %2, %c0_i32, %c0_i32_0 : i32, i32, i32, i32
  }
  func.func @transform_5(%arg0: i32, %arg1: i32) -> (i32, i32, i32) {
    %c0_i32 = arith.constant 0 : i32
    %c0_i32_0 = arith.constant 0 : i32
    %c0_i32_1 = arith.constant 0 : i32
    %c0_i32_2 = arith.constant 0 : i32
    return %c0_i32, %c0_i32_0, %c0_i32_1 : i32, i32, i32
  }
  func.func @transform_6(%arg0: i32, %arg1: i32) -> (i32, i32, i32, i32) {
    %c0_i32 = arith.constant 0 : i32
    %c0_i32_0 = arith.constant 0 : i32
    %c0_i32_1 = arith.constant 0 : i32
    return %arg0, %arg1, %c0_i32, %c0_i32_0 : i32, i32, i32, i32
  }
  func.func @transform_7(%arg0: i32, %arg1: i32) -> (i32, i32, i32, i32) {
    %c0_i32 = arith.constant 0 : i32
    %c0_i32_0 = arith.constant 0 : i32
    %c0_i32_1 = arith.constant 0 : i32
    return %arg0, %arg1, %c0_i32, %c0_i32_0 : i32, i32, i32, i32
  }
}

module attributes {stable_mosaic.version = 11 : i64} {
  func.func @_bn_relu_kernel(%arg0: i32, %arg1: i32, %arg2: memref<1x128xf32, #tpu.memory_space<vmem>>, %arg3: memref<1x128xf32, #tpu.memory_space<vmem>>, %arg4: memref<1x8x16x128xf32, #tpu.memory_space<vmem>>, %arg5: memref<1x8x16x8xf32, #tpu.memory_space<vmem>>) attributes {dimension_semantics = [#tpu.dimension_semantics<parallel>, #tpu.dimension_semantics<parallel>], iteration_bounds = array<i64: 2, 2>, scalar_prefetch = 0 : i64, scratch_operands = 0 : i64, tpu.core_type = #tpu.core_type<tc>, window_params = [{pipeline_mode = #tpu.pipeline_mode<synchronous>, transform_indices = @transform_0, window_bounds = array<i64: 1, 128>}, {pipeline_mode = #tpu.pipeline_mode<synchronous>, transform_indices = @transform_1, window_bounds = array<i64: 1, 128>}, {transform_indices = @transform_2, window_bounds = array<i64: 1, 8, 16, 128>}, {transform_indices = @transform_3, window_bounds = array<i64: 1, 8, 16, 8>}]} {
    %c0 = arith.constant 0 : index
    %c0_0 = arith.constant 0 : index
    %c0_1 = arith.constant 0 : index
    %c0_2 = arith.constant 0 : index
    %0 = vector.load %arg4[%c0, %c0_0, %c0_1, %c0_2] : memref<1x8x16x128xf32, #tpu.memory_space<vmem>>, vector<1x8x16x128xf32>
    %1 = vector.shape_cast %0 : vector<1x8x16x128xf32> to vector<8x16x128xf32>
    %c0_3 = arith.constant 0 : index
    %c0_4 = arith.constant 0 : index
    %2 = vector.load %arg2[%c0_3, %c0_4] : memref<1x128xf32, #tpu.memory_space<vmem>>, vector<1x128xf32>
    %3 = vector.shape_cast %2 : vector<1x128xf32> to vector<1x1x128xf32>
    %c0_5 = arith.constant 0 : index
    %c0_6 = arith.constant 0 : index
    %4 = vector.load %arg3[%c0_5, %c0_6] : memref<1x128xf32, #tpu.memory_space<vmem>>, vector<1x128xf32>
    %5 = vector.shape_cast %4 : vector<1x128xf32> to vector<1x1x128xf32>
    %6 = vector.broadcast %3 : vector<1x1x128xf32> to vector<8x16x128xf32>
    %7 = arith.mulf %1, %6 : vector<8x16x128xf32>
    %8 = vector.broadcast %5 : vector<1x1x128xf32> to vector<8x16x128xf32>
    %9 = arith.addf %7, %8 : vector<8x16x128xf32>
    %cst = arith.constant 0.000000e+00 : f32
    %10 = vector.broadcast %cst : f32 to vector<8x16x128xf32>
    %11 = arith.maximumf %9, %10 : vector<8x16x128xf32>
    %12 = vector.extract_strided_slice %11 {offsets = [0, 0, 0], sizes = [8, 16, 8], strides = [1, 1, 1]} : vector<8x16x128xf32> to vector<8x16x8xf32>
    %c0_7 = arith.constant 0 : index
    %c0_8 = arith.constant 0 : index
    %c0_9 = arith.constant 0 : index
    %c0_10 = arith.constant 0 : index
    %13 = vector.load %arg5[%c0_7, %c0_8, %c0_9, %c0_10] : memref<1x8x16x8xf32, #tpu.memory_space<vmem>>, vector<1x8x16x8xf32>
    %14 = vector.shape_cast %13 : vector<1x8x16x8xf32> to vector<8x16x8xf32>
    %15 = vector.shape_cast %12 : vector<8x16x8xf32> to vector<1x8x16x8xf32>
    tpu.vector_store %arg5[%c0_7, %c0_8, %c0_9, %c0_10], %15 {strides = array<i32>} : memref<1x8x16x8xf32, #tpu.memory_space<vmem>>, vector<1x8x16x8xf32>,
    return
  }
  func.func @transform_0(%arg0: i32, %arg1: i32) -> (i32, i32) {
    %c0_i32 = arith.constant 0 : i32
    %c0_i32_0 = arith.constant 0 : i32
    %c0_i32_1 = arith.constant 0 : i32
    return %c0_i32, %c0_i32_0 : i32, i32
  }
  func.func @transform_1(%arg0: i32, %arg1: i32) -> (i32, i32) {
    %c0_i32 = arith.constant 0 : i32
    %c0_i32_0 = arith.constant 0 : i32
    %c0_i32_1 = arith.constant 0 : i32
    return %c0_i32, %c0_i32_0 : i32, i32
  }
  func.func @transform_2(%arg0: i32, %arg1: i32) -> (i32, i32, i32, i32) {
    %c0_i32 = arith.constant 0 : i32
    %c0_i32_0 = arith.constant 0 : i32
    %c0_i32_1 = arith.constant 0 : i32
    return %arg0, %arg1, %c0_i32, %c0_i32_0 : i32, i32, i32, i32
  }
  func.func @transform_3(%arg0: i32, %arg1: i32) -> (i32, i32, i32, i32) {
    %c0_i32 = arith.constant 0 : i32
    %c0_i32_0 = arith.constant 0 : i32
    %c0_i32_1 = arith.constant 0 : i32
    return %arg0, %arg1, %c0_i32, %c0_i32_0 : i32, i32, i32, i32
  }
}

</mosaic_0001>

<bundles_post_ra>
// kernel: double_conv.5
= control target key start
LH: loop header
LB: loop body
LE: loop exit
PB: predicated region body
PF: predicated region fallthrough
CT: control target
= control target key end

     0   :  { %s520_s12 = smov 0   ;;  %s522_s13 = smov 0   ;;  %s647_s0 = inlined_call_operand.vmem [shape: f32[1,128], index: 0, kind: input, shape index: {}]   ;;  %s648_s1 = inlined_call_operand.vmem [shape: f32[1,128], index: 1, kind: input, shape index: {}]   ;;  %s649_s2 = inlined_call_operand.vmem [shape: f32[2,16,16,128], index: 2, kind: input, shape index: {}]   ;;  %s650_s3 = inlined_call_operand.vmem [shape: f32[2,16,16,8], index: 3, kind: output, shape index: {}]  }
   0x1   :  { %s524_s14 = smov 0   ;;  %s526_s15 = smov 0  }
   0x2   :  { %s528_s16 = smov 0  }
   0x3 LB: > { %s22_s17 = sadd.s32 1, %s490_s14  ;;  %s25_s18 = sadd.s32 1, %s494_s15  ;;  %s498_s16 = sphi %s528_s16, %s13_s16   ;;  %s494_s15 = sphi %s526_s15, %s654_s15   ;;  %s490_s14 = sphi %s524_s14, %s653_s14   ;;  %s486_s13 = sphi %s522_s13, %s652_s13   ;;  %s482_s12 = sphi %s520_s12, %s651_s12  }
   0x4   : > { %p23_p0 = scmp.ge.s32.totalorder %s22_s17, 2  ;;  %p407_p1 = scmp.ge.s32.totalorder %s498_s16, 1 }
   0x5   : > { %p159_p2 = scmp.lt.s32.totalorder %s498_s16, 5 }
   0x6   : > { %s656_s17 = smov (%p23_p0, %s22_s17), 0  ;;  %s658_s18 = smov (!%p23_p0, %s25_s18), %s494_s15 }
   0x7   : > { %p160_p3 = pnand %p407_p1, %p159_p2  ;;  %p27_p4 = scmp.ge.s32.totalorder %s658_s18, 2 }
   0x8   : > { %s408_s19 = sshll.u32 (!%p160_p3), %s482_s12, 3  ;;  %p194_p5 = scmp.lt.s32.totalorder (!%p160_p3), %s486_s13, 1 }
   0x9   : > { %s660_s18 = smov (%p27_p4, %s658_s18), 0  ;;  %163 = sbr.rel (%p160_p3) target bundleno = 42 (0x2a), region = 32 }
   0xa   : > { %p196_p6 = scmp.lt.s32.totalorder (!%p160_p3), %s408_s19, 15 }
   0xe   : > { %s662_s13 = smov (!%p194_p5, %s486_s13), 1  ;;  %s664_s19 = smov (!%p196_p6, %s408_s19), 15  ;;  %v458_v0 = vld [vmem:[%s647_s0] ss:$0 sm:$0xff]  ;;  %vm287_vm0 = vcmask 64512  }
   0xf   : > { %s410_s20 = sshll.u32 %s662_s13, 5  ;;  %s409_s21 = sshll.u32 %s664_s19, 1  ;;  %v561_v1 = vld [vmem:[%s648_s1] ss:$0 sm:$0xff] }
  0x10   : > { %s200_s22 = sadd.s32 %s410_s20, %s409_s21 }
  0x11   : > { %s411_s25 = sshll.u32 %s200_s22, 3 }
  0x12   : > { %s556_s28 = scalar_lea.vmem %s649_s2, %s411_s25  ;;  %s577_s6 = scalar_lea.vmem %s650_s3, %s411_s25 }
  0x13   : > { %v215_v2 = vld [vmem:[%s556_s28] sm:$0xff]  ;;  %v216_v3 = vld [vmem:[%s556_s28 + $0x8] sm:$0xff]  ;;  %v217_v4 = vld [vmem:[%s556_s28 + $0x10] sm:$0xff] }
  0x14   : > { %v236_v5 = vmul.f32 %v458_v0, %v215_v2  ;;  %v237_v6 = vmul.f32 %v458_v0, %v216_v3  ;;  %v238_v7 = vmul.f32 %v458_v0, %v217_v4  ;;  %v218_v8 = vld [vmem:[%s556_s28 + $0x18] sm:$0xff]  ;;  %v219_v9 = vld [vmem:[%s556_s28 + $0x20] sm:$0xff]  ;;  %v220_v10 = vld [vmem:[%s556_s28 + $0x28] sm:$0xff] }
  0x15   : > { %v239_v11 = vmul.f32 %v458_v0, %v218_v8  ;;  %v240_v12 = vmul.f32 %v458_v0, %v219_v9  ;;  %v241_v13 = vmul.f32 %v458_v0, %v220_v10  ;;  %v221_v14 = vld [vmem:[%s556_s28 + $0x30] sm:$0xff]  ;;  %v222_v15 = vld [vmem:[%s556_s28 + $0x38] sm:$0xff]  ;;  %v223_v24 = vld [vmem:[%s556_s28 + $0x40] sm:$0xff] }
  0x16   : > { %v255_v16 = vadd.f32 %v561_v1, %v236_v5  ;;  %v256_v17 = vadd.f32 %v561_v1, %v237_v6  ;;  %v257_v18 = vadd.f32 %v561_v1, %v238_v7  ;;  %v242_v19 = vmul.f32 %v458_v0, %v221_v14  ;;  %v224_v25 = vld [vmem:[%s556_s28 + $0x48] sm:$0xff]  ;;  %v225_v26 = vld [vmem:[%s556_s28 + $0x50] sm:$0xff]  ;;  %v226_v31 = vld [vmem:[%s556_s28 + $0x58] sm:$0xff] }
  0x17   : > { %v258_v20 = vadd.f32 %v561_v1, %v239_v11  ;;  %v259_v21 = vadd.f32 %v561_v1, %v240_v12  ;;  %v260_v22 = vadd.f32 %v561_v1, %v241_v13  ;;  %v243_v23 = vmul.f32 %v458_v0, %v222_v15  ;;  %v227_v32 = vld [vmem:[%s556_s28 + $0x60] sm:$0xff]  ;;  %v228_v33 = vld [vmem:[%s556_s28 + $0x68] sm:$0xff]  ;;  %v229_v37 = vld [vmem:[%s556_s28 + $0x70] sm:$0xff] }
  0x18   : > { %v271_v27 = vmax.f32 %v255_v16, 0.0  ;;  %v272_v28 = vmax.f32 %v256_v17, 0.0  ;;  %v273_v29 = vmax.f32 %v257_v18, 0.0  ;;  %v261_v30 = vadd.f32 %v561_v1, %v242_v19  ;;  %v230_v42 = vld [vmem:[%s556_s28 + $0x78] sm:$0xff] }
  0x19   : > { %v274_v34 = vmax.f32 %v258_v20, 0.0  ;;  %v275_v35 = vmax.f32 %v259_v21, 0.0  ;;  %v262_v36 = vadd.f32 %v561_v1, %v243_v23  ;;  %v276_v38 = vmax.f32 %v260_v22, 0.0 }
  0x1a   : > { %288 = vst.msk [vmem:[%s577_s6] sm:$0xff] %vm287_vm0, %v271_v27  ;;  %v244_v39 = vmul.f32 %v458_v0, %v223_v24  ;;  %v245_v40 = vmul.f32 %v458_v0, %v224_v25  ;;  %v246_v41 = vmul.f32 %v458_v0, %v225_v26  ;;  %v277_v43 = vmax.f32 %v261_v30, 0.0 }
  0x1b   : > { %289 = vst.msk [vmem:[%s577_s6 + $0x8] sm:$0xff] %vm287_vm0, %v272_v28  ;;  %v247_v44 = vmul.f32 %v458_v0, %v226_v31  ;;  %v248_v45 = vmul.f32 %v458_v0, %v227_v32  ;;  %v249_v46 = vmul.f32 %v458_v0, %v228_v33  ;;  %v250_v50 = vmul.f32 %v458_v0, %v229_v37 }
  0x1c   : > { %290 = vst.msk [vmem:[%s577_s6 + $0x10] sm:$0xff] %vm287_vm0, %v273_v29  ;;  %v263_v47 = vadd.f32 %v561_v1, %v244_v39  ;;  %v264_v48 = vadd.f32 %v561_v1, %v245_v40  ;;  %v265_v49 = vadd.f32 %v561_v1, %v246_v41  ;;  %v278_v51 = vmax.f32 %v262_v36, 0.0 }
  0x1d   : > { %291 = vst.msk [vmem:[%s577_s6 + $0x18] sm:$0xff] %vm287_vm0, %v274_v34  ;;  %v266_v52 = vadd.f32 %v561_v1, %v247_v44  ;;  %v251_v53 = vmul.f32 %v458_v0, %v230_v42  ;;  %v267_v55 = vadd.f32 %v561_v1, %v248_v45  ;;  %v268_v57 = vadd.f32 %v561_v1, %v249_v46 }
  0x1e   : > { %292 = vst.msk [vmem:[%s577_s6 + $0x20] sm:$0xff] %vm287_vm0, %v275_v35  ;;  %v279_v54 = vmax.f32 %v263_v47, 0.0  ;;  %v280_v56 = vmax.f32 %v264_v48, 0.0  ;;  %v281_v58 = vmax.f32 %v265_v49, 0.0  ;;  %v269_v59 = vadd.f32 %v561_v1, %v250_v50 }
  0x1f   : > { %293 = vst.msk [vmem:[%s577_s6 + $0x28] sm:$0xff] %vm287_vm0, %v276_v38  ;;  %v282_v60 = vmax.f32 %v266_v52, 0.0  ;;  %v270_v61 = vadd.f32 %v561_v1, %v251_v53  ;;  %v283_v62 = vmax.f32 %v267_v55, 0.0  ;;  %v284_v63 = vmax.f32 %v268_v57, 0.0 }
  0x20   : > { %294 = vst.msk [vmem:[%s577_s6 + $0x30] sm:$0xff] %vm287_vm0, %v277_v43  ;;  %v285_v0 = vmax.f32 %v269_v59, 0.0 }
  0x21   : > { %295 = vst.msk [vmem:[%s577_s6 + $0x38] sm:$0xff] %vm287_vm0, %v278_v51  ;;  %v286_v2 = vmax.f32 %v270_v61, 0.0 }
  0x22   : > { %296 = vst.msk [vmem:[%s577_s6 + $0x40] sm:$0xff] %vm287_vm0, %v279_v54 }
  0x23   : > { %297 = vst.msk [vmem:[%s577_s6 + $0x48] sm:$0xff] %vm287_vm0, %v280_v56 }
  0x24   : > { %298 = vst.msk [vmem:[%s577_s6 + $0x50] sm:$0xff] %vm287_vm0, %v281_v58 }
  0x25   : > { %299 = vst.msk [vmem:[%s577_s6 + $0x58] sm:$0xff] %vm287_vm0, %v282_v60 }
  0x26   : > { %300 = vst.msk [vmem:[%s577_s6 + $0x60] sm:$0xff] %vm287_vm0, %v283_v62 }
  0x27   : > { %301 = vst.msk [vmem:[%s577_s6 + $0x68] sm:$0xff] %vm287_vm0, %v284_v63 }
  0x28   : > { %302 = vst.msk [vmem:[%s577_s6 + $0x70] sm:$0xff] %vm287_vm0, %v285_v0 }
  0x29   : > { %303 = vst.msk [vmem:[%s577_s6 + $0x78] sm:$0xff] %vm287_vm0, %v286_v2 }
  0x2a PF: > { %s13_s16 = sadd.s32 1, %s498_s16   ;;  %s651_s12 = smov %s490_s14 }
  0x2b   : > { %p10_p7 = scmp.ge.s32.totalorder %s13_s16, 6   ;;  %s652_s13 = smov %s494_s15 }
  0x2c   : > { %s653_s14 = smov %s656_s17  ;;  %s654_s15 = smov %s660_s18 }
  0x2d   :  { %12 = sbr.rel (!%p10_p7) target bundleno = 3 (0x3), region = 62 }

// kernel: double_conv.4
= control target key start
LH: loop header
LB: loop body
LE: loop exit
PB: predicated region body
PF: predicated region fallthrough
CT: control target
= control target key end

     0   :  { %s2170_s24 = smov 0   ;;  %s2172_s25 = smov 0   ;;  %s3346_s0 = inlined_call_operand.vmem [shape: f32[1,128], index: 0, kind: input, shape index: {}]   ;;  %s3347_s1 = inlined_call_operand.vmem [shape: f32[1,128], index: 1, kind: input, shape index: {}]   ;;  %s3348_s2 = inlined_call_operand.vmem [shape: f32[2,16,16,128], index: 2, kind: input, shape index: {}, may-alias: {2,3,4}]   ;;  %s3349_s3 = inlined_call_operand.vmem [shape: f32[2,16,16,128], index: 3, kind: input, shape index: {}, may-alias: {2,3,4}]   ;;  %s3350_s4 = inlined_call_operand.vmem [shape: f32[2,16,16,128], index: 4, kind: input, shape index: {}, may-alias: {2,3,4}]   ;;  %s3351_s5 = inlined_call_operand.vmem [shape: f32[3,384,128], index: 5, kind: input, shape index: {}]   ;;  %s3352_s6 = inlined_call_operand.vmem [shape: f32[2,16,16,128], index: 6, kind: output, shape index: {0}]   ;;  %s3353_s7 = inlined_call_operand.vmem [shape: f32[2,2,2,128], index: 7, kind: output, shape index: {1}]  }
   0x1   :  { %s2174_s26 = smov 0   ;;  %s2176_s27 = smov 0  }
   0x2   :  { %s2178_s28 = smov 0  }
   0x3 LB: > { %s27_s29 = sadd.s32 1, %s2120_s26  ;;  %s30_s30 = sadd.s32 1, %s2124_s27  ;;  %s2128_s28 = sphi %s2178_s28, %s18_s28   ;;  %s2124_s27 = sphi %s2176_s27, %s3364_s27   ;;  %s2120_s26 = sphi %s2174_s26, %s3363_s26   ;;  %s2116_s25 = sphi %s2172_s25, %s3362_s25   ;;  %s2112_s24 = sphi %s2170_s24, %s3361_s24  }
   0x4   : > { %p28_p0 = scmp.ge.s32.totalorder %s27_s29, 2  ;;  %p1790_p1 = scmp.ge.s32.totalorder %s2128_s28, 1 }
   0x5   : > { %p328_p2 = scmp.lt.s32.totalorder %s2128_s28, 5 }
   0x6   : > { %s3366_s29 = smov (%p28_p0, %s27_s29), 0  ;;  %s3368_s30 = smov (!%p28_p0, %s30_s30), %s2124_s27 }
   0x7   : > { %p329_p3 = pnand %p1790_p1, %p328_p2  ;;  %p32_p4 = scmp.ge.s32.totalorder %s3368_s30, 2 }
   0x8   : > { %s2209_s12 = sshll.u32 (!%p329_p3), %s2112_s24, 3  ;;  %p405_p5 = scmp.lt.s32.totalorder (!%p329_p3), %s2116_s25, 1 }
   0x9   : > { %s3370_s30 = smov (%p32_p4, %s3368_s30), 0  ;;  %332 = sbr.rel (%p329_p3) target bundleno = 536 (0x218), region = 44 }
   0xa   : > { %p407_p6 = scmp.lt.s32.totalorder (!%p329_p3), %s2209_s12, 15  ;;  %s2213_s13 = sadd.s32 (!%p329_p3), 4294967295, %s2209_s12 }
   0xb   : > { %p417_p7 = scmp.gt.s32.totalorder (!%p329_p3), %s2213_s13, 0  ;;  %p1797_p8 = scmp.lt.s32.totalorder (!%p329_p3), %s2213_s13, 15 }
   0xc   : > { %p556_p9 = scmp.gt.s32.totalorder (!%p329_p3), %s2112_s24, 0  ;;  %p462_p11 = scmp.lt.s32.totalorder (!%p329_p3), %s2112_s24, 1 }
   0xe   : > { %v1833_v0 = vld [vmem:[%s3351_s5 + $0x1f8] sm:$0xff]  ;;  %v1832_v1 = vld [vmem:[%s3351_s5 + $0x1f0] sm:$0xff]  ;;  %v1831_v2 = vld [vmem:[%s3351_s5 + $0x1e8] sm:$0xff]  ;;  %s3372_s25 = smov (!%p405_p5, %s2116_s25), 1  ;;  %s3374_s13 = smov (!%p417_p7, %s2213_s13), 0  ;;  %vm630_vm1 = vcmask 1040384  }
   0xf   : > { %2000 = vmatpush.msra.mxu1 %v1833_v0  ;;  %2001 = vmatpush.msra.mxu2 %v1833_v0  ;;  %s408_s16 = scalar_select %p407_p6, %s2209_s12, 15  ;;  %v1830_v3 = vld [vmem:[%s3351_s5 + $0x1e0] sm:$0xff]  ;;  %v1829_v4 = vld [vmem:[%s3351_s5 + $0x1d8] sm:$0xff]  ;;  %v1828_v5 = vld [vmem:[%s3351_s5 + $0x1d0] sm:$0xff]  ;;  %vm691_vm4 = vcmask 1046528  }
  0x10   : > { %2002 = vmatpush.msra.mxu3 %v1833_v0  ;;  %849 = vmatpush.msra.mxu0 %v1833_v0  ;;  %s2225_s19 = sshll.u32 %s3372_s25, 5  ;;  %v1827_v6 = vld [vmem:[%s3351_s5 + $0x1c8] sm:$0xff]  ;;  %s3376_s13 = smov (!%p1797_p8, %s3374_s13), 15  ;;  %v1826_v7 = vld [vmem:[%s3351_s5 + $0x1c0] sm:$0xff]  ;;  %v1825_v8 = vld [vmem:[%s3351_s5 + $0x1b8] sm:$0xff] }
  0x11   : > { %2003 = vmatpush.msra.mxu1 %v1832_v1  ;;  %2004 = vmatpush.msra.mxu2 %v1832_v1  ;;  %s1792_s20 = sshll.u32 %s408_s16, 1  ;;  %s1802_s17 = sshll.u32 %s3376_s13, 1  ;;  %v1824_v9 = vld [vmem:[%s3351_s5 + $0x1b0] sm:$0xff]  ;;  %v2263_v10 = vld [vmem:[%s3346_s0] ss:$0 sm:$0xff]  ;;  %v1823_v12 = vld [vmem:[%s3351_s5 + $0x1a8] sm:$0xff] }
  0x12   : > { %2005 = vmatpush.msra.mxu3 %v1832_v1  ;;  %850 = vmatpush.msra.mxu0 %v1832_v1  ;;  %s2232_s23 = sadd.s32 %s2225_s19, %s1792_s20  ;;  %s425_s9 = sadd.s32 %s1802_s17, %s2225_s19  ;;  %v1822_v15 = vld [vmem:[%s3351_s5 + $0x1a0] sm:$0xff]  ;;  %v1821_v20 = vld [vmem:[%s3351_s5 + $0x198] sm:$0xff]  ;;  %v1820_v22 = vld [vmem:[%s3351_s5 + $0x190] sm:$0xff] }
  0x13   : > { %2006 = vmatpush.msra.mxu1 %v1831_v2  ;;  %2007 = vmatpush.msra.mxu2 %v1831_v2  ;;  %s1794_s14 = sshll.u32 %s2232_s23, 3  ;;  %s1804_s16 = sshll.u32 %s425_s9, 3  ;;  %v2283_v17 = vld [vmem:[%s3347_s1] ss:$0 sm:$0xff]  ;;  %v1819_v27 = vld [vmem:[%s3351_s5 + $0x188] sm:$0xff]  ;;  %v1865_v39 = vld [vmem:[%s3351_s5 + $0x2f8] sm:$0xff] }
  0x14   : > { %2008 = vmatpush.msra.mxu3 %v1831_v2  ;;  %851 = vmatpush.msra.mxu0 %v1831_v2  ;;  %s2254_s8 = scalar_lea.vmem %s3348_s2, %s1794_s14  ;;  %s2274_s22 = scalar_lea.vmem %s3349_s3, %s1804_s16  ;;  %v1818_v31 = vld [vmem:[%s3351_s5 + $0x180] sm:$0xff]  ;;  %v767_v40 = vld [vmem:[%s3351_s5 + $0x78] sm:$0xff]  ;;  %v1864_v43 = vld [vmem:[%s3351_s5 + $0x2f0] sm:$0xff] }
  0x15   : > { %2009 = vmatpush.msra.mxu1 %v1830_v3  ;;  %2010 = vmatpush.msra.mxu2 %v1830_v3  ;;  %v472_v11 = vld [vmem:[%s2254_s8 + $0x10] sm:$0xff]  ;;  %v540_v21 = vld [vmem:[%s2274_s22] sm:$0xff]  ;;  %v477_v28 = vld [vmem:[%s2254_s8 + $0x38] sm:$0xff]  ;;  %s2305_s9 = scalar_select %p556_p9, 1, 0 }
  0x16   : > { %2011 = vmatpush.msra.mxu3 %v1830_v3  ;;  %852 = vmatpush.msra.mxu0 %v1830_v3  ;;  %v476_v13 = vld [vmem:[%s2254_s8 + $0x30] sm:$0xff]  ;;  %v491_v16 = vmul.f32 %v2263_v10, %v472_v11  ;;  %v542_v26 = vmul.f32 %v2263_v10, %v540_v21  ;;  %v473_v29 = vld [vmem:[%s2254_s8 + $0x18] sm:$0xff]  ;;  %v496_v36 = vmul.f32 %v2263_v10, %v477_v28  ;;  %v1863_v48 = vld [vmem:[%s3351_s5 + $0x2e8] sm:$0xff]  ;;  %s1995_s20 = sadd.s32 8, %s2209_s12  ;;  %s1816_s10 = sshll.u32 %s3372_s25, 1 }
  0x17   : > { %2012 = vmatpush.msra.mxu1 %v1829_v4  ;;  %2013 = vmatpush.msra.mxu2 %v1829_v4  ;;  %v480_v14 = vld [vmem:[%s2254_s8 + $0x50] sm:$0xff]  ;;  %v495_v18 = vmul.f32 %v2263_v10, %v476_v13  ;;  %v481_v30 = vld [vmem:[%s2254_s8 + $0x58] sm:$0xff]  ;;  %v492_v37 = vmul.f32 %v2263_v10, %v473_v29  ;;  %v558_v41 = vstv %s2305_s9  ;;  %v765_v52 = vld [vmem:[%s3351_s5 + $0x68] sm:$0xff]  ;;  %p2393_p10 = scmp.lt.s32.totalorder %s1995_s20, 15 }
  0x18   : > { %2014 = vmatpush.msra.mxu3 %v1829_v4  ;;  %853 = vmatpush.msra.mxu0 %v1829_v4  ;;  %v499_v19 = vmul.f32 %v2263_v10, %v480_v14  ;;  %v510_v23 = vadd.f32 %v2283_v17, %v491_v16  ;;  %v2319_v35 = vadd.f32 %v2283_v17, %v542_v26  ;;  %v1849_v42 = vld [vmem:[%s3351_s5 + $0x278] sm:$0xff]  ;;  %v766_v44 = vld [vmem:[%s3351_s5 + $0x70] sm:$0xff]  ;;  %vm2351_vm0 = vcmp.eq.s32.totalorder %v558_v41, 1  ;;  %v1847_v53 = vld [vmem:[%s3351_s5 + $0x268] sm:$0xff]  ;;  %s463_s16 = scalar_select %p462_p11, %s2112_s24, 1 }
  0x19   : > { %2015 = vmatpush.msra.mxu1 %v1828_v5  ;;  %2016 = vmatpush.msra.mxu2 %v1828_v5  ;;  %v514_v24 = vadd.f32 %v2283_v17, %v495_v18  ;;  %v500_v38 = vmul.f32 %v2263_v10, %v481_v30  ;;  %v515_v46 = vadd.f32 %v2283_v17, %v496_v36  ;;  %v1848_v47 = vld [vmem:[%s3351_s5 + $0x270] sm:$0xff]  ;;  %v541_v54 = vld [vmem:[%s2274_s22 + $0x8] sm:$0xff]  ;;  %v783_v55 = vld [vmem:[%s3351_s5 + $0xf8] sm:$0xff]  ;;  %s3378_s20 = smov (!%p2393_p10, %s1995_s20), 15 }
  0x1a   : > { %2017 = vmatpush.msra.mxu3 %v1828_v5  ;;  %854 = vmatpush.msra.mxu0 %v1828_v5  ;;  %v518_v25 = vadd.f32 %v2283_v17, %v499_v19  ;;  %v2312_v32 = vmax.f32 %v510_v23, 0.0  ;;  %v546_v45 = vmax.f32 %v2319_v35, 0.0  ;;  %v511_v50 = vadd.f32 %v2283_v17, %v492_v37  ;;  %v474_v56 = vld [vmem:[%s2254_s8 + $0x20] sm:$0xff]  ;;  %v1861_v4 = vld [vmem:[%s3351_s5 + $0x2d8] sm:$0xff]  ;;  %v762_v11 = vld [vmem:[%s3351_s5 + $0x50] sm:$0xff]  ;;  %s3380_s20 = smov (!%p2393_p10, %s3378_s20), 15  ;;  %s2546_s9 = sadd.s32 %s1816_s10, %s463_s16 }
  0x1b   : > { %2018 = vmatpush.msra.mxu1 %v1827_v6  ;;  %2019 = vmatpush.msra.mxu2 %v1827_v6  ;;  %v2314_v33 = vmax.f32 %v514_v24, 0.0  ;;  %v519_v51 = vadd.f32 %v2283_v17, %v500_v38  ;;  %v478_v57 = vld [vmem:[%s2254_s8 + $0x40] sm:$0xff]  ;;  %v2379_v60 = vmax.f32 %v515_v46, 0.0  ;;  %v543_v1 = vmul.f32 %v2263_v10, %v541_v54  ;;  %v763_v5 = vld [vmem:[%s3351_s5 + $0x58] sm:$0xff]  ;;  %v1844_v13 = vld [vmem:[%s3351_s5 + $0x250] sm:$0xff]  ;;  %s2451_s15 = sshll.u32 %s3380_s20, 1  ;;  %s3231_s16 = scalar_lea.vmem %s3352_s6, %s1794_s14 }
  0x1c   : > { %2020 = vmatpush.msra.mxu3 %v1827_v6  ;;  %855 = vmatpush.msra.mxu0 %v1827_v6  ;;  %v2316_v34 = vmax.f32 %v518_v25, 0.0  ;;  %v1862_v58 = vld [vmem:[%s3351_s5 + $0x2e0] sm:$0xff]  ;;  %v2385_v63 = vmax.f32 %v511_v50, 0.0  ;;  %v493_v2 = vmul.f32 %v2263_v10, %v474_v56  ;;  %v497_v3 = vmul.f32 %v2263_v10, %v478_v57  ;;  %v781_v14 = vld [vmem:[%s3351_s5 + $0xe8] sm:$0xff]  ;;  %s442_s22 = sadd.s32 %s2451_s15, %s2225_s19  ;;  %v1841_v46 = vld [vmem:[%s3351_s5 + $0x238] sm:$0xff]  ;;  %s1817_s23 = sshll.u32 %s2546_s9, 1 }
  0x1d   : > { %2021 = vmatpush.msra.mxu1 %v1826_v7  ;;  %2022 = vmatpush.msra.mxu2 %v1826_v7  ;;  %v764_v59 = vld [vmem:[%s3351_s5 + $0x60] sm:$0xff]  ;;  %v2387_v0 = vmax.f32 %v519_v51, 0.0  ;;  %v1859_v18 = vld [vmem:[%s3351_s5 + $0x2c8] sm:$0xff]  ;;  %v778_v50 = vld [vmem:[%s3351_s5 + $0xd0] sm:$0xff]  ;;  %s1811_s25 = sshll.u32 %s442_s22, 3  ;;  %s467_s13 = scalar_lea.vmem %s3353_s7, %s1817_s23 }
  0x1e   : > { %2023 = vmatpush.msra.mxu3 %v1826_v7  ;;  %856 = vmatpush.msra.mxu0 %v1826_v7  ;;  %v482_v61 = vld [vmem:[%s2254_s8 + $0x60] sm:$0xff]  ;;  %v1845_v7 = vld [vmem:[%s3351_s5 + $0x258] sm:$0xff]  ;;  %v516_v16 = vadd.f32 %v2283_v17, %v497_v3  ;;  %v761_v19 = vld [vmem:[%s3351_s5 + $0x48] sm:$0xff]  ;;  %s2872_s17 = scalar_lea.vmem %s3350_s4, %s1811_s25 }
  0x1f   : > { %2024 = vmatpush.msra.mxu1 %v1825_v8  ;;  %2025 = vmatpush.msra.mxu2 %v1825_v8  ;;  %v1846_v62 = vld [vmem:[%s3351_s5 + $0x260] sm:$0xff]  ;;  %v501_v6 = vmul.f32 %v2263_v10, %v482_v61  ;;  %v479_v28 = vld [vmem:[%s2254_s8 + $0x48] sm:$0xff]  ;;  %vm2614_vm2 = vmneg %vm630_vm1  ;;  %s563_s11 = scalar_select %p462_p11, 1, 0 }
  0x20   : > { %2026 = vmatpush.msra.mxu3 %v1825_v8  ;;  %857 = vmatpush.msra.mxu0 %v1825_v8  ;;  %v782_v8 = vld [vmem:[%s3351_s5 + $0xf0] sm:$0xff]  ;;  %v780_v23 = vld [vmem:[%s3351_s5 + $0xe0] sm:$0xff]  ;;  %v483_v36 = vld [vmem:[%s2254_s8 + $0x68] sm:$0xff]  ;;  %v498_v41 = vmul.f32 %v2263_v10, %v479_v28 }
  0x21   : > { %2027 = vmatpush.msra.mxu1 %v1824_v9  ;;  %2028 = vmatpush.msra.mxu2 %v1824_v9  ;;  %v520_v21 = vadd.f32 %v2283_v17, %v501_v6  ;;  %v470_v24 = vld [vmem:[%s2254_s8] sm:$0xff]  ;;  %v757_v56 = vld [vmem:[%s3351_s5 + $0x28] sm:$0xff]  ;;  %v1928_v49 = vld [vmem:[%s3351_s5 + $0x370] sm:$0xff] }
  0x22   : > { %2029 = vmatpush.msra.mxu3 %v1824_v9  ;;  %858 = vmatpush.msra.mxu0 %v1824_v9  ;;  %v1860_v9 = vld [vmem:[%s3351_s5 + $0x2d0] sm:$0xff]  ;;  %v760_v25 = vld [vmem:[%s3351_s5 + $0x40] sm:$0xff]  ;;  %v489_v38 = vmul.f32 %v2263_v10, %v470_v24  ;;  %v777_v57 = vld [vmem:[%s3351_s5 + $0xc8] sm:$0xff]  ;;  %v2593_v24 = vsel %vm2351_vm0, %v546_v45, 0.0 }
  0x23   : > { %2030 = vmatpush.msra.mxu1 %v1823_v12  ;;  %2031 = vmatpush.msra.mxu2 %v1823_v12  ;;  %v1842_v29 = vld [vmem:[%s3351_s5 + $0x240] sm:$0xff]  ;;  %v2469_v37 = vmax.f32 %v520_v21, 0.0  ;;  %v1851_v21 = vld [vmem:[%s3351_s5 + $0x288] sm:$0xff] }
  0x24   : > { %2032 = vmatpush.msra.mxu3 %v1823_v12  ;;  %859 = vmatpush.msra.mxu0 %v1823_v12  ;;  %v2422_v12 = vadd.f32 %v2283_v17, %v543_v1  ;;  %v508_v51 = vadd.f32 %v2283_v17, %v489_v38  ;;  %v1854_v61 = vld [vmem:[%s3351_s5 + $0x2a0] sm:$0xff] }
  0x25   : > { %2033 = vmatpush.msra.mxu1 %v1822_v15  ;;  %2034 = vmatpush.msra.mxu2 %v1822_v15  ;;  %v756_v1 = vld [vmem:[%s3351_s5 + $0x20] sm:$0xff] }
  0x26   : > { %2035 = vmatpush.msra.mxu3 %v1822_v15  ;;  %860 = vmatpush.msra.mxu0 %v1822_v15  ;;  %v512_v15 = vadd.f32 %v2283_v17, %v493_v2  ;;  %v547_v26 = vmax.f32 %v2422_v12, 0.0  ;;  %v776_v2 = vld [vmem:[%s3351_s5 + $0xc0] sm:$0xff]  ;;  %v2536_v3 = vmax.f32 %v508_v51, 0.0  ;;  %v1944_v12 = vld [vmem:[%s3351_s5 + $0x3f0] sm:$0xff] }
  0x27   : > { %2036 = vmatpush.msra.mxu1 %v1821_v20  ;;  %2037 = vmatpush.msra.mxu2 %v1821_v20  ;;  %v752_v35 = vld [vmem:[%s3351_s5] sm:$0xff] }
  0x28   : > { %2038 = vmatpush.msra.mxu3 %v1821_v20  ;;  %861 = vmatpush.msra.mxu0 %v1821_v20  ;;  %v1843_v20 = vld [vmem:[%s3351_s5 + $0x248] sm:$0xff]  ;;  %v2464_v30 = vmax.f32 %v512_v15, 0.0  ;;  %v1852_v15 = vld [vmem:[%s3351_s5 + $0x290] sm:$0xff]  ;;  %v768_v51 = vld [vmem:[%s3351_s5 + $0x80] sm:$0xff] }
  0x29   : > { %2039 = vmatpush.msra.mxu1 %v1820_v22  ;;  %2040 = vmatpush.msra.mxu2 %v1820_v22 }
  0x2a   : > { %2041 = vmatpush.msra.mxu3 %v1820_v22  ;;  %862 = vmatpush.msra.mxu0 %v1820_v22  ;;  %v1858_v22 = vld [vmem:[%s3351_s5 + $0x2c0] sm:$0xff] }
  0x2b   : > { %2042 = vmatpush.msra.mxu1 %v1819_v27  ;;  %2043 = vmatpush.msra.mxu2 %v1819_v27 }
  0x2c   : > { %2044 = vmatpush.msra.mxu3 %v1819_v27  ;;  %863 = vmatpush.msra.mxu0 %v1819_v27  ;;  %v475_v27 = vld [vmem:[%s2254_s8 + $0x28] sm:$0xff] }
  0x2d   : > { %2045 = vmatpush.msra.mxu1 %v1818_v31  ;;  %2046 = vmatpush.msra.mxu2 %v1818_v31 }
  0x2e   : > { %2047 = vmatpush.msra.mxu3 %v1818_v31  ;;  %877 = vmatmul.f32.vlgmr.msra.gmra.mxu1 %v2312_v32 }
  0x2f   : > { %889 = vmatmul.f32.vlgmr.msra.gmra.mxu2 %v2314_v33  ;;  %901 = vmatmul.f32.vlgmr.msra.gmra.mxu3 %v2316_v34 }
  0x30   : > { %979 = vmatpush.msrb.mxu2 %v1865_v39  ;;  %1044 = vmatpush.msrb.mxu3 %v767_v40  ;;  %v1857_v39 = vld [vmem:[%s3351_s5 + $0x2b8] sm:$0xff]  ;;  %v494_v40 = vmul.f32 %v2263_v10, %v475_v27  ;;  %v1850_v27 = vld [vmem:[%s3351_s5 + $0x280] sm:$0xff] }
  0x31   : > { %914 = vmatpush.msrb.mxu1 %v1849_v42  ;;  %864 = vmatpush.msra.mxu0 %v1818_v31  ;;  %v2466_v31 = vmax.f32 %v516_v16, 0.0  ;;  %v759_v42 = vld [vmem:[%s3351_s5 + $0x38] sm:$0xff]  ;;  %v754_v16 = vld [vmem:[%s3351_s5 + $0x10] sm:$0xff] }
  0x32   : > { %980 = vmatpush.msrb.mxu2 %v1864_v43  ;;  %1045 = vmatpush.msrb.mxu3 %v766_v44  ;;  %v779_v43 = vld [vmem:[%s3351_s5 + $0xd8] sm:$0xff]  ;;  %v502_v44 = vmul.f32 %v2263_v10, %v483_v36  ;;  %v513_v54 = vadd.f32 %v2283_v17, %v494_v40  ;;  %v631_v36 = vrot.slane %v2593_v24, 7 }
  0x33   : > { %915 = vmatpush.msrb.mxu1 %v1848_v47  ;;  %1996 = vmatmul.msk.f32.vlgmr.msra.gmra.mxu0 %vm2351_vm0, %v546_v45  ;;  %v1856_v47 = vld [vmem:[%s3351_s5 + $0x2b0] sm:$0xff]  ;;  %v772_v45 = vld [vmem:[%s3351_s5 + $0xa0] sm:$0xff]  ;;  %v1929_v40 = vld [vmem:[%s3351_s5 + $0x378] sm:$0xff] }
  0x34   : > { %981 = vmatpush.msrb.mxu2 %v1863_v48  ;;  %1046 = vmatpush.msrb.mxu3 %v765_v52  ;;  %v758_v48 = vld [vmem:[%s3351_s5 + $0x30] sm:$0xff] }
  0x35   : > { %916 = vmatpush.msrb.mxu1 %v1847_v53  ;;  %1109 = vmatpush.msrb.mxu0 %v783_v55  ;;  %v1840_v52 = vld [vmem:[%s3351_s5 + $0x230] sm:$0xff]  ;;  %v1855_v53 = vld [vmem:[%s3351_s5 + $0x2a8] sm:$0xff]  ;;  %v517_v55 = vadd.f32 %v2283_v17, %v498_v41  ;;  %v1945_v41 = vld [vmem:[%s3351_s5 + $0x3f8] sm:$0xff] }
  0x36   : > { %982 = vmatpush.msrb.mxu2 %v1862_v58  ;;  %1047 = vmatpush.msrb.mxu3 %v764_v59  ;;  %v521_v58 = vadd.f32 %v2283_v17, %v502_v44  ;;  %v1839_v59 = vld [vmem:[%s3351_s5 + $0x228] sm:$0xff]  ;;  %v799_v44 = vld [vmem:[%s3351_s5 + $0x178] sm:$0xff] }
  0x37   : > { %917 = vmatpush.msrb.mxu1 %v1846_v62  ;;  %892 = vmatmul.f32.gmra.mxu2 %v2379_v60  ;;  %v471_v62 = vld [vmem:[%s2254_s8 + $0x8] sm:$0xff]  ;;  %v2544_v6 = vmax.f32 %v517_v55, 0.0  ;;  %v1961_v55 = vld [vmem:[%s3351_s5 + $0x478] sm:$0xff] }
  0x38   : > { %880 = vmatmul.f32.gmra.mxu1 %v2385_v63  ;;  %904 = vmatmul.f32.gmra.mxu3 %v2387_v0 }
  0x39   : > { %983 = vmatpush.msrb.mxu2 %v1861_v4  ;;  %1048 = vmatpush.msrb.mxu3 %v763_v5  ;;  %v1838_v4 = vld [vmem:[%s3351_s5 + $0x220] sm:$0xff]  ;;  %v2542_v5 = vmax.f32 %v513_v54, 0.0 }
  0x3a   : > { %918 = vmatpush.msrb.mxu1 %v1845_v7  ;;  %1110 = vmatpush.msrb.mxu0 %v782_v8  ;;  %v2548_v7 = vmax.f32 %v521_v58, 0.0  ;;  %v490_v8 = vmul.f32 %v2263_v10, %v471_v62  ;;  %v796_v58 = vld [vmem:[%s3351_s5 + $0x160] sm:$0xff] }
  0x3b   : > { %984 = vmatpush.msrb.mxu2 %v1860_v9  ;;  %1049 = vmatpush.msrb.mxu3 %v762_v11  ;;  %v1853_v9 = vld [vmem:[%s3351_s5 + $0x298] sm:$0xff] }
  0x3c   : > { %919 = vmatpush.msrb.mxu1 %v1844_v13  ;;  %1111 = vmatpush.msrb.mxu0 %v781_v14  ;;  %v755_v11 = vld [vmem:[%s3351_s5 + $0x18] sm:$0xff] }
  0x3d   : > { %985 = vmatpush.msrb.mxu2 %v1859_v18  ;;  %1050 = vmatpush.msrb.mxu3 %v761_v19  ;;  %v775_v13 = vld [vmem:[%s3351_s5 + $0xb8] sm:$0xff]  ;;  %v774_v18 = vld [vmem:[%s3351_s5 + $0xb0] sm:$0xff]  ;;  %v509_v19 = vadd.f32 %v2283_v17, %v490_v8 }
  0x3e   : > { %920 = vmatpush.msrb.mxu1 %v1843_v20  ;;  %1112 = vmatpush.msrb.mxu0 %v780_v23  ;;  %v1837_v14 = vld [vmem:[%s3351_s5 + $0x218] sm:$0xff]  ;;  %v1836_v20 = vld [vmem:[%s3351_s5 + $0x210] sm:$0xff]  ;;  %v773_v23 = vld [vmem:[%s3351_s5 + $0xa8] sm:$0xff] }
  0x3f   : > { %986 = vmatpush.msrb.mxu2 %v1858_v22  ;;  %1051 = vmatpush.msrb.mxu3 %v760_v25  ;;  %v753_v22 = vld [vmem:[%s3351_s5 + $0x8] sm:$0xff]  ;;  %v2607_v28 = vmax.f32 %v509_v19, 0.0  ;;  %v1924_v8 = vld [vmem:[%s3351_s5 + $0x350] sm:$0xff] }
  0x40   : > { %921 = vmatpush.msrb.mxu1 %v1842_v29  ;;  %1997 = vmatmul.msk.f32.gmra.mxu0 %vm2351_vm0, %v547_v26  ;;  %v1835_v25 = vld [vmem:[%s3351_s5 + $0x208] sm:$0xff]  ;;  %v1834_v29 = vld [vmem:[%s3351_s5 + $0x200] sm:$0xff]  ;;  %v1956_v19 = vld [vmem:[%s3351_s5 + $0x450] sm:$0xff] }
  0x41   : > { %883 = vmatmul.f32.gmra.mxu1 %v2464_v30  ;;  %895 = vmatmul.f32.gmra.mxu2 %v2466_v31  ;;  %v635_v62 = vrot.slane %v2607_v28, 7 }
  0x42   : > { %907 = vmatmul.f32.gmra.mxu3 %v2469_v37  ;;  %987 = vmatpush.msrb.mxu2 %v1857_v39  ;;  %v771_v39 = vld [vmem:[%s3351_s5 + $0x98] sm:$0xff] }
  0x43   : > { %1052 = vmatpush.msrb.mxu3 %v759_v42  ;;  %1113 = vmatpush.msrb.mxu0 %v779_v43  ;;  %v2632_v42 = vsel %vm2351_vm0, %v547_v26, 0.0  ;;  %v770_v43 = vld [vmem:[%s3351_s5 + $0x90] sm:$0xff]  ;;  %v769_v26 = vld [vmem:[%s3351_s5 + $0x88] sm:$0xff] }
  0x44   : > { %922 = vmatpush.msrb.mxu1 %v1841_v46  ;;  %988 = vmatpush.msrb.mxu2 %v1856_v47  ;;  %v632_v46 = vrot.slane %v2632_v42, 7  ;;  %v798_v47 = vld [vmem:[%s3351_s5 + $0x170] sm:$0xff] }
  0x45   : > { %1053 = vmatpush.msrb.mxu3 %v758_v48  ;;  %1114 = vmatpush.msrb.mxu0 %v778_v50  ;;  %v1927_v48 = vld [vmem:[%s3351_s5 + $0x368] sm:$0xff] }
  0x46   : > { %923 = vmatpush.msrb.mxu1 %v1840_v52  ;;  %989 = vmatpush.msrb.mxu2 %v1855_v53  ;;  %v1943_v50 = vld [vmem:[%s3351_s5 + $0x3e8] sm:$0xff]  ;;  %v634_v53 = vrot.slane %v2536_v3, 7  ;;  %v633_v54 = vsel %vm630_vm1, %v631_v36, %v632_v46  ;;  %v790_v46 = vld [vmem:[%s3351_s5 + $0x130] sm:$0xff] }
  0x47   : > { %1054 = vmatpush.msrb.mxu3 %v757_v56  ;;  %1115 = vmatpush.msrb.mxu0 %v777_v57  ;;  %v797_v52 = vld [vmem:[%s3351_s5 + $0x168] sm:$0xff]  ;;  %v1926_v56 = vld [vmem:[%s3351_s5 + $0x360] sm:$0xff] }
  0x48   : > { %924 = vmatpush.msrb.mxu1 %v1839_v59  ;;  %990 = vmatpush.msrb.mxu2 %v1854_v61  ;;  %v1942_v57 = vld [vmem:[%s3351_s5 + $0x3e0] sm:$0xff]  ;;  %v1960_v59 = vld [vmem:[%s3351_s5 + $0x470] sm:$0xff]  ;;  %v1925_v61 = vld [vmem:[%s3351_s5 + $0x358] sm:$0xff] }
  0x49   : > { %1055 = vmatpush.msrb.mxu3 %v756_v1  ;;  %1116 = vmatpush.msrb.mxu0 %v776_v2  ;;  %v1941_v1 = vld [vmem:[%s3351_s5 + $0x3d8] sm:$0xff] }
  0x4a   : > { %925 = vmatpush.msrb.mxu1 %v1838_v4  ;;  %871 = vmatmul.f32.gmra.mxu0 %v2536_v3  ;;  %v795_v2 = vld [vmem:[%s3351_s5 + $0x158] sm:$0xff]  ;;  %v1959_v4 = vld [vmem:[%s3351_s5 + $0x468] sm:$0xff] }
  0x4b   : > { %886 = vmatmul.f32.gmra.mxu1 %v2542_v5  ;;  %898 = vmatmul.f32.gmra.mxu2 %v2544_v6 }
  0x4c   : > { %910 = vmatmul.f32.gmra.mxu3 %v2548_v7  ;;  %991 = vmatpush.msrb.mxu2 %v1853_v9  ;;  %v1940_v9 = vld [vmem:[%s3351_s5 + $0x3d0] sm:$0xff] }
  0x4d   : > { %1056 = vmatpush.msrb.mxu3 %v755_v11  ;;  %1117 = vmatpush.msrb.mxu0 %v775_v13  ;;  %v636_v11 = vsel %vm630_vm1, %v634_v53, %v635_v62  ;;  %v1958_v13 = vld [vmem:[%s3351_s5 + $0x460] sm:$0xff] }
  0x4e   : > { %926 = vmatpush.msrb.mxu1 %v1837_v14  ;;  %992 = vmatpush.msrb.mxu2 %v1852_v15  ;;  %v1957_v14 = vld [vmem:[%s3351_s5 + $0x458] sm:$0xff]  ;;  %v794_v15 = vld [vmem:[%s3351_s5 + $0x150] sm:$0xff]  ;;  %v1950_v62 = vld [vmem:[%s3351_s5 + $0x420] sm:$0xff] }
  0x4f   : > { %1057 = vmatpush.msrb.mxu3 %v754_v16  ;;  %1118 = vmatpush.msrb.mxu0 %v774_v18  ;;  %v1923_v16 = vld [vmem:[%s3351_s5 + $0x348] sm:$0xff] }
  0x50   : > { %927 = vmatpush.msrb.mxu1 %v1836_v20  ;;  %993 = vmatpush.msrb.mxu2 %v1851_v21  ;;  %v1939_v18 = vld [vmem:[%s3351_s5 + $0x3c8] sm:$0xff]  ;;  %v2733_v20 = vrot.slane %v2312_v32, 7 }
  0x51   : > { %1058 = vmatpush.msrb.mxu3 %v753_v22  ;;  %1119 = vmatpush.msrb.mxu0 %v773_v23  ;;  %v793_v21 = vld [vmem:[%s3351_s5 + $0x148] sm:$0xff]  ;;  %v1922_v22 = vld [vmem:[%s3351_s5 + $0x340] sm:$0xff] }
  0x52   : > { %928 = vmatpush.msrb.mxu1 %v1835_v25  ;;  %994 = vmatpush.msrb.mxu2 %v1850_v27  ;;  %v1938_v23 = vld [vmem:[%s3351_s5 + $0x3c0] sm:$0xff]  ;;  %v638_v25 = vrot.slane %v2385_v63, 7  ;;  %v1955_v27 = vld [vmem:[%s3351_s5 + $0x448] sm:$0xff] }
  0x53   : > { %1059 = vmatpush.msrb.mxu3 %v752_v35  ;;  %1120 = vmatpush.msrb.mxu0 %v772_v45  ;;  %v792_v45 = vld [vmem:[%s3351_s5 + $0x140] sm:$0xff] }
  0x54   : > { %929 = vmatpush.msrb.mxu1 %v1834_v29  ;;  %874 = vmatmul.f32.gmra.mxu0 %v2607_v28  ;;  %v2755_v35 = vsel %vm630_vm1, %v2733_v20, %v638_v25  ;;  %v1921_v29 = vld [vmem:[%s3351_s5 + $0x338] sm:$0xff]  ;;  %v786_v25 = vld [vmem:[%s3351_s5 + $0x110] sm:$0xff] }
  0x55   : > { %930 = vmatmul.f32.vlgmr.msrb.gmra.mxu1 %v2536_v3  ;;  %995 = vmatmul.f32.vlgmr.msrb.gmra.mxu2 %v2312_v32 }
  0x56   : > { %1867 = vmatmul.msk.f32.vlgmr.msrb.gmra.mxu3 %vm2614_vm2, %v631_v36  ;;  %1121 = vmatpush.msrb.mxu0 %v771_v39  ;;  %v1937_v36 = vld [vmem:[%s3351_s5 + $0x3b8] sm:$0xff]  ;;  %v1954_v39 = vld [vmem:[%s3351_s5 + $0x440] sm:$0xff] }
  0x57   : > { %1288 = vmatpush.msra.mxu2 %v1929_v40  ;;  %1353 = vmatpush.msra.mxu3 %v1945_v41  ;;  %v2776_v40 = vrot.slane %v2464_v30, 7  ;;  %v791_v41 = vld [vmem:[%s3351_s5 + $0x138] sm:$0xff] }
  0x58   : > { %1122 = vmatpush.msrb.mxu0 %v770_v43  ;;  %1174 = vmatpush.msra.mxu1 %v799_v44  ;;  %v1920_v43 = vld [vmem:[%s3351_s5 + $0x330] sm:$0xff] }
  0x59   : > { %1289 = vmatpush.msra.mxu2 %v1928_v49  ;;  %1354 = vmatpush.msra.mxu3 %v1944_v12  ;;  %v1936_v44 = vld [vmem:[%s3351_s5 + $0x3b0] sm:$0xff]  ;;  %v641_v49 = vrot.slane %v2542_v5, 7  ;;  %v1953_v12 = vld [vmem:[%s3351_s5 + $0x438] sm:$0xff] }
  0x5a   : > { %1123 = vmatpush.msrb.mxu0 %v769_v26  ;;  %1175 = vmatpush.msra.mxu1 %v798_v47  ;;  %v1919_v47 = vld [vmem:[%s3351_s5 + $0x328] sm:$0xff] }
  0x5b   : > { %1290 = vmatpush.msra.mxu2 %v1927_v48  ;;  %1355 = vmatpush.msra.mxu3 %v1943_v50  ;;  %v2799_v26 = vsel %vm630_vm1, %v2776_v40, %v641_v49  ;;  %v1935_v48 = vld [vmem:[%s3351_s5 + $0x3a8] sm:$0xff]  ;;  %v1952_v50 = vld [vmem:[%s3351_s5 + $0x430] sm:$0xff] }
  0x5c   : > { %1124 = vmatpush.msrb.mxu0 %v768_v51  ;;  %1176 = vmatpush.msra.mxu1 %v797_v52  ;;  %v2820_v51 = vrot.slane %v2314_v33, 7  ;;  %v789_v52 = vld [vmem:[%s3351_s5 + $0x128] sm:$0xff] }
  0x5d   : > { %933 = vmatmul.f32.gmra.mxu1 %v2607_v28  ;;  %998 = vmatmul.f32.gmra.mxu2 %v2385_v63 }
  0x5e   : > { %1063 = vmatmul.f32.gmra.mxu3 %v633_v54  ;;  %1883 = vmatmul.msk.f32.vlgmr.msrb.gmra.mxu0 %vm2614_vm2, %v634_v53  ;;  %v1934_v54 = vld [vmem:[%s3351_s5 + $0x3a0] sm:$0xff] }
  0x5f   : > { %1418 = vmatpush.msra.mxu0 %v1961_v55  ;;  %1291 = vmatpush.msra.mxu2 %v1926_v56  ;;  %v644_v55 = vrot.slane %v2379_v60, 7  ;;  %v1951_v56 = vld [vmem:[%s3351_s5 + $0x428] sm:$0xff] }
  0x60   : > { %1356 = vmatpush.msra.mxu3 %v1942_v57  ;;  %1177 = vmatpush.msra.mxu1 %v796_v58  ;;  %v788_v58 = vld [vmem:[%s3351_s5 + $0x120] sm:$0xff] }
  0x61   : > { %1419 = vmatpush.msra.mxu0 %v1960_v59  ;;  %1292 = vmatpush.msra.mxu2 %v1925_v61  ;;  %v2843_v57 = vsel %vm630_vm1, %v2820_v51, %v644_v55  ;;  %v1917_v59 = vld [vmem:[%s3351_s5 + $0x318] sm:$0xff]  ;;  %v1947_v55 = vld [vmem:[%s3351_s5 + $0x408] sm:$0xff] }
  0x62   : > { %1357 = vmatpush.msra.mxu3 %v1941_v1  ;;  %1178 = vmatpush.msra.mxu1 %v795_v2  ;;  %v1933_v61 = vld [vmem:[%s3351_s5 + $0x398] sm:$0xff]  ;;  %v2867_v1 = vrot.slane %v2466_v31, 7 }
  0x63   : > { %1420 = vmatpush.msra.mxu0 %v1959_v4  ;;  %1293 = vmatpush.msra.mxu2 %v1924_v8  ;;  %v787_v2 = vld [vmem:[%s3351_s5 + $0x118] sm:$0xff]  ;;  %v1916_v4 = vld [vmem:[%s3351_s5 + $0x310] sm:$0xff] }
  0x64   : > { %1358 = vmatpush.msra.mxu3 %v1940_v9  ;;  %1179 = vmatpush.msra.mxu1 %v794_v15  ;;  %v1932_v8 = vld [vmem:[%s3351_s5 + $0x390] sm:$0xff]  ;;  %v647_v9 = vrot.slane %v2544_v6, 7 }
  0x65   : > { %936 = vmatmul.f32.gmra.mxu1 %v2312_v32  ;;  %1001 = vmatmul.f32.gmra.mxu2 %v2464_v30 }
  0x66   : > { %1869 = vmatmul.msk.f32.gmra.mxu3 %vm2614_vm2, %v634_v53  ;;  %1128 = vmatmul.f32.gmra.mxu0 %v636_v11  ;;  %v1918_v53 = vld [vmem:[%s3351_s5 + $0x320] sm:$0xff] }
  0x67   : > { %1421 = vmatpush.msra.mxu0 %v1958_v13  ;;  %1294 = vmatpush.msra.mxu2 %v1923_v16  ;;  %v548_v13 = vld [vmem:[%s2872_s17] sm:$0xff]  ;;  %v2902_v16 = vsel %vm630_vm1, %v2867_v1, %v647_v9 }
  0x68   : > { %1359 = vmatpush.msra.mxu3 %v1939_v18  ;;  %1180 = vmatpush.msra.mxu1 %v793_v21  ;;  %v484_v21 = vld [vmem:[%s2254_s8 + $0x70] sm:$0xff]  ;;  %v784_v9 = vld [vmem:[%s3351_s5 + $0x100] sm:$0xff] }
  0x69   : > { %1422 = vmatpush.msra.mxu0 %v1957_v14  ;;  %1295 = vmatpush.msra.mxu2 %v1922_v22  ;;  %v550_v14 = vmul.f32 %v2263_v10, %v548_v13  ;;  %v1946_v13 = vld [vmem:[%s3351_s5 + $0x400] sm:$0xff] }
  0x6a   : > { %1360 = vmatpush.msra.mxu3 %v1938_v23  ;;  %1181 = vmatpush.msra.mxu1 %v792_v45  ;;  %v1931_v45 = vld [vmem:[%s3351_s5 + $0x388] sm:$0xff] }
  0x6b   : > { %1423 = vmatpush.msra.mxu0 %v1956_v19  ;;  %1296 = vmatpush.msra.mxu2 %v1921_v29  ;;  %v2898_v15 = vadd.f32 %v2283_v17, %v550_v14  ;;  %v564_v19 = vstv %s563_s11  ;;  %v1948_v29 = vld [vmem:[%s3351_s5 + $0x410] sm:$0xff] }
  0x6c   : > { %1361 = vmatpush.msra.mxu3 %v1937_v36  ;;  %1182 = vmatpush.msra.mxu1 %v791_v41  ;;  %vm2908_vm3 = vcmp.eq.s32.totalorder %v564_v19, 1  ;;  %v549_v36 = vld [vmem:[%s2872_s17 + $0x8] sm:$0xff]  ;;  %v503_v41 = vmul.f32 %v2263_v10, %v484_v21  ;;  %v3002_v19 = vrot.slane %v2469_v37, 7 }
  0x6d   : > { %939 = vmatmul.f32.gmra.mxu1 %v2385_v63  ;;  %1004 = vmatmul.f32.gmra.mxu2 %v2542_v5  ;;  %v554_v18 = vmax.f32 %v2898_v15, 0.0 }
  0x6e   : > { %1069 = vmatmul.f32.gmra.mxu3 %v636_v11  ;;  %1885 = vmatmul.msk.f32.gmra.mxu0 %vm2614_vm2, %v2733_v20  ;;  %v1949_v11 = vld [vmem:[%s3351_s5 + $0x418] sm:$0xff] }
  0x6f   : > { %1424 = vmatpush.msra.mxu0 %v1955_v27  ;;  %1297 = vmatpush.msra.mxu2 %v1920_v43  ;;  %v2920_v23 = vsel %vm2908_vm3, %v554_v18, 0.0  ;;  %v1915_v27 = vld [vmem:[%s3351_s5 + $0x308] sm:$0xff]  ;;  %v2938_v43 = vrot.slane %v2316_v34, 7 }
  0x70   : > { %1362 = vmatpush.msra.mxu3 %v1936_v44  ;;  %1183 = vmatpush.msra.mxu1 %v790_v46  ;;  %v522_v46 = vadd.f32 %v2283_v17, %v503_v41 }
  0x71   : > { %1425 = vmatpush.msra.mxu0 %v1954_v39  ;;  %1298 = vmatpush.msra.mxu2 %v1919_v47  ;;  %v551_v39 = vmul.f32 %v2263_v10, %v549_v36  ;;  %v485_v47 = vld [vmem:[%s2254_s8 + $0x78] sm:$0xff] }
  0x72   : > { %1363 = vmatpush.msra.mxu3 %v1935_v48  ;;  %1184 = vmatpush.msra.mxu1 %v789_v52  ;;  %v1914_v52 = vld [vmem:[%s3351_s5 + $0x300] sm:$0xff] }
  0x73   : > { %1426 = vmatpush.msra.mxu0 %v1953_v12  ;;  %1299 = vmatpush.msra.mxu2 %v1918_v53  ;;  %v553_v44 = vadd.f32 %v2283_v17, %v551_v39  ;;  %v1930_v53 = vld [vmem:[%s3351_s5 + $0x380] sm:$0xff] }
  0x74   : > { %1364 = vmatpush.msra.mxu3 %v1934_v54  ;;  %1185 = vmatpush.msra.mxu1 %v788_v58  ;;  %v650_v54 = vrot.slane %v2387_v0, 7  ;;  %v693_v58 = vrot.slane %v2632_v42, 1 }
  0x75   : > { %942 = vmatmul.f32.gmra.mxu1 %v2464_v30  ;;  %1007 = vmatmul.f32.gmra.mxu2 %v2314_v33  ;;  %v555_v12 = vmax.f32 %v553_v44, 0.0 }
  0x76   : > { %1871 = vmatmul.msk.f32.gmra.mxu3 %vm2614_vm2, %v2733_v20  ;;  %1134 = vmatmul.f32.gmra.mxu0 %v2755_v35 }
  0x77   : > { %1427 = vmatpush.msra.mxu0 %v1952_v50  ;;  %1300 = vmatpush.msra.mxu2 %v1917_v59  ;;  %v2953_v48 = vsel %vm2908_vm3, %v555_v12, 0.0  ;;  %v785_v50 = vld [vmem:[%s3351_s5 + $0x108] sm:$0xff]  ;;  %v2970_v59 = vmax.f32 %v522_v46, 0.0 }
  0x78   : > { %1365 = vmatpush.msra.mxu3 %v1933_v61  ;;  %1186 = vmatpush.msra.mxu1 %v787_v2  ;;  %v504_v61 = vmul.f32 %v2263_v10, %v485_v47 }
  0x79   : > { %1428 = vmatpush.msra.mxu0 %v1951_v56  ;;  %1301 = vmatpush.msra.mxu2 %v1916_v4  ;;  %v692_v56 = vrot.slane %v2593_v24, 1  ;;  %v2979_v4 = vsel %vm630_vm1, %v2938_v43, %v650_v54  ;;  %v3037_v46 = vrot.slane %v2970_v59, 7 }
  0x7a   : > { %1366 = vmatpush.msra.mxu3 %v1932_v8  ;;  %1187 = vmatpush.msra.mxu1 %v786_v25  ;;  %v523_v24 = vadd.f32 %v2283_v17, %v504_v61 }
  0x7b   : > { %1429 = vmatpush.msra.mxu0 %v1950_v62  ;;  %1302 = vmatpush.msra.mxu2 %v1915_v27 }
  0x7c   : > { %1367 = vmatpush.msra.mxu3 %v1931_v45  ;;  %1188 = vmatpush.msra.mxu1 %v785_v50  ;;  %v2999_v14 = vmax.f32 %v523_v24, 0.0  ;;  %v653_v45 = vrot.slane %v2548_v7, 7  ;;  %v695_v50 = vrot.slane %v2536_v3, 1  ;;  %v698_v3 = vrot.slane %v2312_v32, 1 }
  0x7d   : > { %945 = vmatmul.f32.gmra.mxu1 %v2542_v5  ;;  %1010 = vmatmul.f32.gmra.mxu2 %v2379_v60 }
  0x7e   : > { %1075 = vmatmul.f32.gmra.mxu3 %v2755_v35  ;;  %1887 = vmatmul.msk.f32.gmra.mxu0 %vm2614_vm2, %v2776_v40  ;;  %v656_v47 = vrot.slane %v2999_v14, 7 }
  0x7f   : > { %1430 = vmatpush.msra.mxu0 %v1949_v11  ;;  %1303 = vmatpush.msra.mxu2 %v1914_v52  ;;  %v694_v11 = vsel %vm691_vm4, %v692_v56, %v693_v58  ;;  %v696_v52 = vrot.slane %v2607_v28, 1  ;;  %v699_v28 = vrot.slane %v2385_v63, 1 }
  0x80   : > { %1368 = vmatpush.msra.mxu3 %v1930_v53  ;;  %1189 = vmatpush.msra.mxu1 %v784_v9  ;;  %v3055_v22 = vsel %vm630_vm1, %v3037_v46, %v656_v47 }
  0x81   : > { %1431 = vmatpush.msra.mxu0 %v1948_v29  ;;  %v3019_v29 = vsel %vm630_vm1, %v3002_v19, %v653_v45  ;;  %v700_v47 = vsel %vm691_vm4, %v698_v3, %v699_v28 }
  0x83   : > { %1432 = vmatpush.msra.mxu0 %v1947_v55 }
  0x85   : > { %948 = vmatmul.f32.gmra.mxu1 %v2314_v33  ;;  %1013 = vmatmul.f32.gmra.mxu2 %v2466_v31 }
  0x86   : > { %1873 = vmatmul.msk.f32.gmra.mxu3 %vm2614_vm2, %v2776_v40  ;;  %1140 = vmatmul.f32.gmra.mxu0 %v2799_v26 }
  0x87   : > { %1433 = vmatpush.msra.mxu0 %v1946_v13 }
  0x8d   : > { %951 = vmatmul.f32.gmra.mxu1 %v2379_v60  ;;  %1016 = vmatmul.f32.gmra.mxu2 %v2544_v6 }
  0x8e   : > { %1081 = vmatmul.f32.gmra.mxu3 %v2799_v26  ;;  %1889 = vmatmul.msk.f32.gmra.mxu0 %vm2614_vm2, %v2820_v51 }
  0x95   : > { %954 = vmatmul.f32.gmra.mxu1 %v2466_v31  ;;  %1019 = vmatmul.f32.gmra.mxu2 %v2316_v34 }
  0x96   : > { %1875 = vmatmul.msk.f32.gmra.mxu3 %vm2614_vm2, %v2820_v51  ;;  %1146 = vmatmul.f32.gmra.mxu0 %v2843_v57 }
  0x9d   : > { %957 = vmatmul.f32.gmra.mxu1 %v2544_v6  ;;  %1022 = vmatmul.f32.gmra.mxu2 %v2387_v0 }
  0x9e   : > { %1087 = vmatmul.f32.gmra.mxu3 %v2843_v57  ;;  %1891 = vmatmul.msk.f32.gmra.mxu0 %vm2614_vm2, %v2867_v1 }
  0xa5   : > { %960 = vmatmul.f32.gmra.mxu1 %v2316_v34  ;;  %1025 = vmatmul.f32.gmra.mxu2 %v2469_v37 }
  0xa6   : > { %1877 = vmatmul.msk.f32.gmra.mxu3 %vm2614_vm2, %v2867_v1  ;;  %1152 = vmatmul.f32.gmra.mxu0 %v2902_v16 }
  0xab   : > { %v2941_v49 = vpop.f32.mrf.mxu1 }
  0xad   : > { %963 = vmatmul.f32.gmra.mxu1 %v2387_v0  ;;  %1028 = vmatmul.f32.gmra.mxu2 %v2548_v7 }
  0xae   : > { %1093 = vmatmul.f32.gmra.mxu3 %v2902_v16  ;;  %1893 = vmatmul.msk.f32.gmra.mxu0 %vm2614_vm2, %v2938_v43 }
  0xb0   : > { %v866_v8 = vpop.f32.mrf.mxu0 }
  0xb2   : > { %v2973_v62 = vpop.f32.mrf.mxu2  ;;  %v2975_v2 = vpop.f32.mrf.mxu3 }
  0xb5   : > { %966 = vmatmul.f32.gmra.mxu1 %v2469_v37  ;;  %1031 = vmatmul.f32.gmra.mxu2 %v2970_v59  ;;  %v2986_v10 = vpop.f32.mrf.mxu1 }
  0xb6   : > { %1879 = vmatmul.msk.f32.gmra.mxu3 %vm2614_vm2, %v2938_v43  ;;  %1158 = vmatmul.f32.gmra.mxu0 %v2979_v4 }
  0xba   : > { %v3004_v17 = vpop.f32.mrf.mxu2 }
  0xbb   : > { %v3006_v21 = vpop.f32.mrf.mxu3 }
  0xbd   : > { %969 = vmatmul.f32.gmra.mxu1 %v2548_v7  ;;  %1034 = vmatmul.f32.gmra.mxu2 %v2999_v14  ;;  %v869_v25 = vpop.f32.mrf.mxu0 }
  0xbe   : > { %1099 = vmatmul.f32.gmra.mxu3 %v2979_v4  ;;  %1895 = vmatmul.msk.f32.gmra.mxu0 %vm2614_vm2, %v3002_v19  ;;  %v3014_v27 = vpop.f32.mrf.mxu1 }
  0xc4   : > { %v3021_v36 = vpop.f32.mrf.mxu2 }
  0xc5   : > { %972 = vmatmul.f32.gmra.mxu1 %v2970_v59  ;;  %1998 = vmatmul.msk.f32.gmra.mxu2 %vm2908_vm3, %v554_v18  ;;  %v3028_v39 = vpop.f32.mrf.mxu3 }
  0xc6   : > { %1881 = vmatmul.msk.f32.gmra.mxu3 %vm2614_vm2, %v3002_v19  ;;  %1164 = vmatmul.f32.gmra.mxu0 %v3019_v29 }
  0xc7   : > { %v872_v41 = vpop.f32.mrf.mxu0 }
  0xc8   : > { %v3034_v44 = vpop.f32.mrf.mxu1 }
  0xcd   : > { %975 = vmatmul.f32.gmra.mxu1 %v2999_v14  ;;  %1999 = vmatmul.msk.f32.gmra.mxu2 %vm2908_vm3, %v555_v12  ;;  %v697_v12 = vsel %vm691_vm4, %v695_v50, %v696_v52 }
  0xce   : > { %1105 = vmatmul.f32.gmra.mxu3 %v3019_v29  ;;  %1897 = vmatmul.msk.f32.gmra.mxu0 %vm2614_vm2, %v3037_v46  ;;  %v3046_v15 = vpop.f32.mrf.mxu2 }
  0xcf   : > { %v3048_v18 = vpop.f32.mrf.mxu3 }
  0xd1   : > { %v875_v53 = vpop.f32.mrf.mxu0 }
  0xd2   : > { %v931_v54 = vpop.f32.mrf.mxu1 }
  0xd3   : > { %v932_v55 = vadd.f32 %v931_v54, %v866_v8 }
  0xd5   : > { %1899 = vmatmul.msk.f32.vlgmr.msra.gmra.mxu1 %vm2614_vm2, %v2733_v20  ;;  %1304 = vmatmul.f32.vlgmr.msra.gmra.mxu2 %v694_v11 }
  0xd6   : > { %1170 = vmatmul.f32.gmra.mxu0 %v3055_v22  ;;  %1369 = vmatmul.f32.vlgmr.msra.gmra.mxu3 %v697_v12 }
  0xd8   : > { %v996_v56 = vpop.f32.mrf.mxu2 }
  0xd9   : > { %v997_v61 = vadd.f32 %v996_v56, %v932_v55  ;;  %v1061_v9 = vpop.f32.mrf.mxu3 }
  0xda   : > { %v934_v24 = vpop.f32.mrf.mxu1 }
  0xdb   : > { %v3064_v13 = vadd.f32 %v1061_v9, %v997_v61  ;;  %v3066_v45 = vpop.f32.mrf.mxu0  ;;  %v935_v32 = vadd.f32 %v934_v24, %v869_v25 }
  0xdd   : > { %1193 = vmatmul.f32.gmra.mxu1 %v2755_v35  ;;  %1962 = vmatmul.msk.f32.gmra.mxu2 %vm691_vm4, %v693_v58  ;;  %v701_v35 = vrot.slane %v2464_v30, 1  ;;  %v702_v58 = vrot.slane %v2542_v5, 1 }
  0xde   : > { %1970 = vmatmul.msk.f32.gmra.mxu3 %vm691_vm4, %v696_v52  ;;  %1434 = vmatmul.f32.vlgmr.msra.gmra.mxu0 %v700_v47 }
  0xdf   : > { %v703_v24 = vsel %vm691_vm4, %v701_v35, %v702_v58 }
  0xe0   : > { %v999_v63 = vpop.f32.mrf.mxu2 }
  0xe1   : > { %v1000_v20 = vadd.f32 %v999_v63, %v935_v32  ;;  %v1064_v8 = vpop.f32.mrf.mxu3 }
  0xe2   : > { %v937_v11 = vpop.f32.mrf.mxu1 }
  0xe3   : > { %v3074_v50 = vadd.f32 %v1064_v8, %v1000_v20  ;;  %v3076_v54 = vpop.f32.mrf.mxu0  ;;  %v938_v42 = vadd.f32 %v937_v11, %v872_v41 }
  0xe5   : > { %1901 = vmatmul.msk.f32.gmra.mxu1 %vm2614_vm2, %v2776_v40  ;;  %1310 = vmatmul.f32.gmra.mxu2 %v697_v12 }
  0xe6   : > { %1375 = vmatmul.f32.gmra.mxu3 %v700_v47  ;;  %1978 = vmatmul.msk.f32.gmra.mxu0 %vm691_vm4, %v699_v28 }
  0xe8   : > { %v1002_v25 = vpop.f32.mrf.mxu2 }
  0xe9   : > { %v1003_v55 = vadd.f32 %v1002_v25, %v938_v42  ;;  %v1067_v3 = vpop.f32.mrf.mxu3 }
  0xea   : > { %v940_v56 = vpop.f32.mrf.mxu1 }
  0xeb   : > { %v3084_v61 = vadd.f32 %v1067_v3, %v1003_v55  ;;  %v3086_v9 = vpop.f32.mrf.mxu0  ;;  %v941_v30 = vadd.f32 %v940_v56, %v875_v53  ;;  %v705_v53 = vrot.slane %v2379_v60, 1 }
  0xed   : > { %1199 = vmatmul.f32.gmra.mxu1 %v2799_v26  ;;  %1963 = vmatmul.msk.f32.gmra.mxu2 %vm691_vm4, %v696_v52  ;;  %v704_v52 = vrot.slane %v2314_v33, 1 }
  0xee   : > { %1971 = vmatmul.msk.f32.gmra.mxu3 %vm691_vm4, %v699_v28  ;;  %1440 = vmatmul.f32.gmra.mxu0 %v703_v24 }
  0xf0   : > { %v1005_v40 = vpop.f32.mrf.mxu2 }
  0xf1   : > { %v1006_v5 = vadd.f32 %v1005_v40, %v941_v30  ;;  %v1070_v41 = vpop.f32.mrf.mxu3 }
  0xf2   : > { %v943_v12 = vpop.f32.mrf.mxu1 }
  0xf3   : > { %v3092_v32 = vadd.f32 %v1070_v41, %v1006_v5  ;;  %v3094_v63 = vpop.f32.mrf.mxu0  ;;  %v944_v26 = vadd.f32 %v943_v12, %v2941_v49 }
  0xf5   : > { %1903 = vmatmul.msk.f32.gmra.mxu1 %vm2614_vm2, %v2820_v51  ;;  %1316 = vmatmul.f32.gmra.mxu2 %v700_v47  ;;  %v706_v51 = vsel %vm691_vm4, %v704_v52, %v705_v53 }
  0xf6   : > { %1381 = vmatmul.f32.gmra.mxu3 %v703_v24  ;;  %1979 = vmatmul.msk.f32.gmra.mxu0 %vm691_vm4, %v702_v58 }
  0xf8   : > { %v1008_v20 = vpop.f32.mrf.mxu2 }
  0xf9   : > { %v1009_v8 = vadd.f32 %v1008_v20, %v944_v26  ;;  %v1073_v11 = vpop.f32.mrf.mxu3 }
  0xfa   : > { %v946_v42 = vpop.f32.mrf.mxu1 }
  0xfb   : > { %v3103_v35 = vadd.f32 %v1073_v11, %v1009_v8  ;;  %v3105_v25 = vpop.f32.mrf.mxu0  ;;  %v947_v33 = vadd.f32 %v946_v42, %v2986_v10  ;;  %v707_v10 = vrot.slane %v2466_v31, 1 }
  0xfd   : > { %1205 = vmatmul.f32.gmra.mxu1 %v2843_v57  ;;  %1964 = vmatmul.msk.f32.gmra.mxu2 %vm691_vm4, %v699_v28  ;;  %v3123_v28 = vrot.slane %v2544_v6, 1 }
  0xfe   : > { %1972 = vmatmul.msk.f32.gmra.mxu3 %vm691_vm4, %v702_v58  ;;  %1446 = vmatmul.f32.gmra.mxu0 %v706_v51 }
 0x100   : > { %v1011_v60 = vpop.f32.mrf.mxu2 }
 0x101   : > { %v1012_v49 = vadd.f32 %v1011_v60, %v947_v33  ;;  %v1076_v47 = vpop.f32.mrf.mxu3 }
 0x102   : > { %v949_v55 = vpop.f32.mrf.mxu1 }
 0x103   : > { %v3112_v3 = vadd.f32 %v1076_v47, %v1012_v49  ;;  %v3114_v56 = vpop.f32.mrf.mxu0  ;;  %v950_v57 = vadd.f32 %v949_v55, %v3014_v27 }
 0x105   : > { %1905 = vmatmul.msk.f32.gmra.mxu1 %vm2614_vm2, %v2867_v1  ;;  %1322 = vmatmul.f32.gmra.mxu2 %v703_v24  ;;  %v709_v1 = vsel %vm691_vm4, %v707_v10, %v3123_v28 }
 0x106   : > { %1387 = vmatmul.f32.gmra.mxu3 %v706_v51  ;;  %1980 = vmatmul.msk.f32.gmra.mxu0 %vm691_vm4, %v705_v53 }
 0x108   : > { %v1014_v30 = vpop.f32.mrf.mxu2 }
 0x109   : > { %v1015_v40 = vadd.f32 %v1014_v30, %v950_v57  ;;  %v1079_v5 = vpop.f32.mrf.mxu3 }
 0x10a   : > { %v952_v41 = vpop.f32.mrf.mxu1 }
 0x10b   : > { %v3125_v12 = vadd.f32 %v1079_v5, %v1015_v40  ;;  %v3127_v26 = vpop.f32.mrf.mxu0  ;;  %v953_v31 = vadd.f32 %v952_v41, %v3034_v44  ;;  %v710_v44 = vrot.slane %v2316_v34, 1 }
 0x10d   : > { %1211 = vmatmul.f32.gmra.mxu1 %v2902_v16  ;;  %1965 = vmatmul.msk.f32.gmra.mxu2 %vm691_vm4, %v702_v58  ;;  %v3147_v58 = vrot.slane %v2387_v0, 1 }
 0x10e   : > { %1973 = vmatmul.msk.f32.gmra.mxu3 %vm691_vm4, %v705_v53  ;;  %1452 = vmatmul.f32.gmra.mxu0 %v709_v1 }
 0x110   : > { %v1017_v6 = vpop.f32.mrf.mxu2 }
 0x111   : > { %v1018_v27 = vadd.f32 %v1017_v6, %v953_v31  ;;  %v1082_v24 = vpop.f32.mrf.mxu3  ;;  %v658_v6 = vrot.slane %v2920_v23, 7 }
 0x112   : > { %v955_v52 = vpop.f32.mrf.mxu1 }
 0x113   : > { %v3135_v20 = vadd.f32 %v1082_v24, %v1018_v27  ;;  %v3137_v8 = vpop.f32.mrf.mxu0  ;;  %v956_v16 = vadd.f32 %v955_v52, %v2973_v62  ;;  %v659_v52 = vrot.slane %v2953_v48, 7 }
 0x115   : > { %1907 = vmatmul.msk.f32.gmra.mxu1 %vm2614_vm2, %v2938_v43  ;;  %1328 = vmatmul.f32.gmra.mxu2 %v706_v51  ;;  %v712_v43 = vsel %vm691_vm4, %v710_v44, %v3147_v58 }
 0x116   : > { %1393 = vmatmul.f32.gmra.mxu3 %v709_v1  ;;  %1981 = vmatmul.msk.f32.gmra.mxu0 %vm691_vm4, %v3123_v28 }
 0x118   : > { %v1020_v11 = vpop.f32.mrf.mxu2 }
 0x119   : > { %v1021_v42 = vadd.f32 %v1020_v11, %v956_v16  ;;  %v1085_v33 = vpop.f32.mrf.mxu3 }
 0x11a   : > { %v958_v60 = vpop.f32.mrf.mxu1 }
 0x11b   : > { %v1086_v49 = vadd.f32 %v1085_v33, %v1021_v42  ;;  %v1150_v47 = vpop.f32.mrf.mxu0  ;;  %v959_v34 = vadd.f32 %v958_v60, %v3004_v17  ;;  %v713_v17 = vrot.slane %v2469_v37, 1  ;;  %v720_v37 = vrot.slane %v2953_v48, 1 }
 0x11d   : > { %v3151_v51 = vadd.f32 %v1150_v47, %v1086_v49  ;;  %1217 = vmatmul.f32.gmra.mxu1 %v2979_v4  ;;  %1966 = vmatmul.msk.f32.gmra.mxu2 %vm691_vm4, %v705_v53  ;;  %v3168_v53 = vrot.slane %v2548_v7, 1  ;;  %v660_v7 = vsel %vm630_vm1, %v658_v6, %v659_v52 }
 0x11e   : > { %1974 = vmatmul.msk.f32.gmra.mxu3 %vm691_vm4, %v3123_v28  ;;  %1458 = vmatmul.f32.gmra.mxu0 %v712_v43 }
 0x120   : > { %v1023_v0 = vpop.f32.mrf.mxu2 }
 0x121   : > { %v1024_v62 = vadd.f32 %v1023_v0, %v959_v34  ;;  %v1088_v55 = vpop.f32.mrf.mxu3  ;;  %v717_v34 = vrot.slane %v2999_v14, 1 }
 0x122   : > { %v961_v57 = vpop.f32.mrf.mxu1 }
 0x123   : > { %v1089_v10 = vadd.f32 %v1088_v55, %v1024_v62  ;;  %v1153_v30 = vpop.f32.mrf.mxu0  ;;  %v962_v4 = vadd.f32 %v961_v57, %v3021_v36  ;;  %v719_v36 = vrot.slane %v2920_v23, 1 }
 0x125   : > { %v3158_v40 = vadd.f32 %v1153_v30, %v1089_v10  ;;  %1909 = vmatmul.msk.f32.gmra.mxu1 %vm2614_vm2, %v3002_v19  ;;  %1334 = vmatmul.f32.gmra.mxu2 %v709_v1  ;;  %v715_v1 = vsel %vm691_vm4, %v713_v17, %v3168_v53  ;;  %v721_v44 = vsel %vm691_vm4, %v719_v36, %v720_v37 }
 0x126   : > { %1399 = vmatmul.f32.gmra.mxu3 %v712_v43  ;;  %1982 = vmatmul.msk.f32.gmra.mxu0 %vm691_vm4, %v3147_v58 }
 0x128   : > { %v1026_v5 = vpop.f32.mrf.mxu2 }
 0x129   : > { %v1027_v41 = vadd.f32 %v1026_v5, %v962_v4  ;;  %v1091_v31 = vpop.f32.mrf.mxu3 }
 0x12a   : > { %v964_v27 = vpop.f32.mrf.mxu1 }
 0x12b   : > { %v1092_v24 = vadd.f32 %v1091_v31, %v1027_v41  ;;  %v1156_v19 = vpop.f32.mrf.mxu0  ;;  %v965_v23 = vadd.f32 %v964_v27, %v3046_v15  ;;  %v716_v15 = vrot.slane %v2970_v59, 1 }
 0x12d   : > { %v3176_v16 = vadd.f32 %v1156_v19, %v1092_v24  ;;  %1223 = vmatmul.f32.gmra.mxu1 %v3019_v29  ;;  %1967 = vmatmul.msk.f32.gmra.mxu2 %vm691_vm4, %v3123_v28  ;;  %v718_v4 = vsel %vm691_vm4, %v716_v15, %v717_v34 }
 0x12e   : > { %1975 = vmatmul.msk.f32.gmra.mxu3 %vm691_vm4, %v3147_v58  ;;  %1464 = vmatmul.f32.gmra.mxu0 %v715_v1 }
 0x130   : > { %v1029_v11 = vpop.f32.mrf.mxu2 }
 0x131   : > { %v1030_v42 = vadd.f32 %v1029_v11, %v965_v23  ;;  %v1094_v33 = vpop.f32.mrf.mxu3 }
 0x132   : > { %v967_v60 = vpop.f32.mrf.mxu1 }
 0x133   : > { %v1095_v29 = vadd.f32 %v1094_v33, %v1030_v42  ;;  %v1159_v49 = vpop.f32.mrf.mxu0  ;;  %v968_v28 = vadd.f32 %v967_v60, %v2975_v2 }
 0x135   : > { %v3188_v47 = vadd.f32 %v1159_v49, %v1095_v29  ;;  %1911 = vmatmul.msk.f32.gmra.mxu1 %vm2614_vm2, %v3037_v46  ;;  %1340 = vmatmul.f32.gmra.mxu2 %v712_v43 }
 0x136   : > { %1405 = vmatmul.f32.gmra.mxu3 %v715_v1  ;;  %1983 = vmatmul.msk.f32.gmra.mxu0 %vm691_vm4, %v3168_v53 }
 0x138   : > { %v1032_v0 = vpop.f32.mrf.mxu2 }
 0x139   : > { %v1033_v62 = vadd.f32 %v1032_v0, %v968_v28  ;;  %v1097_v55 = vpop.f32.mrf.mxu3 }
 0x13a   : > { %v970_v57 = vpop.f32.mrf.mxu1 }
 0x13b   : > { %v1098_v10 = vadd.f32 %v1097_v55, %v1033_v62  ;;  %v1162_v30 = vpop.f32.mrf.mxu0  ;;  %v971_v59 = vadd.f32 %v970_v57, %v3006_v21 }
 0x13d   : > { %v3199_v46 = vadd.f32 %v1162_v30, %v1098_v10  ;;  %1229 = vmatmul.f32.gmra.mxu1 %v3055_v22  ;;  %1968 = vmatmul.msk.f32.gmra.mxu2 %vm691_vm4, %v3147_v58 }
 0x13e   : > { %1976 = vmatmul.msk.f32.gmra.mxu3 %vm691_vm4, %v3168_v53  ;;  %1470 = vmatmul.f32.gmra.mxu0 %v718_v4 }
 0x140   : > { %v1035_v2 = vpop.f32.mrf.mxu2 }
 0x141   : > { %v1036_v14 = vadd.f32 %v1035_v2, %v971_v59  ;;  %v1100_v43 = vpop.f32.mrf.mxu3 }
 0x142   : > { %v973_v17 = vpop.f32.mrf.mxu1 }
 0x143   : > { %v1101_v5 = vadd.f32 %v1100_v43, %v1036_v14  ;;  %v1165_v41 = vpop.f32.mrf.mxu0  ;;  %v974_v22 = vadd.f32 %v973_v17, %v3028_v39 }
 0x145   : > { %v3207_v31 = vadd.f32 %v1165_v41, %v1101_v5  ;;  %1913 = vmatmul.msk.f32.gmra.mxu1 %vm2614_vm2, %v658_v6  ;;  %1346 = vmatmul.f32.gmra.mxu2 %v715_v1  ;;  %v1136_v41 = vadd.f32 %v3094_v63, %v3092_v32 }
 0x146   : > { %1411 = vmatmul.f32.gmra.mxu3 %v718_v4  ;;  %1984 = vmatmul.msk.f32.gmra.mxu0 %vm691_vm4, %v717_v34  ;;  %v1133_v4 = vadd.f32 %v3086_v9, %v3084_v61 }
 0x148   : > { %v1038_v58 = vpop.f32.mrf.mxu2 }
 0x149   : > { %v1039_v27 = vadd.f32 %v1038_v58, %v974_v22  ;;  %v1103_v21 = vpop.f32.mrf.mxu3 }
 0x14a   : > { %v976_v24 = vpop.f32.mrf.mxu1 }
 0x14b   : > { %v1104_v19 = vadd.f32 %v1103_v21, %v1039_v27  ;;  %v1168_v52 = vpop.f32.mrf.mxu0  ;;  %v977_v38 = vadd.f32 %v976_v24, %v3048_v18 }
 0x14d   : > { %v3213_v36 = vadd.f32 %v1168_v52, %v1104_v19  ;;  %1235 = vmatmul.f32.gmra.mxu1 %v660_v7  ;;  %1969 = vmatmul.msk.f32.gmra.mxu2 %vm691_vm4, %v3168_v53  ;;  %v1139_v52 = vadd.f32 %v3105_v25, %v3103_v35 }
 0x14e   : > { %1977 = vmatmul.msk.f32.gmra.mxu3 %vm691_vm4, %v717_v34  ;;  %1476 = vmatmul.f32.gmra.mxu0 %v721_v44  ;;  %v1127_v44 = vadd.f32 %v3066_v45, %v3064_v13  ;;  %v1130_v13 = vadd.f32 %v3076_v54, %v3074_v50 }
 0x150   : > { %v1041_v6 = vpop.f32.mrf.mxu2 }
 0x151   : > { %v1042_v39 = vadd.f32 %v1041_v6, %v977_v38  ;;  %v1106_v1 = vpop.f32.mrf.mxu3 }
 0x152   : > { %v1191_v23 = vpop.f32.mrf.mxu1 }
 0x153   : > { %v1107_v11 = vadd.f32 %v1106_v1, %v1042_v39  ;;  %v1171_v42 = vpop.f32.mrf.mxu0  ;;  %v1192_v49 = vadd.f32 %v1191_v23, %v1127_v44 }
 0x155   : > { %v3219_v33 = vadd.f32 %v1171_v42, %v1107_v11  ;;  %v1142_v42 = vadd.f32 %v3114_v56, %v3112_v3 }
 0x156   : > { %1985 = vmatmul.msk.f32.gmra.mxu0 %vm691_vm4, %v720_v37 }
 0x158   : > { %v1305_v7 = vpop.f32.mrf.mxu2 }
 0x159   : > { %v1370_v53 = vpop.f32.mrf.mxu3 }
 0x15a   : > { %v1371_v60 = vadd.f32 %v1370_v53, %v1305_v7  ;;  %v1194_v18 = vpop.f32.mrf.mxu1 }
 0x15b   : > { %v1435_v29 = vpop.f32.mrf.mxu0  ;;  %v1195_v62 = vadd.f32 %v1194_v18, %v1130_v13 }
 0x15c   : > { %v1436_v28 = vadd.f32 %v1435_v29, %v1371_v60 }
 0x15e   : > { %v3233_v48 = vadd.f32 %v1436_v28, %v1192_v49  ;;  %v1145_v49 = vadd.f32 %v3127_v26, %v3125_v12 }
 0x160   : > { %1576 = vst [vmem:[%s3231_s16] sm:$0xff] %v3233_v48  ;;  %v1308_v37 = vpop.f32.mrf.mxu2 }
 0x161   : > { %v1373_v15 = vpop.f32.mrf.mxu3 }
 0x162   : > { %v1374_v45 = vadd.f32 %v1373_v15, %v1308_v37  ;;  %v1197_v34 = vpop.f32.mrf.mxu1 }
 0x163   : > { %v1438_v0 = vpop.f32.mrf.mxu0  ;;  %v1198_v50 = vadd.f32 %v1197_v34, %v1133_v4 }
 0x164   : > { %v1439_v55 = vadd.f32 %v1438_v0, %v1374_v45  ;;  %v1148_v0 = vadd.f32 %v3137_v8, %v3135_v20 }
 0x166   : > { %v3239_v57 = vadd.f32 %v1439_v55, %v1195_v62 }
 0x168   : > { %1577 = vst [vmem:[%s3231_s16 + $0x8] sm:$0xff] %v3239_v57  ;;  %v1311_v10 = vpop.f32.mrf.mxu2 }
 0x169   : > { %v1376_v30 = vpop.f32.mrf.mxu3 }
 0x16a   : > { %v1377_v59 = vadd.f32 %v1376_v30, %v1311_v10  ;;  %v1200_v2 = vpop.f32.mrf.mxu1 }
 0x16b   : > { %v1441_v14 = vpop.f32.mrf.mxu0  ;;  %v1201_v61 = vadd.f32 %v1200_v2, %v1136_v41 }
 0x16c   : > { %v1442_v54 = vadd.f32 %v1441_v14, %v1377_v59 }
 0x16e   : > { %v3245_v43 = vadd.f32 %v1442_v54, %v1198_v50 }
 0x170   : > { %1578 = vst [vmem:[%s3231_s16 + $0x10] sm:$0xff] %v3245_v43  ;;  %v1314_v17 = vpop.f32.mrf.mxu2 }
 0x171   : > { %v1379_v5 = vpop.f32.mrf.mxu3 }
 0x172   : > { %v1380_v22 = vadd.f32 %v1379_v5, %v1314_v17  ;;  %v1203_v58 = vpop.f32.mrf.mxu1 }
 0x173   : > { %v1444_v27 = vpop.f32.mrf.mxu0  ;;  %v1204_v32 = vadd.f32 %v1203_v58, %v1139_v52 }
 0x174   : > { %v1445_v9 = vadd.f32 %v1444_v27, %v1380_v22  ;;  %v1499_v27 = vadd.f32 %v3239_v57, %v3233_v48 }
 0x176   : > { %v3251_v21 = vadd.f32 %v1445_v9, %v1201_v61 }
 0x178   : > { %1579 = vst [vmem:[%s3231_s16 + $0x18] sm:$0xff] %v3251_v21  ;;  %v1317_v24 = vpop.f32.mrf.mxu2 }
 0x179   : > { %v1382_v19 = vpop.f32.mrf.mxu3 }
 0x17a   : > { %v1383_v38 = vadd.f32 %v1382_v19, %v1317_v24  ;;  %v1206_v6 = vpop.f32.mrf.mxu1  ;;  %v1500_v24 = vadd.f32 %v1499_v27, %v3245_v43 }
 0x17b   : > { %v1447_v39 = vpop.f32.mrf.mxu0  ;;  %v1207_v35 = vadd.f32 %v1206_v6, %v1142_v42 }
 0x17c   : > { %v1448_v63 = vadd.f32 %v1447_v39, %v1383_v38  ;;  %v1501_v19 = vadd.f32 %v1500_v24, %v3251_v21 }
 0x17e   : > { %v3257_v1 = vadd.f32 %v1448_v63, %v1204_v32 }
 0x180   : > { %1580 = vst [vmem:[%s3231_s16 + $0x20] sm:$0xff] %v3257_v1  ;;  %v1320_v23 = vpop.f32.mrf.mxu2  ;;  %v1502_v6 = vadd.f32 %v1501_v19, %v3257_v1 }
 0x181   : > { %v1385_v11 = vpop.f32.mrf.mxu3 }
 0x182   : > { %v1386_v7 = vadd.f32 %v1385_v11, %v1320_v23  ;;  %v1209_v53 = vpop.f32.mrf.mxu1 }
 0x183   : > { %v1450_v44 = vpop.f32.mrf.mxu0  ;;  %v1210_v3 = vadd.f32 %v1209_v53, %v1145_v49 }
 0x184   : > { %v1451_v25 = vadd.f32 %v1450_v44, %v1386_v7 }
 0x186   : > { %v3263_v60 = vadd.f32 %v1451_v25, %v1207_v35 }
 0x188   : > { %1581 = vst [vmem:[%s3231_s16 + $0x28] sm:$0xff] %v3263_v60  ;;  %v1323_v18 = vpop.f32.mrf.mxu2  ;;  %v1503_v23 = vadd.f32 %v1502_v6, %v3263_v60 }
 0x189   : > { %v1388_v29 = vpop.f32.mrf.mxu3 }
 0x18a   : > { %v1389_v28 = vadd.f32 %v1388_v29, %v1323_v18  ;;  %v1212_v37 = vpop.f32.mrf.mxu1 }
 0x18b   : > { %v1453_v15 = vpop.f32.mrf.mxu0  ;;  %v1213_v12 = vadd.f32 %v1212_v37, %v1148_v0 }
 0x18c   : > { %v1454_v56 = vadd.f32 %v1453_v15, %v1389_v28 }
 0x18e   : > { %v3269_v13 = vadd.f32 %v1454_v56, %v1210_v3 }
 0x190   : > { %1582 = vst [vmem:[%s3231_s16 + $0x30] sm:$0xff] %v3269_v13  ;;  %v1326_v45 = vpop.f32.mrf.mxu2  ;;  %v1504_v42 = vadd.f32 %v1503_v23, %v3269_v13 }
 0x191   : > { %v1391_v34 = vpop.f32.mrf.mxu3 }
 0x192   : > { %v1392_v62 = vadd.f32 %v1391_v34, %v1326_v45  ;;  %v1215_v55 = vpop.f32.mrf.mxu1 }
 0x193   : > { %v1456_v10 = vpop.f32.mrf.mxu0  ;;  %v1216_v54 = vadd.f32 %v1215_v55, %v3151_v51 }
 0x194   : > { %v1457_v26 = vadd.f32 %v1456_v10, %v1392_v62 }
 0x196   : > { %v3275_v30 = vadd.f32 %v1457_v26, %v1213_v12 }
 0x198   : > { %1583 = vst [vmem:[%s3231_s16 + $0x38] sm:$0xff] %v3275_v30  ;;  %v1329_v4 = vpop.f32.mrf.mxu2  ;;  %v1505_v53 = vadd.f32 %v1504_v42, %v3275_v30 }
 0x199   : > { %v1394_v59 = vpop.f32.mrf.mxu3 }
 0x19a   : > { %v1395_v2 = vadd.f32 %v1394_v59, %v1329_v4  ;;  %v1218_v14 = vpop.f32.mrf.mxu1 }
 0x19b   : > { %v1459_v50 = vpop.f32.mrf.mxu0  ;;  %v1219_v61 = vadd.f32 %v1218_v14, %v3158_v40 }
 0x19c   : > { %v1460_v17 = vadd.f32 %v1459_v50, %v1395_v2 }
 0x19e   : > { %v3280_v20 = vadd.f32 %v1460_v17, %v1216_v54 }
 0x1a0   : > { %1584 = vst [vmem:[%s3231_s16 + $0x40] sm:$0xff] %v3280_v20  ;;  %v1332_v8 = vpop.f32.mrf.mxu2  ;;  %v1506_v25 = vadd.f32 %v1505_v53, %v3280_v20 }
 0x1a1   : > { %v1397_v5 = vpop.f32.mrf.mxu3 }
 0x1a2   : > { %v1398_v41 = vadd.f32 %v1397_v5, %v1332_v8  ;;  %v1221_v22 = vpop.f32.mrf.mxu1 }
 0x1a3   : > { %v1462_v58 = vpop.f32.mrf.mxu0  ;;  %v1222_v40 = vadd.f32 %v1221_v22, %v3176_v16 }
 0x1a4   : > { %v1463_v9 = vadd.f32 %v1462_v58, %v1398_v41 }
 0x1a6   : > { %v3288_v51 = vadd.f32 %v1463_v9, %v1219_v61 }
 0x1a8   : > { %1585 = vst [vmem:[%s3231_s16 + $0x48] sm:$0xff] %v3288_v51  ;;  %v1335_v52 = vpop.f32.mrf.mxu2  ;;  %v1507_v28 = vadd.f32 %v1506_v25, %v3288_v51 }
 0x1a9   : > { %v1400_v38 = vpop.f32.mrf.mxu3 }
 0x1aa   : > { %v1401_v39 = vadd.f32 %v1400_v38, %v1335_v52  ;;  %v1224_v32 = vpop.f32.mrf.mxu1 }
 0x1ab   : > { %v1465_v63 = vpop.f32.mrf.mxu0  ;;  %v1225_v16 = vadd.f32 %v1224_v32, %v3188_v47 }
 0x1ac   : > { %v1466_v11 = vadd.f32 %v1465_v63, %v1401_v39 }
 0x1ae   : > { %v3297_v7 = vadd.f32 %v1466_v11, %v1222_v40 }
 0x1b0   : > { %1586 = vst [vmem:[%s3231_s16 + $0x50] sm:$0xff] %v3297_v7  ;;  %v1338_v44 = vpop.f32.mrf.mxu2  ;;  %v1508_v15 = vadd.f32 %v1507_v28, %v3297_v7 }
 0x1b1   : > { %v1403_v35 = vpop.f32.mrf.mxu3 }
 0x1b2   : > { %v1404_v18 = vadd.f32 %v1403_v35, %v1338_v44  ;;  %v1227_v29 = vpop.f32.mrf.mxu1 }
 0x1b3   : > { %v1468_v49 = vpop.f32.mrf.mxu0  ;;  %v1228_v55 = vadd.f32 %v1227_v29, %v3199_v46 }
 0x1b4   : > { %v1469_v37 = vadd.f32 %v1468_v49, %v1404_v18 }
 0x1b6   : > { %v1494_v3 = vadd.f32 %v1469_v37, %v1225_v16 }
 0x1b8   : > { %v1509_v56 = vadd.f32 %v1508_v15, %v1494_v3  ;;  %1587 = vst [vmem:[%s3231_s16 + $0x58] sm:$0xff] %v1494_v3  ;;  %v1341_v45 = vpop.f32.mrf.mxu2 }
 0x1b9   : > { %v1406_v34 = vpop.f32.mrf.mxu3 }
 0x1ba   : > { %v1407_v0 = vadd.f32 %v1406_v34, %v1341_v45  ;;  %v1230_v12 = vpop.f32.mrf.mxu1 }
 0x1bb   : > { %v1471_v62 = vpop.f32.mrf.mxu0  ;;  %v1231_v50 = vadd.f32 %v1230_v12, %v3207_v31 }
 0x1bc   : > { %v1472_v10 = vadd.f32 %v1471_v62, %v1407_v0 }
 0x1be   : > { %v1495_v26 = vadd.f32 %v1472_v10, %v1228_v55 }
 0x1c0   : > { %v1510_v4 = vadd.f32 %v1509_v56, %v1495_v26  ;;  %1588 = vst [vmem:[%s3231_s16 + $0x60] sm:$0xff] %v1495_v26  ;;  %v1344_v59 = vpop.f32.mrf.mxu2 }
 0x1c1   : > { %v1409_v47 = vpop.f32.mrf.mxu3 }
 0x1c2   : > { %v1410_v2 = vadd.f32 %v1409_v47, %v1344_v59  ;;  %v1233_v8 = vpop.f32.mrf.mxu1 }
 0x1c3   : > { %v1474_v14 = vpop.f32.mrf.mxu0  ;;  %v1234_v27 = vadd.f32 %v1233_v8, %v3213_v36 }
 0x1c4   : > { %v1475_v54 = vadd.f32 %v1474_v14, %v1410_v2 }
 0x1c6   : > { %v1496_v17 = vadd.f32 %v1475_v54, %v1231_v50 }
 0x1c8   : > { %v1511_v5 = vadd.f32 %v1510_v4, %v1496_v17  ;;  %1589 = vst [vmem:[%s3231_s16 + $0x68] sm:$0xff] %v1496_v17  ;;  %v1347_v41 = vpop.f32.mrf.mxu2 }
 0x1c9   : > { %v1412_v22 = vpop.f32.mrf.mxu3 }
 0x1ca   : > { %v1413_v46 = vadd.f32 %v1412_v22, %v1347_v41  ;;  %v1236_v52 = vpop.f32.mrf.mxu1 }
 0x1cb   : > { %v1477_v58 = vpop.f32.mrf.mxu0  ;;  %v1237_v39 = vadd.f32 %v1236_v52, %v3219_v33 }
 0x1cc   : > { %v1478_v61 = vadd.f32 %v1477_v58, %v1413_v46 }
 0x1ce   : > { %v1497_v9 = vadd.f32 %v1478_v61, %v1234_v27 }
 0x1d0   : > { %v1512_v24 = vadd.f32 %v1511_v5, %v1497_v9  ;;  %1590 = vst [vmem:[%s3231_s16 + $0x70] sm:$0xff] %v1497_v9  ;;  %v1350_v19 = vpop.f32.mrf.mxu2 }
 0x1d1   : > { %v1415_v38 = vpop.f32.mrf.mxu3 }
 0x1d2   : > { %v1416_v31 = vadd.f32 %v1415_v38, %v1350_v19 }
 0x1d3   : > { %v1480_v6 = vpop.f32.mrf.mxu0 }
 0x1d4   : > { %v1481_v32 = vadd.f32 %v1480_v6, %v1416_v31 }
 0x1d6   : > { %v1498_v63 = vadd.f32 %v1481_v32, %v1237_v39 }
 0x1d8   : > { %v1513_v23 = vadd.f32 %v1512_v24, %v1498_v63  ;;  %1591 = vst [vmem:[%s3231_s16 + $0x78] sm:$0xff] %v1498_v63 }
 0x1da   : > { %v1514_v40 = vrot.slane %v1513_v23, 4 }
 0x1dc   : > { %v1515_v11 = vadd.f32 %v1514_v40, %v1513_v23 }
 0x1de   : > { %v1516_v42 = vrot.slane %v1515_v11, 2 }
 0x1e0   : > { %v1517_v53 = vadd.f32 %v1516_v42, %v1515_v11 }
 0x1e2   : > { %v1518_v36 = vrot.slane %v1517_v53, 1 }
 0x1e4   : > { %v1519_v44 = vadd.f32 %v1518_v36, %v1517_v53 }
 0x1e6   : > { %v1520_v35 = vmul.f32 0.0078125, %v1519_v44 }
 0x1e8   : > { %v1521_v25 = vsub.f32 %v3233_v48, %v1520_v35  ;;  %v1522_v18 = vsub.f32 %v3239_v57, %v1520_v35  ;;  %v1531_v29 = vsub.f32 %v3297_v7, %v1520_v35  ;;  %v1532_v49 = vsub.f32 %v1494_v3, %v1520_v35 }
 0x1e9   : > { %v1533_v28 = vsub.f32 %v1495_v26, %v1520_v35  ;;  %v1534_v33 = vsub.f32 %v1496_v17, %v1520_v35  ;;  %v1535_v16 = vsub.f32 %v1497_v9, %v1520_v35  ;;  %v1536_v37 = vsub.f32 %v1498_v63, %v1520_v35 }
 0x1ea   : > { %v1523_v15 = vsub.f32 %v3245_v43, %v1520_v35  ;;  %v1537_v56 = vmul.f32 %v1521_v25, %v1521_v25  ;;  %v1538_v45 = vmul.f32 %v1522_v18, %v1522_v18  ;;  %v1524_v34 = vsub.f32 %v3251_v21, %v1520_v35 }
 0x1eb   : > { %v1525_v0 = vsub.f32 %v3257_v1, %v1520_v35  ;;  %v1526_v48 = vsub.f32 %v3263_v60, %v1520_v35  ;;  %v1527_v7 = vsub.f32 %v3269_v13, %v1520_v35  ;;  %v1528_v26 = vsub.f32 %v3275_v30, %v1520_v35 }
 0x1ec   : > { %v1539_v62 = vmul.f32 %v1523_v15, %v1523_v15  ;;  %v1553_v55 = vadd.f32 %v1538_v45, %v1537_v56  ;;  %v1540_v57 = vmul.f32 %v1524_v34, %v1524_v34  ;;  %v1529_v59 = vsub.f32 %v3280_v20, %v1520_v35 }
 0x1ed   : > { %v1541_v3 = vmul.f32 %v1525_v0, %v1525_v0  ;;  %v1542_v4 = vmul.f32 %v1526_v48, %v1526_v48  ;;  %v1543_v47 = vmul.f32 %v1527_v7, %v1527_v7  ;;  %v1530_v1 = vsub.f32 %v3288_v51, %v1520_v35 }
 0x1ee   : > { %v1554_v10 = vadd.f32 %v1553_v55, %v1539_v62  ;;  %v1544_v2 = vmul.f32 %v1528_v26, %v1528_v26  ;;  %v1545_v50 = vmul.f32 %v1529_v59, %v1529_v59  ;;  %v1547_v8 = vmul.f32 %v1531_v29, %v1531_v29 }
 0x1ef   : > { %v1546_v54 = vmul.f32 %v1530_v1, %v1530_v1  ;;  %v1548_v5 = vmul.f32 %v1532_v49, %v1532_v49  ;;  %v1549_v30 = vmul.f32 %v1533_v28, %v1533_v28  ;;  %v1550_v46 = vmul.f32 %v1534_v33, %v1534_v33 }
 0x1f0   : > { %v1555_v12 = vadd.f32 %v1554_v10, %v1540_v57  ;;  %v1551_v20 = vmul.f32 %v1535_v16, %v1535_v16  ;;  %v1552_v61 = vmul.f32 %v1536_v37, %v1536_v37 }
 0x1f2   : > { %v1556_v43 = vadd.f32 %v1555_v12, %v1541_v3 }
 0x1f4   : > { %v1557_v21 = vadd.f32 %v1556_v43, %v1542_v4 }
 0x1f6   : > { %v1558_v14 = vadd.f32 %v1557_v21, %v1543_v47 }
 0x1f8   : > { %v1559_v60 = vadd.f32 %v1558_v14, %v1544_v2 }
 0x1fa   : > { %v1560_v17 = vadd.f32 %v1559_v60, %v1545_v50 }
 0x1fc   : > { %v1561_v13 = vadd.f32 %v1560_v17, %v1546_v54 }
 0x1fe   : > { %v1562_v41 = vadd.f32 %v1561_v13, %v1547_v8 }
 0x200   : > { %v1563_v22 = vadd.f32 %v1562_v41, %v1548_v5 }
 0x202   : > { %v1564_v58 = vadd.f32 %v1563_v22, %v1549_v30 }
 0x204   : > { %v1565_v27 = vadd.f32 %v1564_v58, %v1550_v46 }
 0x206   : > { %v1566_v9 = vadd.f32 %v1565_v27, %v1551_v20 }
 0x208   : > { %v1567_v51 = vadd.f32 %v1566_v9, %v1552_v61 }
 0x20a   : > { %v1568_v24 = vrot.slane %v1567_v51, 4 }
 0x20c   : > { %v1569_v19 = vadd.f32 %v1568_v24, %v1567_v51 }
 0x20e   : > { %v1570_v52 = vrot.slane %v1569_v19, 2 }
 0x210   : > { %v1571_v38 = vadd.f32 %v1570_v52, %v1569_v19 }
 0x212   : > { %v1572_v31 = vrot.slane %v1571_v38, 1 }
 0x214   : > { %v1573_v6 = vadd.f32 %v1572_v31, %v1571_v38 }
 0x216   : > { %v1574_v39 = vsel %vm630_vm1, %v1519_v44, %v1573_v6 }
 0x217   : > { %1575 = vst [vmem:[%s467_s13] sm:$0x3] %v1574_v39 }
 0x218 PF: > { %s18_s28 = sadd.s32 1, %s2128_s28   ;;  %s3361_s24 = smov %s2120_s26 }
 0x219   : > { %p15_p12 = scmp.ge.s32.totalorder %s18_s28, 6   ;;  %s3362_s25 = smov %s2124_s27 }
 0x21a   : > { %s3363_s26 = smov %s3366_s29  ;;  %s3364_s27 = smov %s3370_s30 }
 0x21b   :  { %17 = sbr.rel (!%p15_p12) target bundleno = 3 (0x3), region = 96 }

// kernel: double_conv.3
= control target key start
LH: loop header
LB: loop body
LE: loop exit
PB: predicated region body
PF: predicated region fallthrough
CT: control target
= control target key end

     0   :  { %s2101_s23 = smov 0   ;;  %s2103_s1 = smov 0   ;;  %s3224_s0 = inlined_call_operand.vmem [shape: f32[1,128], index: 0, kind: input, shape index: {}]   ;;  %s3225_s1 = inlined_call_operand.vmem [shape: f32[1,128], index: 1, kind: input, shape index: {}]   ;;  %s3226_s2 = inlined_call_operand.vmem [shape: f32[2,16,16,128], index: 2, kind: input, shape index: {}, may-alias: {2,3,4}]   ;;  %s3227_s3 = inlined_call_operand.vmem [shape: f32[2,16,16,128], index: 3, kind: input, shape index: {}, may-alias: {2,3,4}]   ;;  %s3228_s4 = inlined_call_operand.vmem [shape: f32[2,16,16,128], index: 4, kind: input, shape index: {}, may-alias: {2,3,4}]   ;;  %s3229_s5 = inlined_call_operand.vmem [shape: f32[3,384,128], index: 5, kind: input, shape index: {}]   ;;  %s3230_s6 = inlined_call_operand.vmem [shape: f32[2,16,16,128], index: 6, kind: output, shape index: {0}]   ;;  %s3231_s7 = inlined_call_operand.vmem [shape: f32[2,2,2,128], index: 7, kind: output, shape index: {1}]  }
   0x1   :  { %s2105_s24 = smov 0   ;;  %s2107_s25 = smov 0  }
   0x2   :  { %s2109_s26 = smov 0  }
   0x3 LB: > { %s27_s27 = sadd.s32 1, %s2051_s24  ;;  %s30_s28 = sadd.s32 1, %s2055_s25  ;;  %s2059_s26 = sphi %s2109_s26, %s18_s26   ;;  %s2055_s25 = sphi %s2107_s25, %s3242_s25   ;;  %s2051_s24 = sphi %s2105_s24, %s3241_s24   ;;  %s2047_s1 = sphi %s2103_s1, %s3240_s1   ;;  %s2043_s23 = sphi %s2101_s23, %s3239_s23  }
   0x4   : > { %p28_p0 = scmp.ge.s32.totalorder %s27_s27, 2  ;;  %p1722_p1 = scmp.ge.s32.totalorder %s2059_s26, 1 }
   0x5   : > { %p328_p2 = scmp.lt.s32.totalorder %s2059_s26, 5 }
   0x6   : > { %s3244_s27 = smov (%p28_p0, %s27_s27), 0  ;;  %s3246_s28 = smov (!%p28_p0, %s30_s28), %s2055_s25 }
   0x7   : > { %p329_p3 = pnand %p1722_p1, %p328_p2  ;;  %p32_p4 = scmp.ge.s32.totalorder %s3246_s28, 2 }
   0x8   : > { %s2148_s14 = sshll.u32 (!%p329_p3), %s2043_s23, 3  ;;  %p405_p5 = scmp.lt.s32.totalorder (!%p329_p3), %s2047_s1, 1 }
   0x9   : > { %s3248_s28 = smov (%p32_p4, %s3246_s28), 0  ;;  %332 = sbr.rel (%p329_p3) target bundleno = 536 (0x218), region = 44 }
   0xa   : > { %s2155_s17 = sadd.s32 (!%p329_p3), 4294967295, %s2148_s14  ;;  %p407_p6 = scmp.lt.s32.totalorder (!%p329_p3), %s2148_s14, 15 }
   0xb   : > { %p417_p7 = scmp.gt.s32.totalorder (!%p329_p3), %s2155_s17, 0  ;;  %p1729_p8 = scmp.lt.s32.totalorder (!%p329_p3), %s2155_s17, 15 }
   0xc   : > { %p488_p9 = scmp.gt.s32.totalorder (!%p329_p3), %s2043_s23, 0  ;;  %p462_p11 = scmp.lt.s32.totalorder (!%p329_p3), %s2043_s23, 1 }
   0xe   : > { %v1765_v0 = vld [vmem:[%s3229_s5 + $0x1f8] sm:$0xff]  ;;  %v1764_v1 = vld [vmem:[%s3229_s5 + $0x1f0] sm:$0xff]  ;;  %v1763_v2 = vld [vmem:[%s3229_s5 + $0x1e8] sm:$0xff]  ;;  %s3250_s1 = smov (!%p405_p5, %s2047_s1), 1  ;;  %vm562_vm1 = vcmask 1040384   ;;  %vm623_vm4 = vcmask 1046528  }
   0xf   : > { %1932 = vmatpush.msra.mxu1 %v1765_v0  ;;  %1933 = vmatpush.msra.mxu2 %v1765_v0  ;;  %v1762_v3 = vld [vmem:[%s3229_s5 + $0x1e0] sm:$0xff]  ;;  %v1761_v4 = vld [vmem:[%s3229_s5 + $0x1d8] sm:$0xff]  ;;  %v1760_v5 = vld [vmem:[%s3229_s5 + $0x1d0] sm:$0xff]  ;;  %s408_s29 = scalar_select %p407_p6, %s2148_s14, 15 }
  0x10   : > { %1934 = vmatpush.msra.mxu3 %v1765_v0  ;;  %781 = vmatpush.msra.mxu0 %v1765_v0  ;;  %v1759_v6 = vld [vmem:[%s3229_s5 + $0x1c8] sm:$0xff]  ;;  %v1758_v7 = vld [vmem:[%s3229_s5 + $0x1c0] sm:$0xff]  ;;  %v1757_v8 = vld [vmem:[%s3229_s5 + $0x1b8] sm:$0xff]  ;;  %s418_s9 = scalar_select %p417_p7, %s2155_s17, 0 }
  0x11   : > { %1935 = vmatpush.msra.mxu1 %v1764_v1  ;;  %1936 = vmatpush.msra.mxu2 %v1764_v1  ;;  %v1756_v9 = vld [vmem:[%s3229_s5 + $0x1b0] sm:$0xff]  ;;  %s1724_s12 = sshll.u32 %s408_s29, 1  ;;  %s2185_s13 = sshll.u32 %s3250_s1, 5  ;;  %v1755_v10 = vld [vmem:[%s3229_s5 + $0x1a8] sm:$0xff]  ;;  %v1754_v11 = vld [vmem:[%s3229_s5 + $0x1a0] sm:$0xff] }
  0x12   : > { %1937 = vmatpush.msra.mxu3 %v1764_v1  ;;  %782 = vmatpush.msra.mxu0 %v1764_v1  ;;  %s3252_s9 = smov (!%p1729_p8, %s418_s9), 15  ;;  %s2196_s20 = sadd.s32 %s2185_s13, %s1724_s12  ;;  %v1753_v12 = vld [vmem:[%s3229_s5 + $0x198] sm:$0xff]  ;;  %v1752_v13 = vld [vmem:[%s3229_s5 + $0x190] sm:$0xff]  ;;  %v1751_v14 = vld [vmem:[%s3229_s5 + $0x188] sm:$0xff] }
  0x13   : > { %1938 = vmatpush.msra.mxu1 %v1763_v2  ;;  %1939 = vmatpush.msra.mxu2 %v1763_v2  ;;  %s1734_s17 = sshll.u32 %s3252_s9, 1  ;;  %s1726_s0 = sshll.u32 %s2196_s20, 3  ;;  %v1750_v15 = vld [vmem:[%s3229_s5 + $0x180] sm:$0xff]  ;;  %v1797_v19 = vld [vmem:[%s3229_s5 + $0x2f8] sm:$0xff]  ;;  %v1796_v23 = vld [vmem:[%s3229_s5 + $0x2f0] sm:$0xff] }
  0x14   : > { %1940 = vmatpush.msra.mxu3 %v1763_v2  ;;  %783 = vmatpush.msra.mxu0 %v1763_v2  ;;  %s425_s8 = sadd.s32 %s1734_s17, %s2185_s13  ;;  %s2215_s15 = scalar_lea.vmem %s3226_s2, %s1726_s0  ;;  %v699_v20 = vld [vmem:[%s3229_s5 + $0x78] sm:$0xff]  ;;  %v698_v24 = vld [vmem:[%s3229_s5 + $0x70] sm:$0xff]  ;;  %v1795_v28 = vld [vmem:[%s3229_s5 + $0x2e8] sm:$0xff] }
  0x15   : > { %1941 = vmatpush.msra.mxu1 %v1762_v3  ;;  %1942 = vmatpush.msra.mxu2 %v1762_v3  ;;  %s489_s16 = scalar_select %p488_p9, 1, 0  ;;  %v2221_v16 = vld [vmem:[%s2215_s15 + $0x10] sm:$0xff]  ;;  %v1781_v22 = vld [vmem:[%s3229_s5 + $0x278] sm:$0xff]  ;;  %v697_v29 = vld [vmem:[%s3229_s5 + $0x68] sm:$0xff] }
  0x16   : > { %1943 = vmatpush.msra.mxu3 %v1762_v3  ;;  %784 = vmatpush.msra.mxu0 %v1762_v3  ;;  %s1736_s21 = sshll.u32 %s425_s8, 3  ;;  %v2224_v17 = vld [vmem:[%s2215_s15 + $0x30] sm:$0xff]  ;;  %v1779_v30 = vld [vmem:[%s3229_s5 + $0x268] sm:$0xff]  ;;  %v715_v31 = vld [vmem:[%s3229_s5 + $0xf8] sm:$0xff]  ;;  %s3109_s9 = scalar_lea.vmem %s3230_s6, %s1726_s0 }
  0x17   : > { %1944 = vmatpush.msra.mxu1 %v1761_v4  ;;  %1945 = vmatpush.msra.mxu2 %v1761_v4  ;;  %v2227_v18 = vld [vmem:[%s2215_s15 + $0x50] sm:$0xff]  ;;  %s2238_s11 = scalar_lea.vmem %s3227_s3, %s1736_s21  ;;  %v490_v21 = vstv %s489_s16  ;;  %v1794_v32 = vld [vmem:[%s3229_s5 + $0x2e0] sm:$0xff]  ;;  %v2287_v35 = vld [vmem:[%s2215_s15 + $0x38] sm:$0xff]  ;;  %s1927_s16 = sadd.s32 8, %s2148_s14 }
  0x18   : > { %1946 = vmatpush.msra.mxu3 %v1761_v4  ;;  %785 = vmatpush.msra.mxu0 %v1761_v4  ;;  %v1780_v25 = vld [vmem:[%s3229_s5 + $0x270] sm:$0xff]  ;;  %v2256_v26 = vld [vmem:[%s2238_s11] sm:$0xff]  ;;  %vm2258_vm0 = vcmp.eq.s32.totalorder %v490_v21, 1  ;;  %v2290_v36 = vld [vmem:[%s2215_s15 + $0x18] sm:$0xff]  ;;  %p2335_p10 = scmp.lt.s32.totalorder %s1927_s16, 15  ;;  %s1748_s14 = sshll.u32 %s3250_s1, 1 }
  0x19   : > { %1947 = vmatpush.msra.mxu1 %v1760_v5  ;;  %1948 = vmatpush.msra.mxu2 %v1760_v5  ;;  %v696_v33 = vld [vmem:[%s3229_s5 + $0x60] sm:$0xff]  ;;  %v2293_v37 = vld [vmem:[%s2215_s15 + $0x58] sm:$0xff]  ;;  %v714_v41 = vld [vmem:[%s3229_s5 + $0xf0] sm:$0xff]  ;;  %s463_s29 = scalar_select %p462_p11, %s2043_s23, 1 }
  0x1a   : > { %1949 = vmatpush.msra.mxu3 %v1760_v5  ;;  %786 = vmatpush.msra.mxu0 %v1760_v5  ;;  %v1778_v34 = vld [vmem:[%s3229_s5 + $0x260] sm:$0xff]  ;;  %v1793_v38 = vld [vmem:[%s3229_s5 + $0x2d8] sm:$0xff]  ;;  %v1792_v42 = vld [vmem:[%s3229_s5 + $0x2d0] sm:$0xff]  ;;  %s3254_s16 = smov (!%p2335_p10, %s1927_s16), 15 }
  0x1b   : > { %1950 = vmatpush.msra.mxu1 %v1759_v6  ;;  %1951 = vmatpush.msra.mxu2 %v1759_v6  ;;  %v695_v39 = vld [vmem:[%s3229_s5 + $0x58] sm:$0xff]  ;;  %v694_v43 = vld [vmem:[%s3229_s5 + $0x50] sm:$0xff]  ;;  %v713_v45 = vld [vmem:[%s3229_s5 + $0xe8] sm:$0xff]  ;;  %s3256_s16 = smov (!%p2335_p10, %s3254_s16), 15  ;;  %s2430_s19 = sadd.s32 %s1748_s14, %s463_s29 }
  0x1c   : > { %1952 = vmatpush.msra.mxu3 %v1759_v6  ;;  %787 = vmatpush.msra.mxu0 %v1759_v6  ;;  %v1777_v40 = vld [vmem:[%s3229_s5 + $0x258] sm:$0xff]  ;;  %v1776_v44 = vld [vmem:[%s3229_s5 + $0x250] sm:$0xff]  ;;  %v1791_v46 = vld [vmem:[%s3229_s5 + $0x2c8] sm:$0xff]  ;;  %s2384_s18 = sshll.u32 %s3256_s16, 1  ;;  %s1749_s20 = sshll.u32 %s2430_s19, 1 }
  0x1d   : > { %1953 = vmatpush.msra.mxu1 %v1758_v7  ;;  %1954 = vmatpush.msra.mxu2 %v1758_v7  ;;  %v693_v47 = vld [vmem:[%s3229_s5 + $0x48] sm:$0xff]  ;;  %v712_v49 = vld [vmem:[%s3229_s5 + $0xe0] sm:$0xff]  ;;  %v1789_v57 = vld [vmem:[%s3229_s5 + $0x2b8] sm:$0xff]  ;;  %s495_s16 = scalar_select %p462_p11, 1, 0 }
  0x1e   : > { %1955 = vmatpush.msra.mxu3 %v1758_v7  ;;  %788 = vmatpush.msra.mxu0 %v1758_v7  ;;  %v1775_v48 = vld [vmem:[%s3229_s5 + $0x248] sm:$0xff]  ;;  %v1790_v50 = vld [vmem:[%s3229_s5 + $0x2c0] sm:$0xff]  ;;  %v691_v58 = vld [vmem:[%s3229_s5 + $0x38] sm:$0xff]  ;;  %s467_s1 = scalar_lea.vmem %s3231_s7, %s1749_s20 }
  0x1f   : > { %1956 = vmatpush.msra.mxu1 %v1757_v8  ;;  %1957 = vmatpush.msra.mxu2 %v1757_v8  ;;  %v692_v51 = vld [vmem:[%s3229_s5 + $0x40] sm:$0xff]  ;;  %v2349_v53 = vld [vmem:[%s2238_s11 + $0x8] sm:$0xff]  ;;  %v711_v59 = vld [vmem:[%s3229_s5 + $0xd8] sm:$0xff]  ;;  %s442_s11 = sadd.s32 %s2384_s18, %s2185_s13 }
  0x20   : > { %1958 = vmatpush.msra.mxu3 %v1757_v8  ;;  %789 = vmatpush.msra.mxu0 %v1757_v8  ;;  %v1774_v52 = vld [vmem:[%s3229_s5 + $0x240] sm:$0xff]  ;;  %v1773_v60 = vld [vmem:[%s3229_s5 + $0x238] sm:$0xff]  ;;  %v1788_v61 = vld [vmem:[%s3229_s5 + $0x2b0] sm:$0xff]  ;;  %s1743_s29 = sshll.u32 %s442_s11, 3 }
  0x21   : > { %1959 = vmatpush.msra.mxu1 %v1756_v9  ;;  %1960 = vmatpush.msra.mxu2 %v1756_v9  ;;  %v2354_v54 = vld [vmem:[%s2215_s15 + $0x20] sm:$0xff]  ;;  %v690_v62 = vld [vmem:[%s3229_s5 + $0x30] sm:$0xff]  ;;  %v1787_v1 = vld [vmem:[%s3229_s5 + $0x2a8] sm:$0xff]  ;;  %s444_s10 = scalar_lea.vmem %s3228_s4, %s1743_s29 }
  0x22   : > { %1961 = vmatpush.msra.mxu3 %v1756_v9  ;;  %790 = vmatpush.msra.mxu0 %v1756_v9  ;;  %v2357_v55 = vld [vmem:[%s2215_s15 + $0x40] sm:$0xff]  ;;  %v710_v63 = vld [vmem:[%s3229_s5 + $0xd0] sm:$0xff]  ;;  %v689_v2 = vld [vmem:[%s3229_s5 + $0x28] sm:$0xff] }
  0x23   : > { %1962 = vmatpush.msra.mxu1 %v1755_v10  ;;  %1963 = vmatpush.msra.mxu2 %v1755_v10  ;;  %v2360_v56 = vld [vmem:[%s2215_s15 + $0x60] sm:$0xff]  ;;  %v1772_v0 = vld [vmem:[%s3229_s5 + $0x230] sm:$0xff]  ;;  %v709_v3 = vld [vmem:[%s3229_s5 + $0xc8] sm:$0xff] }
  0x24   : > { %1964 = vmatpush.msra.mxu3 %v1755_v10  ;;  %791 = vmatpush.msra.mxu0 %v1755_v10  ;;  %v1771_v4 = vld [vmem:[%s3229_s5 + $0x228] sm:$0xff]  ;;  %v1786_v5 = vld [vmem:[%s3229_s5 + $0x2a0] sm:$0xff]  ;;  %v686_v21 = vld [vmem:[%s3229_s5 + $0x10] sm:$0xff] }
  0x25   : > { %1965 = vmatpush.msra.mxu1 %v1754_v11  ;;  %1966 = vmatpush.msra.mxu2 %v1754_v11  ;;  %v688_v6 = vld [vmem:[%s3229_s5 + $0x20] sm:$0xff]  ;;  %v2433_v10 = vld [vmem:[%s2215_s15 + $0x28] sm:$0xff]  ;;  %vm2503_vm2 = vmneg %vm562_vm1 }
  0x26   : > { %1967 = vmatpush.msra.mxu3 %v1754_v11  ;;  %792 = vmatpush.msra.mxu0 %v1754_v11  ;;  %v708_v7 = vld [vmem:[%s3229_s5 + $0xc0] sm:$0xff]  ;;  %v2436_v11 = vld [vmem:[%s2215_s15 + $0x48] sm:$0xff]  ;;  %v702_v27 = vld [vmem:[%s3229_s5 + $0x90] sm:$0xff] }
  0x27   : > { %1968 = vmatpush.msra.mxu1 %v1753_v12  ;;  %1969 = vmatpush.msra.mxu2 %v1753_v12  ;;  %v1770_v8 = vld [vmem:[%s3229_s5 + $0x220] sm:$0xff] }
  0x28   : > { %1970 = vmatpush.msra.mxu3 %v1753_v12  ;;  %793 = vmatpush.msra.mxu0 %v1753_v12  ;;  %v2428_v9 = vld [vmem:[%s2215_s15] sm:$0xff]  ;;  %v2439_v12 = vld [vmem:[%s2215_s15 + $0x68] sm:$0xff] }
  0x29   : > { %1971 = vmatpush.msra.mxu1 %v1752_v13  ;;  %1972 = vmatpush.msra.mxu2 %v1752_v13 }
  0x2a   : > { %1973 = vmatpush.msra.mxu3 %v1752_v13  ;;  %794 = vmatpush.msra.mxu0 %v1752_v13  ;;  %v1785_v13 = vld [vmem:[%s3229_s5 + $0x298] sm:$0xff] }
  0x2b   : > { %1974 = vmatpush.msra.mxu1 %v1751_v14  ;;  %1975 = vmatpush.msra.mxu2 %v1751_v14 }
  0x2c   : > { %1976 = vmatpush.msra.mxu3 %v1751_v14  ;;  %795 = vmatpush.msra.mxu0 %v1751_v14  ;;  %v687_v14 = vld [vmem:[%s3229_s5 + $0x18] sm:$0xff] }
  0x2d   : > { %1977 = vmatpush.msra.mxu1 %v1750_v15  ;;  %1978 = vmatpush.msra.mxu2 %v1750_v15 }
  0x2e   : > { %1979 = vmatpush.msra.mxu3 %v1750_v15  ;;  %809 = vmatmul.f32.vlgmr.msra.gmra.mxu1 %v2221_v16 }
  0x2f   : > { %821 = vmatmul.f32.vlgmr.msra.gmra.mxu2 %v2224_v17  ;;  %833 = vmatmul.f32.vlgmr.msra.gmra.mxu3 %v2227_v18 }
  0x30   : > { %911 = vmatpush.msrb.mxu2 %v1797_v19  ;;  %976 = vmatpush.msrb.mxu3 %v699_v20  ;;  %v1769_v19 = vld [vmem:[%s3229_s5 + $0x218] sm:$0xff]  ;;  %v1784_v20 = vld [vmem:[%s3229_s5 + $0x290] sm:$0xff] }
  0x31   : > { %846 = vmatpush.msrb.mxu1 %v1781_v22  ;;  %796 = vmatpush.msra.mxu0 %v1750_v15  ;;  %v707_v15 = vld [vmem:[%s3229_s5 + $0xb8] sm:$0xff]  ;;  %v706_v22 = vld [vmem:[%s3229_s5 + $0xb0] sm:$0xff] }
  0x32   : > { %912 = vmatpush.msrb.mxu2 %v1796_v23  ;;  %977 = vmatpush.msrb.mxu3 %v698_v24  ;;  %v1768_v23 = vld [vmem:[%s3229_s5 + $0x210] sm:$0xff]  ;;  %v1783_v24 = vld [vmem:[%s3229_s5 + $0x288] sm:$0xff] }
  0x33   : > { %847 = vmatpush.msrb.mxu1 %v1780_v25  ;;  %1928 = vmatmul.msk.f32.vlgmr.msra.gmra.mxu0 %vm2258_vm0, %v2256_v26  ;;  %v685_v25 = vld [vmem:[%s3229_s5 + $0x8] sm:$0xff] }
  0x34   : > { %913 = vmatpush.msrb.mxu2 %v1795_v28  ;;  %978 = vmatpush.msrb.mxu3 %v697_v29  ;;  %v705_v28 = vld [vmem:[%s3229_s5 + $0xa8] sm:$0xff]  ;;  %v2481_v29 = vsel %vm2258_vm0, %v2256_v26, 0.0  ;;  %v704_v26 = vld [vmem:[%s3229_s5 + $0xa0] sm:$0xff] }
  0x35   : > { %848 = vmatpush.msrb.mxu1 %v1779_v30  ;;  %1041 = vmatpush.msrb.mxu0 %v715_v31  ;;  %v1767_v30 = vld [vmem:[%s3229_s5 + $0x208] sm:$0xff]  ;;  %v1782_v31 = vld [vmem:[%s3229_s5 + $0x280] sm:$0xff] }
  0x36   : > { %914 = vmatpush.msrb.mxu2 %v1794_v32  ;;  %979 = vmatpush.msrb.mxu3 %v696_v33  ;;  %v684_v32 = vld [vmem:[%s3229_s5] sm:$0xff] }
  0x37   : > { %849 = vmatpush.msrb.mxu1 %v1778_v34  ;;  %824 = vmatmul.f32.gmra.mxu2 %v2287_v35  ;;  %v1766_v33 = vld [vmem:[%s3229_s5 + $0x200] sm:$0xff]  ;;  %v2499_v34 = vld [vmem:[%s2215_s15 + $0x8] sm:$0xff] }
  0x38   : > { %812 = vmatmul.f32.gmra.mxu1 %v2290_v36  ;;  %836 = vmatmul.f32.gmra.mxu3 %v2293_v37 }
  0x39   : > { %915 = vmatpush.msrb.mxu2 %v1793_v38  ;;  %980 = vmatpush.msrb.mxu3 %v695_v39  ;;  %v563_v38 = vrot.slane %v2481_v29, 7 }
  0x3a   : > { %850 = vmatpush.msrb.mxu1 %v1777_v40  ;;  %1042 = vmatpush.msrb.mxu0 %v714_v41  ;;  %v703_v40 = vld [vmem:[%s3229_s5 + $0x98] sm:$0xff]  ;;  %v2513_v41 = vsel %vm2258_vm0, %v2349_v53, 0.0 }
  0x3b   : > { %916 = vmatpush.msrb.mxu2 %v1792_v42  ;;  %981 = vmatpush.msrb.mxu3 %v694_v43  ;;  %v1861_v42 = vld [vmem:[%s3229_s5 + $0x378] sm:$0xff] }
  0x3c   : > { %851 = vmatpush.msrb.mxu1 %v1776_v44  ;;  %1043 = vmatpush.msrb.mxu0 %v713_v45  ;;  %v1877_v43 = vld [vmem:[%s3229_s5 + $0x3f8] sm:$0xff]  ;;  %v1860_v45 = vld [vmem:[%s3229_s5 + $0x370] sm:$0xff] }
  0x3d   : > { %917 = vmatpush.msrb.mxu2 %v1791_v46  ;;  %982 = vmatpush.msrb.mxu3 %v693_v47  ;;  %v731_v44 = vld [vmem:[%s3229_s5 + $0x178] sm:$0xff]  ;;  %v1876_v46 = vld [vmem:[%s3229_s5 + $0x3f0] sm:$0xff]  ;;  %v564_v47 = vrot.slane %v2513_v41, 7 }
  0x3e   : > { %852 = vmatpush.msrb.mxu1 %v1775_v48  ;;  %1044 = vmatpush.msrb.mxu0 %v712_v49  ;;  %v701_v48 = vld [vmem:[%s3229_s5 + $0x88] sm:$0xff]  ;;  %v730_v49 = vld [vmem:[%s3229_s5 + $0x170] sm:$0xff] }
  0x3f   : > { %918 = vmatpush.msrb.mxu2 %v1790_v50  ;;  %983 = vmatpush.msrb.mxu3 %v692_v51  ;;  %v1859_v50 = vld [vmem:[%s3229_s5 + $0x368] sm:$0xff] }
  0x40   : > { %853 = vmatpush.msrb.mxu1 %v1774_v52  ;;  %1929 = vmatmul.msk.f32.gmra.mxu0 %vm2258_vm0, %v2349_v53  ;;  %v1875_v51 = vld [vmem:[%s3229_s5 + $0x3e8] sm:$0xff]  ;;  %v700_v52 = vld [vmem:[%s3229_s5 + $0x80] sm:$0xff] }
  0x41   : > { %815 = vmatmul.f32.gmra.mxu1 %v2354_v54  ;;  %827 = vmatmul.f32.gmra.mxu2 %v2357_v55  ;;  %v729_v53 = vld [vmem:[%s3229_s5 + $0x168] sm:$0xff] }
  0x42   : > { %839 = vmatmul.f32.gmra.mxu3 %v2360_v56  ;;  %919 = vmatpush.msrb.mxu2 %v1789_v57  ;;  %v566_v57 = vrot.slane %v2428_v9, 7 }
  0x43   : > { %984 = vmatpush.msrb.mxu3 %v691_v58  ;;  %1045 = vmatpush.msrb.mxu0 %v711_v59  ;;  %v565_v58 = vsel %vm562_vm1, %v563_v38, %v564_v47  ;;  %v1893_v59 = vld [vmem:[%s3229_s5 + $0x478] sm:$0xff]  ;;  %v1851_v47 = vld [vmem:[%s3229_s5 + $0x328] sm:$0xff] }
  0x44   : > { %854 = vmatpush.msrb.mxu1 %v1773_v60  ;;  %920 = vmatpush.msrb.mxu2 %v1788_v61  ;;  %v1858_v60 = vld [vmem:[%s3229_s5 + $0x360] sm:$0xff] }
  0x45   : > { %985 = vmatpush.msrb.mxu3 %v690_v62  ;;  %1046 = vmatpush.msrb.mxu0 %v710_v63  ;;  %v1874_v61 = vld [vmem:[%s3229_s5 + $0x3e0] sm:$0xff]  ;;  %v1892_v63 = vld [vmem:[%s3229_s5 + $0x470] sm:$0xff] }
  0x46   : > { %855 = vmatpush.msrb.mxu1 %v1772_v0  ;;  %921 = vmatpush.msrb.mxu2 %v1787_v1  ;;  %v728_v62 = vld [vmem:[%s3229_s5 + $0x160] sm:$0xff]  ;;  %v1857_v0 = vld [vmem:[%s3229_s5 + $0x358] sm:$0xff]  ;;  %v567_v1 = vrot.slane %v2499_v34, 7 }
  0x47   : > { %986 = vmatpush.msrb.mxu3 %v689_v2  ;;  %1047 = vmatpush.msrb.mxu0 %v709_v3  ;;  %v1873_v2 = vld [vmem:[%s3229_s5 + $0x3d8] sm:$0xff] }
  0x48   : > { %856 = vmatpush.msrb.mxu1 %v1771_v4  ;;  %922 = vmatpush.msrb.mxu2 %v1786_v5  ;;  %v727_v3 = vld [vmem:[%s3229_s5 + $0x158] sm:$0xff]  ;;  %v1891_v4 = vld [vmem:[%s3229_s5 + $0x468] sm:$0xff]  ;;  %v1856_v5 = vld [vmem:[%s3229_s5 + $0x350] sm:$0xff] }
  0x49   : > { %987 = vmatpush.msrb.mxu3 %v688_v6  ;;  %1048 = vmatpush.msrb.mxu0 %v708_v7  ;;  %v1872_v6 = vld [vmem:[%s3229_s5 + $0x3d0] sm:$0xff]  ;;  %v568_v7 = vsel %vm562_vm1, %v566_v57, %v567_v1  ;;  %v719_v1 = vld [vmem:[%s3229_s5 + $0x118] sm:$0xff] }
  0x4a   : > { %857 = vmatpush.msrb.mxu1 %v1770_v8  ;;  %803 = vmatmul.f32.gmra.mxu0 %v2428_v9  ;;  %v1890_v8 = vld [vmem:[%s3229_s5 + $0x460] sm:$0xff] }
  0x4b   : > { %818 = vmatmul.f32.gmra.mxu1 %v2433_v10  ;;  %830 = vmatmul.f32.gmra.mxu2 %v2436_v11 }
  0x4c   : > { %842 = vmatmul.f32.gmra.mxu3 %v2439_v12  ;;  %923 = vmatpush.msrb.mxu2 %v1785_v13  ;;  %v1889_v13 = vld [vmem:[%s3229_s5 + $0x458] sm:$0xff] }
  0x4d   : > { %988 = vmatpush.msrb.mxu3 %v687_v14  ;;  %1049 = vmatpush.msrb.mxu0 %v707_v15  ;;  %v726_v14 = vld [vmem:[%s3229_s5 + $0x150] sm:$0xff]  ;;  %v1855_v15 = vld [vmem:[%s3229_s5 + $0x348] sm:$0xff] }
  0x4e   : > { %858 = vmatpush.msrb.mxu1 %v1769_v19  ;;  %924 = vmatpush.msrb.mxu2 %v1784_v20  ;;  %v1871_v19 = vld [vmem:[%s3229_s5 + $0x3c8] sm:$0xff]  ;;  %v1888_v20 = vld [vmem:[%s3229_s5 + $0x450] sm:$0xff] }
  0x4f   : > { %989 = vmatpush.msrb.mxu3 %v686_v21  ;;  %1050 = vmatpush.msrb.mxu0 %v706_v22  ;;  %v2621_v21 = vrot.slane %v2221_v16, 7  ;;  %v725_v22 = vld [vmem:[%s3229_s5 + $0x148] sm:$0xff] }
  0x50   : > { %859 = vmatpush.msrb.mxu1 %v1768_v23  ;;  %925 = vmatpush.msrb.mxu2 %v1783_v24  ;;  %v1854_v23 = vld [vmem:[%s3229_s5 + $0x340] sm:$0xff] }
  0x51   : > { %990 = vmatpush.msrb.mxu3 %v685_v25  ;;  %1051 = vmatpush.msrb.mxu0 %v705_v28  ;;  %v1870_v24 = vld [vmem:[%s3229_s5 + $0x3c0] sm:$0xff]  ;;  %v570_v25 = vrot.slane %v2290_v36, 7  ;;  %v1887_v28 = vld [vmem:[%s3229_s5 + $0x448] sm:$0xff] }
  0x52   : > { %860 = vmatpush.msrb.mxu1 %v1767_v30  ;;  %926 = vmatpush.msrb.mxu2 %v1782_v31  ;;  %v724_v31 = vld [vmem:[%s3229_s5 + $0x140] sm:$0xff] }
  0x53   : > { %991 = vmatpush.msrb.mxu3 %v684_v32  ;;  %1052 = vmatpush.msrb.mxu0 %v704_v26  ;;  %v2643_v30 = vsel %vm562_vm1, %v2621_v21, %v570_v25  ;;  %v1853_v32 = vld [vmem:[%s3229_s5 + $0x338] sm:$0xff]  ;;  %v487_v25 = vld [vmem:[%s444_s10 + $0x8] sm:$0xff] }
  0x54   : > { %861 = vmatpush.msrb.mxu1 %v1766_v33  ;;  %806 = vmatmul.f32.gmra.mxu0 %v2499_v34  ;;  %v1869_v26 = vld [vmem:[%s3229_s5 + $0x3b8] sm:$0xff]  ;;  %v1886_v33 = vld [vmem:[%s3229_s5 + $0x440] sm:$0xff] }
  0x55   : > { %862 = vmatmul.f32.vlgmr.msrb.gmra.mxu1 %v2428_v9  ;;  %927 = vmatmul.f32.vlgmr.msrb.gmra.mxu2 %v2221_v16 }
  0x56   : > { %1799 = vmatmul.msk.f32.vlgmr.msrb.gmra.mxu3 %vm2503_vm2, %v563_v38  ;;  %1053 = vmatpush.msrb.mxu0 %v703_v40  ;;  %v2664_v38 = vrot.slane %v2354_v54, 7  ;;  %v723_v40 = vld [vmem:[%s3229_s5 + $0x138] sm:$0xff] }
  0x57   : > { %1220 = vmatpush.msra.mxu2 %v1861_v42  ;;  %1285 = vmatpush.msra.mxu3 %v1877_v43  ;;  %v1852_v42 = vld [vmem:[%s3229_s5 + $0x330] sm:$0xff] }
  0x58   : > { %1054 = vmatpush.msrb.mxu0 %v702_v27  ;;  %1106 = vmatpush.msra.mxu1 %v731_v44  ;;  %v1868_v43 = vld [vmem:[%s3229_s5 + $0x3b0] sm:$0xff]  ;;  %v573_v27 = vrot.slane %v2433_v10, 7  ;;  %v1885_v44 = vld [vmem:[%s3229_s5 + $0x438] sm:$0xff] }
  0x59   : > { %1221 = vmatpush.msra.mxu2 %v1860_v45  ;;  %1286 = vmatpush.msra.mxu3 %v1876_v46  ;;  %v722_v46 = vld [vmem:[%s3229_s5 + $0x130] sm:$0xff] }
  0x5a   : > { %1055 = vmatpush.msrb.mxu0 %v701_v48  ;;  %1107 = vmatpush.msra.mxu1 %v730_v49  ;;  %v2687_v45 = vsel %vm562_vm1, %v2664_v38, %v573_v27  ;;  %v1867_v48 = vld [vmem:[%s3229_s5 + $0x3a8] sm:$0xff]  ;;  %v1884_v49 = vld [vmem:[%s3229_s5 + $0x430] sm:$0xff]  ;;  %v2846_v27 = vrot.slane %v2499_v34, 1 }
  0x5b   : > { %1222 = vmatpush.msra.mxu2 %v1859_v50  ;;  %1287 = vmatpush.msra.mxu3 %v1875_v51  ;;  %v2708_v50 = vrot.slane %v2224_v17, 7  ;;  %v721_v51 = vld [vmem:[%s3229_s5 + $0x128] sm:$0xff] }
  0x5c   : > { %1056 = vmatpush.msrb.mxu0 %v700_v52  ;;  %1108 = vmatpush.msra.mxu1 %v729_v53  ;;  %v1850_v52 = vld [vmem:[%s3229_s5 + $0x320] sm:$0xff] }
  0x5d   : > { %865 = vmatmul.f32.gmra.mxu1 %v2499_v34  ;;  %930 = vmatmul.f32.gmra.mxu2 %v2290_v36  ;;  %v1866_v53 = vld [vmem:[%s3229_s5 + $0x3a0] sm:$0xff] }
  0x5e   : > { %995 = vmatmul.f32.gmra.mxu3 %v565_v58  ;;  %1815 = vmatmul.msk.f32.vlgmr.msrb.gmra.mxu0 %vm2503_vm2, %v566_v57  ;;  %v1883_v58 = vld [vmem:[%s3229_s5 + $0x428] sm:$0xff] }
  0x5f   : > { %1350 = vmatpush.msra.mxu0 %v1893_v59  ;;  %1223 = vmatpush.msra.mxu2 %v1858_v60  ;;  %v720_v60 = vld [vmem:[%s3229_s5 + $0x120] sm:$0xff] }
  0x60   : > { %1288 = vmatpush.msra.mxu3 %v1874_v61  ;;  %1109 = vmatpush.msra.mxu1 %v728_v62  ;;  %v1849_v61 = vld [vmem:[%s3229_s5 + $0x318] sm:$0xff] }
  0x61   : > { %1351 = vmatpush.msra.mxu0 %v1892_v63  ;;  %1224 = vmatpush.msra.mxu2 %v1857_v0  ;;  %v1865_v62 = vld [vmem:[%s3229_s5 + $0x398] sm:$0xff]  ;;  %v1882_v63 = vld [vmem:[%s3229_s5 + $0x420] sm:$0xff]  ;;  %v2752_v0 = vrot.slane %v2357_v55, 7 }
  0x62   : > { %1289 = vmatpush.msra.mxu3 %v1873_v2  ;;  %1110 = vmatpush.msra.mxu1 %v727_v3  ;;  %v1848_v2 = vld [vmem:[%s3229_s5 + $0x310] sm:$0xff] }
  0x63   : > { %1352 = vmatpush.msra.mxu0 %v1891_v4  ;;  %1225 = vmatpush.msra.mxu2 %v1856_v5  ;;  %v1864_v3 = vld [vmem:[%s3229_s5 + $0x390] sm:$0xff]  ;;  %v579_v4 = vrot.slane %v2436_v11, 7  ;;  %v1881_v5 = vld [vmem:[%s3229_s5 + $0x418] sm:$0xff] }
  0x64   : > { %1290 = vmatpush.msra.mxu3 %v1872_v6  ;;  %1111 = vmatpush.msra.mxu1 %v726_v14 }
  0x65   : > { %868 = vmatmul.f32.gmra.mxu1 %v2221_v16  ;;  %933 = vmatmul.f32.gmra.mxu2 %v2354_v54  ;;  %v2783_v6 = vsel %vm562_vm1, %v2752_v0, %v579_v4 }
  0x66   : > { %1801 = vmatmul.msk.f32.gmra.mxu3 %vm2503_vm2, %v566_v57  ;;  %1060 = vmatmul.f32.gmra.mxu0 %v568_v7  ;;  %v576_v57 = vrot.slane %v2287_v35, 7 }
  0x67   : > { %1353 = vmatpush.msra.mxu0 %v1890_v8  ;;  %1226 = vmatpush.msra.mxu2 %v1855_v15  ;;  %v2787_v8 = vld [vmem:[%s444_s10] sm:$0xff]  ;;  %v718_v15 = vld [vmem:[%s3229_s5 + $0x110] sm:$0xff] }
  0x68   : > { %1291 = vmatpush.msra.mxu3 %v1871_v19  ;;  %1112 = vmatpush.msra.mxu1 %v725_v22  ;;  %v2731_v59 = vsel %vm562_vm1, %v2708_v50, %v576_v57  ;;  %v1847_v19 = vld [vmem:[%s3229_s5 + $0x308] sm:$0xff]  ;;  %v1880_v22 = vld [vmem:[%s3229_s5 + $0x410] sm:$0xff]  ;;  %v2882_v57 = vrot.slane %v2360_v56, 7 }
  0x69   : > { %1354 = vmatpush.msra.mxu0 %v1889_v13  ;;  %1227 = vmatpush.msra.mxu2 %v1854_v23  ;;  %v2815_v23 = vrot.slane %v2227_v18, 7 }
  0x6a   : > { %1292 = vmatpush.msra.mxu3 %v1870_v24  ;;  %1113 = vmatpush.msra.mxu1 %v724_v31  ;;  %v1846_v31 = vld [vmem:[%s3229_s5 + $0x300] sm:$0xff] }
  0x6b   : > { %1355 = vmatpush.msra.mxu0 %v1888_v20  ;;  %1228 = vmatpush.msra.mxu2 %v1853_v32  ;;  %v1863_v20 = vld [vmem:[%s3229_s5 + $0x388] sm:$0xff]  ;;  %v1862_v32 = vld [vmem:[%s3229_s5 + $0x380] sm:$0xff] }
  0x6c   : > { %1293 = vmatpush.msra.mxu3 %v1869_v26  ;;  %1114 = vmatpush.msra.mxu1 %v723_v40  ;;  %v582_v26 = vrot.slane %v2293_v37, 7  ;;  %v624_v40 = vrot.slane %v2481_v29, 1  ;;  %v716_v29 = vld [vmem:[%s3229_s5 + $0x100] sm:$0xff] }
  0x6d   : > { %871 = vmatmul.f32.gmra.mxu1 %v2290_v36  ;;  %936 = vmatmul.f32.gmra.mxu2 %v2433_v10 }
  0x6e   : > { %1001 = vmatmul.f32.gmra.mxu3 %v568_v7  ;;  %1817 = vmatmul.msk.f32.gmra.mxu0 %vm2503_vm2, %v2621_v21  ;;  %v496_v7 = vstv %s495_s16 }
  0x6f   : > { %1356 = vmatpush.msra.mxu0 %v1887_v28  ;;  %1229 = vmatpush.msra.mxu2 %v1852_v42  ;;  %vm2789_vm3 = vcmp.eq.s32.totalorder %v496_v7, 1  ;;  %v625_v42 = vrot.slane %v2513_v41, 1 }
  0x70   : > { %1294 = vmatpush.msra.mxu3 %v1868_v43  ;;  %1115 = vmatpush.msra.mxu1 %v722_v46  ;;  %v2800_v14 = vsel %vm2789_vm3, %v2787_v8, 0.0  ;;  %v2827_v28 = vsel %vm2789_vm3, %v487_v25, 0.0  ;;  %v627_v43 = vrot.slane %v2428_v9, 1 }
  0x71   : > { %1357 = vmatpush.msra.mxu0 %v1886_v33  ;;  %1230 = vmatpush.msra.mxu2 %v1851_v47  ;;  %v1879_v33 = vld [vmem:[%s3229_s5 + $0x408] sm:$0xff]  ;;  %v626_v34 = vsel %vm623_vm4, %v624_v40, %v625_v42 }
  0x72   : > { %1295 = vmatpush.msra.mxu3 %v1867_v48  ;;  %1116 = vmatpush.msra.mxu1 %v721_v51  ;;  %v2857_v48 = vsel %vm562_vm1, %v2815_v23, %v582_v26  ;;  %v629_v51 = vsel %vm623_vm4, %v627_v43, %v2846_v27 }
  0x73   : > { %1358 = vmatpush.msra.mxu0 %v1885_v44  ;;  %1231 = vmatpush.msra.mxu2 %v1850_v52  ;;  %v2849_v44 = vld [vmem:[%s2215_s15 + $0x70] sm:$0xff]  ;;  %v1878_v52 = vld [vmem:[%s3229_s5 + $0x400] sm:$0xff] }
  0x74   : > { %1296 = vmatpush.msra.mxu3 %v1866_v53  ;;  %1117 = vmatpush.msra.mxu1 %v720_v60  ;;  %v2879_v53 = vld [vmem:[%s2215_s15 + $0x78] sm:$0xff]  ;;  %v2916_v7 = vrot.slane %v2849_v44, 7 }
  0x75   : > { %874 = vmatmul.f32.gmra.mxu1 %v2354_v54  ;;  %939 = vmatmul.f32.gmra.mxu2 %v2224_v17 }
  0x76   : > { %1803 = vmatmul.msk.f32.gmra.mxu3 %vm2503_vm2, %v2621_v21  ;;  %1066 = vmatmul.f32.gmra.mxu0 %v2643_v30 }
  0x77   : > { %1359 = vmatpush.msra.mxu0 %v1884_v49  ;;  %1232 = vmatpush.msra.mxu2 %v1849_v61 }
  0x78   : > { %1297 = vmatpush.msra.mxu3 %v1865_v62  ;;  %1118 = vmatpush.msra.mxu1 %v719_v1 }
  0x79   : > { %1360 = vmatpush.msra.mxu0 %v1883_v58  ;;  %1233 = vmatpush.msra.mxu2 %v1848_v2 }
  0x7a   : > { %1298 = vmatpush.msra.mxu3 %v1864_v3  ;;  %1119 = vmatpush.msra.mxu1 %v718_v15 }
  0x7b   : > { %1361 = vmatpush.msra.mxu0 %v1882_v63  ;;  %1234 = vmatpush.msra.mxu2 %v1847_v19  ;;  %v585_v63 = vrot.slane %v2439_v12, 7  ;;  %v588_v19 = vrot.slane %v2879_v53, 7 }
  0x7c   : > { %1299 = vmatpush.msra.mxu3 %v1863_v20 }
  0x7d   : > { %877 = vmatmul.f32.gmra.mxu1 %v2433_v10  ;;  %942 = vmatmul.f32.gmra.mxu2 %v2287_v35  ;;  %v2899_v1 = vsel %vm562_vm1, %v2882_v57, %v585_v63 }
  0x7e   : > { %1007 = vmatmul.f32.gmra.mxu3 %v2643_v30  ;;  %1819 = vmatmul.msk.f32.gmra.mxu0 %vm2503_vm2, %v2664_v38 }
  0x7f   : > { %1362 = vmatpush.msra.mxu0 %v1881_v5  ;;  %1235 = vmatpush.msra.mxu2 %v1846_v31  ;;  %v631_v31 = vrot.slane %v2290_v36, 1 }
  0x80   : > { %1300 = vmatpush.msra.mxu3 %v1862_v32 }
  0x81   : > { %1363 = vmatpush.msra.mxu0 %v1880_v22 }
  0x83   : > { %1364 = vmatpush.msra.mxu0 %v1879_v33 }
  0x85   : > { %880 = vmatmul.f32.gmra.mxu1 %v2224_v17  ;;  %945 = vmatmul.f32.gmra.mxu2 %v2357_v55 }
  0x86   : > { %1805 = vmatmul.msk.f32.gmra.mxu3 %vm2503_vm2, %v2664_v38  ;;  %1072 = vmatmul.f32.gmra.mxu0 %v2687_v45 }
  0x87   : > { %1365 = vmatpush.msra.mxu0 %v1878_v52 }
  0x8d   : > { %883 = vmatmul.f32.gmra.mxu1 %v2287_v35  ;;  %948 = vmatmul.f32.gmra.mxu2 %v2436_v11 }
  0x8e   : > { %1013 = vmatmul.f32.gmra.mxu3 %v2687_v45  ;;  %1821 = vmatmul.msk.f32.gmra.mxu0 %vm2503_vm2, %v2708_v50 }
  0x95   : > { %886 = vmatmul.f32.gmra.mxu1 %v2357_v55  ;;  %951 = vmatmul.f32.gmra.mxu2 %v2227_v18 }
  0x96   : > { %1807 = vmatmul.msk.f32.gmra.mxu3 %vm2503_vm2, %v2708_v50  ;;  %1078 = vmatmul.f32.gmra.mxu0 %v2731_v59 }
  0x9d   : > { %889 = vmatmul.f32.gmra.mxu1 %v2436_v11  ;;  %954 = vmatmul.f32.gmra.mxu2 %v2293_v37 }
  0x9e   : > { %1019 = vmatmul.f32.gmra.mxu3 %v2731_v59  ;;  %1823 = vmatmul.msk.f32.gmra.mxu0 %vm2503_vm2, %v2752_v0 }
  0xa5   : > { %892 = vmatmul.f32.gmra.mxu1 %v2227_v18  ;;  %957 = vmatmul.f32.gmra.mxu2 %v2360_v56  ;;  %v717_v18 = vld [vmem:[%s3229_s5 + $0x108] sm:$0xff] }
  0xa6   : > { %1809 = vmatmul.msk.f32.gmra.mxu3 %vm2503_vm2, %v2752_v0  ;;  %1084 = vmatmul.f32.gmra.mxu0 %v2783_v6 }
  0xa7   : > { %1120 = vmatpush.msra.mxu1 %v717_v18  ;;  %v2932_v18 = vsel %vm562_vm1, %v2916_v7, %v588_v19 }
  0xa9   : > { %1121 = vmatpush.msra.mxu1 %v716_v29 }
  0xab   : > { %v2817_v24 = vpop.f32.mrf.mxu1 }
  0xad   : > { %895 = vmatmul.f32.gmra.mxu1 %v2293_v37  ;;  %960 = vmatmul.f32.gmra.mxu2 %v2439_v12 }
  0xae   : > { %1025 = vmatmul.f32.gmra.mxu3 %v2783_v6  ;;  %1825 = vmatmul.msk.f32.gmra.mxu0 %vm2503_vm2, %v2815_v23 }
  0xb0   : > { %v798_v49 = vpop.f32.mrf.mxu0 }
  0xb2   : > { %v2851_v46 = vpop.f32.mrf.mxu2  ;;  %v2853_v47 = vpop.f32.mrf.mxu3 }
  0xb5   : > { %898 = vmatmul.f32.gmra.mxu1 %v2360_v56  ;;  %963 = vmatmul.f32.gmra.mxu2 %v2849_v44  ;;  %v2864_v9 = vpop.f32.mrf.mxu1 }
  0xb6   : > { %1811 = vmatmul.msk.f32.gmra.mxu3 %vm2503_vm2, %v2815_v23  ;;  %1090 = vmatmul.f32.gmra.mxu0 %v2857_v48 }
  0xba   : > { %v2884_v58 = vpop.f32.mrf.mxu2 }
  0xbb   : > { %v2886_v60 = vpop.f32.mrf.mxu3 }
  0xbd   : > { %901 = vmatmul.f32.gmra.mxu1 %v2439_v12  ;;  %966 = vmatmul.f32.gmra.mxu2 %v2879_v53  ;;  %v801_v61 = vpop.f32.mrf.mxu0 }
  0xbe   : > { %1031 = vmatmul.f32.gmra.mxu3 %v2857_v48  ;;  %1827 = vmatmul.msk.f32.gmra.mxu0 %vm2503_vm2, %v2882_v57  ;;  %v2894_v62 = vpop.f32.mrf.mxu1 }
  0xc4   : > { %v2901_v2 = vpop.f32.mrf.mxu2 }
  0xc5   : > { %904 = vmatmul.f32.gmra.mxu1 %v2849_v44  ;;  %1930 = vmatmul.msk.f32.gmra.mxu2 %vm2789_vm3, %v2787_v8  ;;  %v2907_v3 = vpop.f32.mrf.mxu3 }
  0xc6   : > { %1813 = vmatmul.msk.f32.gmra.mxu3 %vm2503_vm2, %v2882_v57  ;;  %1096 = vmatmul.f32.gmra.mxu0 %v2899_v1 }
  0xc7   : > { %v804_v4 = vpop.f32.mrf.mxu0 }
  0xc8   : > { %v2913_v5 = vpop.f32.mrf.mxu1 }
  0xcd   : > { %907 = vmatmul.f32.gmra.mxu1 %v2879_v53  ;;  %1931 = vmatmul.msk.f32.gmra.mxu2 %vm2789_vm3, %v487_v25  ;;  %v630_v25 = vrot.slane %v2221_v16, 1 }
  0xce   : > { %1037 = vmatmul.f32.gmra.mxu3 %v2899_v1  ;;  %1829 = vmatmul.msk.f32.gmra.mxu0 %vm2503_vm2, %v2916_v7  ;;  %v2925_v8 = vpop.f32.mrf.mxu2 }
  0xcf   : > { %v2927_v15 = vpop.f32.mrf.mxu3  ;;  %v632_v52 = vsel %vm623_vm4, %v630_v25, %v631_v31 }
  0xd1   : > { %v807_v20 = vpop.f32.mrf.mxu0 }
  0xd2   : > { %v863_v22 = vpop.f32.mrf.mxu1 }
  0xd3   : > { %v864_v13 = vadd.f32 %v863_v22, %v798_v49 }
  0xd5   : > { %1831 = vmatmul.msk.f32.vlgmr.msra.gmra.mxu1 %vm2503_vm2, %v2621_v21  ;;  %1236 = vmatmul.f32.vlgmr.msra.gmra.mxu2 %v626_v34 }
  0xd6   : > { %1102 = vmatmul.f32.gmra.mxu0 %v2932_v18  ;;  %1301 = vmatmul.f32.vlgmr.msra.gmra.mxu3 %v629_v51 }
  0xd8   : > { %v928_v32 = vpop.f32.mrf.mxu2 }
  0xd9   : > { %v929_v26 = vadd.f32 %v928_v32, %v864_v13  ;;  %v993_v33 = vpop.f32.mrf.mxu3 }
  0xda   : > { %v866_v40 = vpop.f32.mrf.mxu1 }
  0xdb   : > { %v2940_v43 = vadd.f32 %v993_v33, %v929_v26  ;;  %v2942_v29 = vpop.f32.mrf.mxu0  ;;  %v867_v16 = vadd.f32 %v866_v40, %v801_v61 }
  0xdd   : > { %1125 = vmatmul.f32.gmra.mxu1 %v2643_v30  ;;  %1894 = vmatmul.msk.f32.gmra.mxu2 %vm623_vm4, %v625_v42  ;;  %v633_v30 = vrot.slane %v2354_v54, 1  ;;  %v634_v42 = vrot.slane %v2433_v10, 1 }
  0xde   : > { %1902 = vmatmul.msk.f32.gmra.mxu3 %vm623_vm4, %v2846_v27  ;;  %1366 = vmatmul.f32.vlgmr.msra.gmra.mxu0 %v632_v52 }
  0xdf   : > { %v635_v33 = vsel %vm623_vm4, %v633_v30, %v634_v42 }
  0xe0   : > { %v931_v36 = vpop.f32.mrf.mxu2 }
  0xe1   : > { %v932_v21 = vadd.f32 %v931_v36, %v867_v16  ;;  %v996_v49 = vpop.f32.mrf.mxu3 }
  0xe2   : > { %v869_v34 = vpop.f32.mrf.mxu1 }
  0xe3   : > { %v2951_v63 = vadd.f32 %v996_v49, %v932_v21  ;;  %v2953_v19 = vpop.f32.mrf.mxu0  ;;  %v870_v41 = vadd.f32 %v869_v34, %v804_v4 }
  0xe5   : > { %1833 = vmatmul.msk.f32.gmra.mxu1 %vm2503_vm2, %v2664_v38  ;;  %1242 = vmatmul.f32.gmra.mxu2 %v629_v51 }
  0xe6   : > { %1307 = vmatmul.f32.gmra.mxu3 %v632_v52  ;;  %1910 = vmatmul.msk.f32.gmra.mxu0 %vm623_vm4, %v631_v31 }
  0xe8   : > { %v934_v61 = vpop.f32.mrf.mxu2 }
  0xe9   : > { %v935_v22 = vadd.f32 %v934_v61, %v870_v41  ;;  %v999_v13 = vpop.f32.mrf.mxu3 }
  0xea   : > { %v872_v25 = vpop.f32.mrf.mxu1 }
  0xeb   : > { %v2961_v32 = vadd.f32 %v999_v13, %v935_v22  ;;  %v2963_v26 = vpop.f32.mrf.mxu0  ;;  %v873_v54 = vadd.f32 %v872_v25, %v807_v20  ;;  %v637_v20 = vrot.slane %v2287_v35, 1 }
  0xed   : > { %1131 = vmatmul.f32.gmra.mxu1 %v2687_v45  ;;  %1895 = vmatmul.msk.f32.gmra.mxu2 %vm623_vm4, %v2846_v27  ;;  %v636_v27 = vrot.slane %v2224_v17, 1 }
  0xee   : > { %1903 = vmatmul.msk.f32.gmra.mxu3 %vm623_vm4, %v631_v31  ;;  %1372 = vmatmul.f32.gmra.mxu0 %v635_v33 }
  0xf0   : > { %v937_v10 = vpop.f32.mrf.mxu2 }
  0xf1   : > { %v938_v38 = vadd.f32 %v937_v10, %v873_v54  ;;  %v1002_v51 = vpop.f32.mrf.mxu3 }
  0xf2   : > { %v875_v4 = vpop.f32.mrf.mxu1 }
  0xf3   : > { %v2970_v40 = vadd.f32 %v1002_v51, %v938_v38  ;;  %v2972_v16 = vpop.f32.mrf.mxu0  ;;  %v876_v45 = vadd.f32 %v875_v4, %v2817_v24 }
  0xf5   : > { %1835 = vmatmul.msk.f32.gmra.mxu1 %vm2503_vm2, %v2708_v50  ;;  %1248 = vmatmul.f32.gmra.mxu2 %v632_v52  ;;  %v638_v50 = vsel %vm623_vm4, %v636_v27, %v637_v20 }
  0xf6   : > { %1313 = vmatmul.f32.gmra.mxu3 %v635_v33  ;;  %1911 = vmatmul.msk.f32.gmra.mxu0 %vm623_vm4, %v634_v42 }
  0xf8   : > { %v940_v36 = vpop.f32.mrf.mxu2 }
  0xf9   : > { %v941_v21 = vadd.f32 %v940_v36, %v876_v45  ;;  %v1005_v49 = vpop.f32.mrf.mxu3 }
  0xfa   : > { %v878_v34 = vpop.f32.mrf.mxu1 }
  0xfb   : > { %v2981_v41 = vadd.f32 %v1005_v49, %v941_v21  ;;  %v2983_v30 = vpop.f32.mrf.mxu0  ;;  %v879_v17 = vadd.f32 %v878_v34, %v2864_v9  ;;  %v639_v9 = vrot.slane %v2357_v55, 1  ;;  %v3025_v21 = vrot.slane %v2293_v37, 1 }
  0xfd   : > { %1137 = vmatmul.f32.gmra.mxu1 %v2731_v59  ;;  %1896 = vmatmul.msk.f32.gmra.mxu2 %vm623_vm4, %v631_v31  ;;  %v3001_v31 = vrot.slane %v2436_v11, 1 }
  0xfe   : > { %1904 = vmatmul.msk.f32.gmra.mxu3 %vm623_vm4, %v634_v42  ;;  %1378 = vmatmul.f32.gmra.mxu0 %v638_v50 }
 0x100   : > { %v943_v35 = vpop.f32.mrf.mxu2 }
 0x101   : > { %v944_v24 = vadd.f32 %v943_v35, %v879_v17  ;;  %v1008_v52 = vpop.f32.mrf.mxu3 }
 0x102   : > { %v881_v61 = vpop.f32.mrf.mxu1 }
 0x103   : > { %v2990_v22 = vadd.f32 %v1008_v52, %v944_v24  ;;  %v2992_v13 = vpop.f32.mrf.mxu0  ;;  %v882_v59 = vadd.f32 %v881_v61, %v2894_v62 }
 0x105   : > { %1837 = vmatmul.msk.f32.gmra.mxu1 %vm2503_vm2, %v2752_v0  ;;  %1254 = vmatmul.f32.gmra.mxu2 %v635_v33  ;;  %v641_v0 = vsel %vm623_vm4, %v639_v9, %v3001_v31 }
 0x106   : > { %1319 = vmatmul.f32.gmra.mxu3 %v638_v50  ;;  %1912 = vmatmul.msk.f32.gmra.mxu0 %vm623_vm4, %v637_v20 }
 0x108   : > { %v946_v25 = vpop.f32.mrf.mxu2 }
 0x109   : > { %v947_v54 = vadd.f32 %v946_v25, %v882_v59  ;;  %v1011_v10 = vpop.f32.mrf.mxu3 }
 0x10a   : > { %v884_v38 = vpop.f32.mrf.mxu1 }
 0x10b   : > { %v3003_v51 = vadd.f32 %v1011_v10, %v947_v54  ;;  %v3005_v4 = vpop.f32.mrf.mxu0  ;;  %v885_v55 = vadd.f32 %v884_v38, %v2913_v5  ;;  %v2020_v5 = vld [vmem:[%s2215_s15 + $0x50] sm:$0xff] }
 0x10d   : > { %1143 = vmatmul.f32.gmra.mxu1 %v2783_v6  ;;  %1897 = vmatmul.msk.f32.gmra.mxu2 %vm623_vm4, %v634_v42  ;;  %v642_v42 = vrot.slane %v2020_v5, 1 }
 0x10e   : > { %1905 = vmatmul.msk.f32.gmra.mxu3 %vm623_vm4, %v637_v20  ;;  %1384 = vmatmul.f32.gmra.mxu0 %v641_v0 }
 0x110   : > { %v949_v11 = vpop.f32.mrf.mxu2 }
 0x111   : > { %v950_v62 = vadd.f32 %v949_v11, %v885_v55  ;;  %v1014_v33 = vpop.f32.mrf.mxu3  ;;  %v651_v55 = vrot.slane %v2800_v14, 1  ;;  %v591_v11 = vrot.slane %v2827_v28, 7 }
 0x112   : > { %v887_v45 = vpop.f32.mrf.mxu1 }
 0x113   : > { %v3013_v27 = vadd.f32 %v1014_v33, %v950_v62  ;;  %v3015_v36 = vpop.f32.mrf.mxu0  ;;  %v888_v6 = vadd.f32 %v887_v45, %v2851_v46  ;;  %v652_v62 = vrot.slane %v2827_v28, 1  ;;  %v590_v45 = vrot.slane %v2800_v14, 7 }
 0x115   : > { %1839 = vmatmul.msk.f32.gmra.mxu1 %vm2503_vm2, %v2815_v23  ;;  %1260 = vmatmul.f32.gmra.mxu2 %v638_v50  ;;  %v644_v23 = vsel %vm623_vm4, %v642_v42, %v3025_v21  ;;  %v653_v42 = vsel %vm623_vm4, %v651_v55, %v652_v62 }
 0x116   : > { %1325 = vmatmul.f32.gmra.mxu3 %v641_v0  ;;  %1913 = vmatmul.msk.f32.gmra.mxu0 %vm623_vm4, %v3001_v31 }
 0x118   : > { %v952_v49 = vpop.f32.mrf.mxu2 }
 0x119   : > { %v953_v34 = vadd.f32 %v952_v49, %v888_v6  ;;  %v1017_v17 = vpop.f32.mrf.mxu3 }
 0x11a   : > { %v890_v35 = vpop.f32.mrf.mxu1 }
 0x11b   : > { %v1018_v24 = vadd.f32 %v1017_v17, %v953_v34  ;;  %v1082_v52 = vpop.f32.mrf.mxu0  ;;  %v891_v37 = vadd.f32 %v890_v35, %v2884_v58  ;;  %v645_v58 = vrot.slane %v2360_v56, 1 }
 0x11d   : > { %v3029_v50 = vadd.f32 %v1082_v52, %v1018_v24  ;;  %1149 = vmatmul.f32.gmra.mxu1 %v2857_v48  ;;  %1898 = vmatmul.msk.f32.gmra.mxu2 %vm623_vm4, %v637_v20  ;;  %v3046_v20 = vrot.slane %v2439_v12, 1  ;;  %v592_v12 = vsel %vm562_vm1, %v590_v45, %v591_v11 }
 0x11e   : > { %1906 = vmatmul.msk.f32.gmra.mxu3 %vm623_vm4, %v3001_v31  ;;  %1390 = vmatmul.f32.gmra.mxu0 %v644_v23 }
 0x11f   : > { %v647_v56 = vsel %vm623_vm4, %v645_v58, %v3046_v20 }
 0x120   : > { %v955_v46 = vpop.f32.mrf.mxu2 }
 0x121   : > { %v956_v61 = vadd.f32 %v955_v46, %v891_v37  ;;  %v1020_v59 = vpop.f32.mrf.mxu3  ;;  %v649_v37 = vrot.slane %v2879_v53, 1 }
 0x122   : > { %v893_v9 = vpop.f32.mrf.mxu1 }
 0x123   : > { %v1021_v25 = vadd.f32 %v1020_v59, %v956_v61  ;;  %v1085_v54 = vpop.f32.mrf.mxu0  ;;  %v894_v48 = vadd.f32 %v893_v9, %v2901_v2 }
 0x125   : > { %v3036_v10 = vadd.f32 %v1085_v54, %v1021_v25  ;;  %1841 = vmatmul.msk.f32.gmra.mxu1 %vm2503_vm2, %v2882_v57  ;;  %1266 = vmatmul.f32.gmra.mxu2 %v641_v0 }
 0x126   : > { %1331 = vmatmul.f32.gmra.mxu3 %v644_v23  ;;  %1914 = vmatmul.msk.f32.gmra.mxu0 %vm623_vm4, %v3025_v21 }
 0x128   : > { %v958_v38 = vpop.f32.mrf.mxu2 }
 0x129   : > { %v959_v57 = vadd.f32 %v958_v38, %v894_v48  ;;  %v1023_v0 = vpop.f32.mrf.mxu3 }
 0x12a   : > { %v896_v33 = vpop.f32.mrf.mxu1 }
 0x12b   : > { %v1024_v6 = vadd.f32 %v1023_v0, %v959_v57  ;;  %v1088_v5 = vpop.f32.mrf.mxu0  ;;  %v897_v14 = vadd.f32 %v896_v33, %v2925_v8  ;;  %v648_v8 = vrot.slane %v2849_v44, 1 }
 0x12d   : > { %v3054_v2 = vadd.f32 %v1088_v5, %v1024_v6  ;;  %1155 = vmatmul.f32.gmra.mxu1 %v2899_v1  ;;  %1899 = vmatmul.msk.f32.gmra.mxu2 %vm623_vm4, %v3001_v31  ;;  %v650_v48 = vsel %vm623_vm4, %v648_v8, %v649_v37 }
 0x12e   : > { %1907 = vmatmul.msk.f32.gmra.mxu3 %vm623_vm4, %v3025_v21  ;;  %1396 = vmatmul.f32.gmra.mxu0 %v647_v56 }
 0x130   : > { %v961_v49 = vpop.f32.mrf.mxu2 }
 0x131   : > { %v962_v34 = vadd.f32 %v961_v49, %v897_v14  ;;  %v1026_v17 = vpop.f32.mrf.mxu3 }
 0x132   : > { %v899_v35 = vpop.f32.mrf.mxu1 }
 0x133   : > { %v1027_v1 = vadd.f32 %v1026_v17, %v962_v34  ;;  %v1091_v24 = vpop.f32.mrf.mxu0  ;;  %v900_v31 = vadd.f32 %v899_v35, %v2853_v47 }
 0x135   : > { %v3066_v52 = vadd.f32 %v1091_v24, %v1027_v1  ;;  %1843 = vmatmul.msk.f32.gmra.mxu1 %vm2503_vm2, %v2916_v7  ;;  %1272 = vmatmul.f32.gmra.mxu2 %v644_v23 }
 0x136   : > { %1337 = vmatmul.f32.gmra.mxu3 %v647_v56  ;;  %1915 = vmatmul.msk.f32.gmra.mxu0 %vm623_vm4, %v3046_v20 }
 0x138   : > { %v964_v46 = vpop.f32.mrf.mxu2 }
 0x139   : > { %v965_v61 = vadd.f32 %v964_v46, %v900_v31  ;;  %v1029_v59 = vpop.f32.mrf.mxu3 }
 0x13a   : > { %v902_v9 = vpop.f32.mrf.mxu1 }
 0x13b   : > { %v1030_v25 = vadd.f32 %v1029_v59, %v965_v61  ;;  %v1094_v54 = vpop.f32.mrf.mxu0  ;;  %v903_v44 = vadd.f32 %v902_v9, %v2886_v60 }
 0x13d   : > { %v3077_v7 = vadd.f32 %v1094_v54, %v1030_v25  ;;  %1161 = vmatmul.f32.gmra.mxu1 %v2932_v18  ;;  %1900 = vmatmul.msk.f32.gmra.mxu2 %vm623_vm4, %v3025_v21 }
 0x13e   : > { %1908 = vmatmul.msk.f32.gmra.mxu3 %vm623_vm4, %v3046_v20  ;;  %1402 = vmatmul.f32.gmra.mxu0 %v650_v48 }
 0x140   : > { %v967_v47 = vpop.f32.mrf.mxu2 }
 0x141   : > { %v968_v53 = vadd.f32 %v967_v47, %v903_v44  ;;  %v1032_v23 = vpop.f32.mrf.mxu3 }
 0x142   : > { %v905_v58 = vpop.f32.mrf.mxu1 }
 0x143   : > { %v1033_v38 = vadd.f32 %v1032_v23, %v968_v53  ;;  %v1097_v55 = vpop.f32.mrf.mxu0  ;;  %v906_v18 = vadd.f32 %v905_v58, %v2907_v3 }
 0x145   : > { %v3085_v11 = vadd.f32 %v1097_v55, %v1033_v38  ;;  %1845 = vmatmul.msk.f32.gmra.mxu1 %vm2503_vm2, %v590_v45  ;;  %1278 = vmatmul.f32.gmra.mxu2 %v647_v56  ;;  %v1068_v55 = vadd.f32 %v2972_v16, %v2970_v40 }
 0x146   : > { %1343 = vmatmul.f32.gmra.mxu3 %v650_v48  ;;  %1916 = vmatmul.msk.f32.gmra.mxu0 %vm623_vm4, %v649_v37  ;;  %v1065_v48 = vadd.f32 %v2963_v26, %v2961_v32 }
 0x148   : > { %v970_v21 = vpop.f32.mrf.mxu2 }
 0x149   : > { %v971_v57 = vadd.f32 %v970_v21, %v906_v18  ;;  %v1035_v60 = vpop.f32.mrf.mxu3 }
 0x14a   : > { %v908_v0 = vpop.f32.mrf.mxu1 }
 0x14b   : > { %v1036_v33 = vadd.f32 %v1035_v60, %v971_v57  ;;  %v1100_v6 = vpop.f32.mrf.mxu0  ;;  %v909_v39 = vadd.f32 %v908_v0, %v2927_v15 }
 0x14d   : > { %v3091_v5 = vadd.f32 %v1100_v6, %v1036_v33  ;;  %1167 = vmatmul.f32.gmra.mxu1 %v592_v12  ;;  %1901 = vmatmul.msk.f32.gmra.mxu2 %vm623_vm4, %v3046_v20  ;;  %v1071_v6 = vadd.f32 %v2983_v30, %v2981_v41 }
 0x14e   : > { %1909 = vmatmul.msk.f32.gmra.mxu3 %vm623_vm4, %v649_v37  ;;  %1408 = vmatmul.f32.gmra.mxu0 %v653_v42  ;;  %v1059_v42 = vadd.f32 %v2942_v29, %v2940_v43  ;;  %v1062_v43 = vadd.f32 %v2953_v19, %v2951_v63 }
 0x150   : > { %v973_v45 = vpop.f32.mrf.mxu2 }
 0x151   : > { %v974_v3 = vadd.f32 %v973_v45, %v909_v39  ;;  %v1038_v56 = vpop.f32.mrf.mxu3 }
 0x152   : > { %v1123_v14 = vpop.f32.mrf.mxu1 }
 0x153   : > { %v1039_v49 = vadd.f32 %v1038_v56, %v974_v3  ;;  %v1103_v34 = vpop.f32.mrf.mxu0  ;;  %v1124_v24 = vadd.f32 %v1123_v14, %v1059_v42 }
 0x155   : > { %v3097_v17 = vadd.f32 %v1103_v34, %v1039_v49  ;;  %v1074_v34 = vadd.f32 %v2992_v13, %v2990_v22 }
 0x156   : > { %1917 = vmatmul.msk.f32.gmra.mxu0 %vm623_vm4, %v652_v62 }
 0x158   : > { %v1237_v12 = vpop.f32.mrf.mxu2 }
 0x159   : > { %v1302_v20 = vpop.f32.mrf.mxu3 }
 0x15a   : > { %v1303_v35 = vadd.f32 %v1302_v20, %v1237_v12  ;;  %v1126_v15 = vpop.f32.mrf.mxu1 }
 0x15b   : > { %v1367_v1 = vpop.f32.mrf.mxu0  ;;  %v1127_v61 = vadd.f32 %v1126_v15, %v1062_v43 }
 0x15c   : > { %v1368_v31 = vadd.f32 %v1367_v1, %v1303_v35 }
 0x15e   : > { %v3111_v28 = vadd.f32 %v1368_v31, %v1124_v24  ;;  %v1077_v24 = vadd.f32 %v3005_v4, %v3003_v51 }
 0x160   : > { %1508 = vst [vmem:[%s3109_s9] sm:$0xff] %v3111_v28  ;;  %v1240_v62 = vpop.f32.mrf.mxu2 }
 0x161   : > { %v1305_v8 = vpop.f32.mrf.mxu3 }
 0x162   : > { %v1306_v29 = vadd.f32 %v1305_v8, %v1240_v62  ;;  %v1129_v37 = vpop.f32.mrf.mxu1 }
 0x163   : > { %v1370_v46 = vpop.f32.mrf.mxu0  ;;  %v1130_v63 = vadd.f32 %v1129_v37, %v1065_v48 }
 0x164   : > { %v1371_v59 = vadd.f32 %v1370_v46, %v1306_v29  ;;  %v1080_v46 = vadd.f32 %v3015_v36, %v3013_v27 }
 0x166   : > { %v3117_v9 = vadd.f32 %v1371_v59, %v1127_v61 }
 0x168   : > { %1509 = vst [vmem:[%s3109_s9 + $0x8] sm:$0xff] %v3117_v9  ;;  %v1243_v25 = vpop.f32.mrf.mxu2 }
 0x169   : > { %v1308_v54 = vpop.f32.mrf.mxu3 }
 0x16a   : > { %v1309_v44 = vadd.f32 %v1308_v54, %v1243_v25  ;;  %v1132_v47 = vpop.f32.mrf.mxu1 }
 0x16b   : > { %v1373_v53 = vpop.f32.mrf.mxu0  ;;  %v1133_v32 = vadd.f32 %v1132_v47, %v1068_v55 }
 0x16c   : > { %v1374_v19 = vadd.f32 %v1373_v53, %v1309_v44 }
 0x16e   : > { %v3123_v23 = vadd.f32 %v1374_v19, %v1130_v63 }
 0x170   : > { %1510 = vst [vmem:[%s3109_s9 + $0x10] sm:$0xff] %v3123_v23  ;;  %v1246_v58 = vpop.f32.mrf.mxu2 }
 0x171   : > { %v1311_v38 = vpop.f32.mrf.mxu3 }
 0x172   : > { %v1312_v18 = vadd.f32 %v1311_v38, %v1246_v58  ;;  %v1135_v21 = vpop.f32.mrf.mxu1 }
 0x173   : > { %v1376_v57 = vpop.f32.mrf.mxu0  ;;  %v1136_v40 = vadd.f32 %v1135_v21, %v1071_v6 }
 0x174   : > { %v1377_v26 = vadd.f32 %v1376_v57, %v1312_v18  ;;  %v1431_v57 = vadd.f32 %v3117_v9, %v3111_v28 }
 0x176   : > { %v3129_v60 = vadd.f32 %v1377_v26, %v1133_v32 }
 0x178   : > { %1511 = vst [vmem:[%s3109_s9 + $0x18] sm:$0xff] %v3129_v60  ;;  %v1249_v0 = vpop.f32.mrf.mxu2 }
 0x179   : > { %v1314_v33 = vpop.f32.mrf.mxu3 }
 0x17a   : > { %v1315_v39 = vadd.f32 %v1314_v33, %v1249_v0  ;;  %v1138_v45 = vpop.f32.mrf.mxu1  ;;  %v1432_v0 = vadd.f32 %v1431_v57, %v3123_v23 }
 0x17b   : > { %v1379_v3 = vpop.f32.mrf.mxu0  ;;  %v1139_v41 = vadd.f32 %v1138_v45, %v1074_v34 }
 0x17c   : > { %v1380_v16 = vadd.f32 %v1379_v3, %v1315_v39  ;;  %v1433_v33 = vadd.f32 %v1432_v0, %v3129_v60 }
 0x17e   : > { %v3135_v56 = vadd.f32 %v1380_v16, %v1136_v40 }
 0x180   : > { %1512 = vst [vmem:[%s3109_s9 + $0x20] sm:$0xff] %v3135_v56  ;;  %v1252_v14 = vpop.f32.mrf.mxu2  ;;  %v1434_v45 = vadd.f32 %v1433_v33, %v3135_v56 }
 0x181   : > { %v1317_v49 = vpop.f32.mrf.mxu3 }
 0x182   : > { %v1318_v12 = vadd.f32 %v1317_v49, %v1252_v14  ;;  %v1141_v20 = vpop.f32.mrf.mxu1 }
 0x183   : > { %v1382_v42 = vpop.f32.mrf.mxu0  ;;  %v1142_v22 = vadd.f32 %v1141_v20, %v1077_v24 }
 0x184   : > { %v1383_v30 = vadd.f32 %v1382_v42, %v1318_v12 }
 0x186   : > { %v3141_v35 = vadd.f32 %v1383_v30, %v1139_v41 }
 0x188   : > { %1513 = vst [vmem:[%s3109_s9 + $0x28] sm:$0xff] %v3141_v35  ;;  %v1255_v15 = vpop.f32.mrf.mxu2  ;;  %v1435_v14 = vadd.f32 %v1434_v45, %v3141_v35 }
 0x189   : > { %v1320_v1 = vpop.f32.mrf.mxu3 }
 0x18a   : > { %v1321_v31 = vadd.f32 %v1320_v1, %v1255_v15  ;;  %v1144_v62 = vpop.f32.mrf.mxu1 }
 0x18b   : > { %v1385_v8 = vpop.f32.mrf.mxu0  ;;  %v1145_v51 = vadd.f32 %v1144_v62, %v1080_v46 }
 0x18c   : > { %v1386_v13 = vadd.f32 %v1385_v8, %v1321_v31 }
 0x18e   : > { %v3147_v43 = vadd.f32 %v1386_v13, %v1142_v22 }
 0x190   : > { %1514 = vst [vmem:[%s3109_s9 + $0x30] sm:$0xff] %v3147_v43  ;;  %v1258_v29 = vpop.f32.mrf.mxu2  ;;  %v1436_v34 = vadd.f32 %v1435_v14, %v3147_v43 }
 0x191   : > { %v1323_v37 = vpop.f32.mrf.mxu3 }
 0x192   : > { %v1324_v61 = vadd.f32 %v1323_v37, %v1258_v29  ;;  %v1147_v59 = vpop.f32.mrf.mxu1 }
 0x193   : > { %v1388_v25 = vpop.f32.mrf.mxu0  ;;  %v1148_v19 = vadd.f32 %v1147_v59, %v3029_v50 }
 0x194   : > { %v1389_v4 = vadd.f32 %v1388_v25, %v1324_v61 }
 0x196   : > { %v3153_v54 = vadd.f32 %v1389_v4, %v1145_v51 }
 0x198   : > { %1515 = vst [vmem:[%s3109_s9 + $0x38] sm:$0xff] %v3153_v54  ;;  %v1261_v48 = vpop.f32.mrf.mxu2  ;;  %v1437_v20 = vadd.f32 %v1436_v34, %v3153_v54 }
 0x199   : > { %v1326_v44 = vpop.f32.mrf.mxu3 }
 0x19a   : > { %v1327_v47 = vadd.f32 %v1326_v44, %v1261_v48  ;;  %v1150_v53 = vpop.f32.mrf.mxu1 }
 0x19b   : > { %v1391_v63 = vpop.f32.mrf.mxu0  ;;  %v1151_v32 = vadd.f32 %v1150_v53, %v3036_v10 }
 0x19c   : > { %v1392_v58 = vadd.f32 %v1391_v63, %v1327_v47 }
 0x19e   : > { %v3158_v27 = vadd.f32 %v1392_v58, %v1148_v19 }
 0x1a0   : > { %1516 = vst [vmem:[%s3109_s9 + $0x40] sm:$0xff] %v3158_v27  ;;  %v1264_v36 = vpop.f32.mrf.mxu2  ;;  %v1438_v30 = vadd.f32 %v1437_v20, %v3158_v27 }
 0x1a1   : > { %v1329_v38 = vpop.f32.mrf.mxu3 }
 0x1a2   : > { %v1330_v55 = vadd.f32 %v1329_v38, %v1264_v36  ;;  %v1153_v18 = vpop.f32.mrf.mxu1 }
 0x1a3   : > { %v1394_v21 = vpop.f32.mrf.mxu0  ;;  %v1154_v10 = vadd.f32 %v1153_v18, %v3054_v2 }
 0x1a4   : > { %v1395_v26 = vadd.f32 %v1394_v21, %v1330_v55 }
 0x1a6   : > { %v3166_v50 = vadd.f32 %v1395_v26, %v1151_v32 }
 0x1a8   : > { %1517 = vst [vmem:[%s3109_s9 + $0x48] sm:$0xff] %v3166_v50  ;;  %v1267_v6 = vpop.f32.mrf.mxu2  ;;  %v1439_v31 = vadd.f32 %v1438_v30, %v3166_v50 }
 0x1a9   : > { %v1332_v39 = vpop.f32.mrf.mxu3 }
 0x1aa   : > { %v1333_v3 = vadd.f32 %v1332_v39, %v1267_v6  ;;  %v1156_v40 = vpop.f32.mrf.mxu1 }
 0x1ab   : > { %v1397_v16 = vpop.f32.mrf.mxu0  ;;  %v1157_v2 = vadd.f32 %v1156_v40, %v3066_v52 }
 0x1ac   : > { %v1398_v49 = vadd.f32 %v1397_v16, %v1333_v3 }
 0x1ae   : > { %v3175_v12 = vadd.f32 %v1398_v49, %v1154_v10 }
 0x1b0   : > { %1518 = vst [vmem:[%s3109_s9 + $0x50] sm:$0xff] %v3175_v12  ;;  %v1270_v42 = vpop.f32.mrf.mxu2  ;;  %v1440_v8 = vadd.f32 %v1439_v31, %v3175_v12 }
 0x1b1   : > { %v1335_v41 = vpop.f32.mrf.mxu3 }
 0x1b2   : > { %v1336_v15 = vadd.f32 %v1335_v41, %v1270_v42  ;;  %v1159_v1 = vpop.f32.mrf.mxu1 }
 0x1b3   : > { %v1400_v24 = vpop.f32.mrf.mxu0  ;;  %v1160_v59 = vadd.f32 %v1159_v1, %v3077_v7 }
 0x1b4   : > { %v1401_v62 = vadd.f32 %v1400_v24, %v1336_v15 }
 0x1b6   : > { %v1426_v22 = vadd.f32 %v1401_v62, %v1157_v2 }
 0x1b8   : > { %v1441_v13 = vadd.f32 %v1440_v8, %v1426_v22  ;;  %1519 = vst [vmem:[%s3109_s9 + $0x58] sm:$0xff] %v1426_v22  ;;  %v1273_v29 = vpop.f32.mrf.mxu2 }
 0x1b9   : > { %v1338_v37 = vpop.f32.mrf.mxu3 }
 0x1ba   : > { %v1339_v46 = vadd.f32 %v1338_v37, %v1273_v29  ;;  %v1162_v51 = vpop.f32.mrf.mxu1 }
 0x1bb   : > { %v1403_v61 = vpop.f32.mrf.mxu0  ;;  %v1163_v63 = vadd.f32 %v1162_v51, %v3085_v11 }
 0x1bc   : > { %v1404_v25 = vadd.f32 %v1403_v61, %v1339_v46 }
 0x1be   : > { %v1427_v4 = vadd.f32 %v1404_v25, %v1160_v59 }
 0x1c0   : > { %v1442_v48 = vadd.f32 %v1441_v13, %v1427_v4  ;;  %1520 = vst [vmem:[%s3109_s9 + $0x60] sm:$0xff] %v1427_v4  ;;  %v1276_v44 = vpop.f32.mrf.mxu2 }
 0x1c1   : > { %v1341_v52 = vpop.f32.mrf.mxu3 }
 0x1c2   : > { %v1342_v47 = vadd.f32 %v1341_v52, %v1276_v44  ;;  %v1165_v36 = vpop.f32.mrf.mxu1 }
 0x1c3   : > { %v1406_v53 = vpop.f32.mrf.mxu0  ;;  %v1166_v57 = vadd.f32 %v1165_v36, %v3091_v5 }
 0x1c4   : > { %v1407_v19 = vadd.f32 %v1406_v53, %v1342_v47 }
 0x1c6   : > { %v1428_v58 = vadd.f32 %v1407_v19, %v1163_v63 }
 0x1c8   : > { %v1443_v38 = vadd.f32 %v1442_v48, %v1428_v58  ;;  %1521 = vst [vmem:[%s3109_s9 + $0x68] sm:$0xff] %v1428_v58  ;;  %v1279_v55 = vpop.f32.mrf.mxu2 }
 0x1c9   : > { %v1344_v18 = vpop.f32.mrf.mxu3 }
 0x1ca   : > { %v1345_v7 = vadd.f32 %v1344_v18, %v1279_v55  ;;  %v1168_v6 = vpop.f32.mrf.mxu1 }
 0x1cb   : > { %v1409_v21 = vpop.f32.mrf.mxu0  ;;  %v1169_v3 = vadd.f32 %v1168_v6, %v3097_v17 }
 0x1cc   : > { %v1410_v32 = vadd.f32 %v1409_v21, %v1345_v7 }
 0x1ce   : > { %v1429_v26 = vadd.f32 %v1410_v32, %v1166_v57 }
 0x1d0   : > { %v1444_v0 = vadd.f32 %v1443_v38, %v1429_v26  ;;  %1522 = vst [vmem:[%s3109_s9 + $0x70] sm:$0xff] %v1429_v26  ;;  %v1282_v33 = vpop.f32.mrf.mxu2 }
 0x1d1   : > { %v1347_v39 = vpop.f32.mrf.mxu3 }
 0x1d2   : > { %v1348_v11 = vadd.f32 %v1347_v39, %v1282_v33 }
 0x1d3   : > { %v1412_v45 = vpop.f32.mrf.mxu0 }
 0x1d4   : > { %v1413_v40 = vadd.f32 %v1412_v45, %v1348_v11 }
 0x1d6   : > { %v1430_v16 = vadd.f32 %v1413_v40, %v1169_v3 }
 0x1d8   : > { %v1445_v14 = vadd.f32 %v1444_v0, %v1430_v16  ;;  %1523 = vst [vmem:[%s3109_s9 + $0x78] sm:$0xff] %v1430_v16 }
 0x1da   : > { %v1446_v10 = vrot.slane %v1445_v14, 4 }
 0x1dc   : > { %v1447_v49 = vadd.f32 %v1446_v10, %v1445_v14 }
 0x1de   : > { %v1448_v34 = vrot.slane %v1447_v49, 2 }
 0x1e0   : > { %v1449_v20 = vadd.f32 %v1448_v34, %v1447_v49 }
 0x1e2   : > { %v1450_v5 = vrot.slane %v1449_v20, 1 }
 0x1e4   : > { %v1451_v42 = vadd.f32 %v1450_v5, %v1449_v20 }
 0x1e6   : > { %v1452_v41 = vmul.f32 0.0078125, %v1451_v42 }
 0x1e8   : > { %v1453_v30 = vsub.f32 %v3111_v28, %v1452_v41  ;;  %v1454_v15 = vsub.f32 %v3117_v9, %v1452_v41  ;;  %v1463_v1 = vsub.f32 %v3175_v12, %v1452_v41  ;;  %v1464_v24 = vsub.f32 %v1426_v22, %v1452_v41 }
 0x1e9   : > { %v1465_v31 = vsub.f32 %v1427_v4, %v1452_v41  ;;  %v1466_v17 = vsub.f32 %v1428_v58, %v1452_v41  ;;  %v1467_v2 = vsub.f32 %v1429_v26, %v1452_v41  ;;  %v1468_v62 = vsub.f32 %v1430_v16, %v1452_v41 }
 0x1ea   : > { %v1455_v8 = vsub.f32 %v3123_v23, %v1452_v41  ;;  %v1469_v13 = vmul.f32 %v1453_v30, %v1453_v30  ;;  %v1470_v29 = vmul.f32 %v1454_v15, %v1454_v15  ;;  %v1456_v37 = vsub.f32 %v3129_v60, %v1452_v41 }
 0x1eb   : > { %v1457_v46 = vsub.f32 %v3135_v56, %v1452_v41  ;;  %v1458_v28 = vsub.f32 %v3141_v35, %v1452_v41  ;;  %v1459_v12 = vsub.f32 %v3147_v43, %v1452_v41  ;;  %v1460_v4 = vsub.f32 %v3153_v54, %v1452_v41 }
 0x1ec   : > { %v1471_v61 = vmul.f32 %v1455_v8, %v1455_v8  ;;  %v1485_v59 = vadd.f32 %v1470_v29, %v1469_v13  ;;  %v1472_v9 = vmul.f32 %v1456_v37, %v1456_v37  ;;  %v1461_v44 = vsub.f32 %v3158_v27, %v1452_v41 }
 0x1ed   : > { %v1473_v22 = vmul.f32 %v1457_v46, %v1457_v46  ;;  %v1474_v48 = vmul.f32 %v1458_v28, %v1458_v28  ;;  %v1475_v52 = vmul.f32 %v1459_v12, %v1459_v12  ;;  %v1462_v56 = vsub.f32 %v3166_v50, %v1452_v41 }
 0x1ee   : > { %v1486_v25 = vadd.f32 %v1485_v59, %v1471_v61  ;;  %v1476_v47 = vmul.f32 %v1460_v4, %v1460_v4  ;;  %v1477_v63 = vmul.f32 %v1461_v44, %v1461_v44  ;;  %v1479_v36 = vmul.f32 %v1463_v1, %v1463_v1 }
 0x1ef   : > { %v1478_v19 = vmul.f32 %v1462_v56, %v1462_v56  ;;  %v1480_v38 = vmul.f32 %v1464_v24, %v1464_v24  ;;  %v1481_v54 = vmul.f32 %v1465_v31, %v1465_v31  ;;  %v1482_v7 = vmul.f32 %v1466_v17, %v1466_v17 }
 0x1f0   : > { %v1487_v51 = vadd.f32 %v1486_v25, %v1472_v9  ;;  %v1483_v27 = vmul.f32 %v1467_v2, %v1467_v2  ;;  %v1484_v32 = vmul.f32 %v1468_v62, %v1468_v62 }
 0x1f2   : > { %v1488_v23 = vadd.f32 %v1487_v51, %v1473_v22 }
 0x1f4   : > { %v1489_v60 = vadd.f32 %v1488_v23, %v1474_v48 }
 0x1f6   : > { %v1490_v53 = vadd.f32 %v1489_v60, %v1475_v52 }
 0x1f8   : > { %v1491_v35 = vadd.f32 %v1490_v53, %v1476_v47 }
 0x1fa   : > { %v1492_v58 = vadd.f32 %v1491_v35, %v1477_v63 }
 0x1fc   : > { %v1493_v43 = vadd.f32 %v1492_v58, %v1478_v19 }
 0x1fe   : > { %v1494_v55 = vadd.f32 %v1493_v43, %v1479_v36 }
 0x200   : > { %v1495_v18 = vadd.f32 %v1494_v55, %v1480_v38 }
 0x202   : > { %v1496_v21 = vadd.f32 %v1495_v18, %v1481_v54 }
 0x204   : > { %v1497_v57 = vadd.f32 %v1496_v21, %v1482_v7 }
 0x206   : > { %v1498_v26 = vadd.f32 %v1497_v57, %v1483_v27 }
 0x208   : > { %v1499_v50 = vadd.f32 %v1498_v26, %v1484_v32 }
 0x20a   : > { %v1500_v0 = vrot.slane %v1499_v50, 4 }
 0x20c   : > { %v1501_v33 = vadd.f32 %v1500_v0, %v1499_v50 }
 0x20e   : > { %v1502_v6 = vrot.slane %v1501_v33, 2 }
 0x210   : > { %v1503_v39 = vadd.f32 %v1502_v6, %v1501_v33 }
 0x212   : > { %v1504_v11 = vrot.slane %v1503_v39, 1 }
 0x214   : > { %v1505_v45 = vadd.f32 %v1504_v11, %v1503_v39 }
 0x216   : > { %v1506_v3 = vsel %vm562_vm1, %v1451_v42, %v1505_v45 }
 0x217   : > { %1507 = vst [vmem:[%s467_s1] sm:$0x3] %v1506_v3 }
 0x218 PF: > { %s18_s26 = sadd.s32 1, %s2059_s26   ;;  %s3239_s23 = smov %s2051_s24 }
 0x219   : > { %p15_p12 = scmp.ge.s32.totalorder %s18_s26, 6   ;;  %s3240_s1 = smov %s2055_s25 }
 0x21a   : > { %s3241_s24 = smov %s3244_s27  ;;  %s3242_s25 = smov %s3248_s28 }
 0x21b   :  { %17 = sbr.rel (!%p15_p12) target bundleno = 3 (0x3), region = 96 }

</bundles_post_ra>
